<compile_context>
chip_gen: v5e
topology: v5e:2x2
jax: 0.10.0
libtpu: 0.0.40
codegen_flags: <defaults>
</compile_context>

<pallas_src>
from functools import partial

import jax
import jax.numpy as jnp
from jax.experimental import pallas as pl
from jax.experimental.pallas import tpu as pltpu

LATENT_DIM = 100
IMAGE_DIM = 28 * 28  # 784 (MNIST-style generator output)
H1, H2, H3 = 256, 512, 1024


def _round_up(n, m):
    return ((n + m - 1) // m) * m


def generator_kernel(x_ref,
                     w1_ref, b1_ref,
                     w2_ref, b2_ref,
                     w3_ref, b3_ref,
                     w4_ref, b4_ref,
                     o_ref):
    # Full MLP chain for one batch tile. Matmuls take bf16 operands and
    # accumulate in f32 on the MXU; the epilogue (bias, LeakyReLU, tanh) runs
    # in bf16 so no f32 activation tensor materializes after the dots.
    def linear(h, w_ref, b_ref):
        acc = jnp.dot(h, w_ref[...], preferred_element_type=jnp.float32)
        return acc.astype(jnp.bfloat16) + b_ref[...]

    def leaky_relu(h):
        return jnp.maximum(h, 0.2 * h)

    h = leaky_relu(linear(x_ref[...], w1_ref, b1_ref))
    h = leaky_relu(linear(h, w2_ref, b2_ref))
    h = leaky_relu(linear(h, w3_ref, b3_ref))
    h = linear(h, w4_ref, b4_ref)
    o_ref[...] = jnp.tanh(h).astype(o_ref.dtype)


def prepare_params(params):
    """One-time conversion of f32 (in,out)/(1,out) params into padded bf16
    kernel params. Call once; reuse the result for every forward call."""
    L, _ = params["w1"].shape
    out_dim = params["w4"].shape[1]
    L_pad = _round_up(L, 128)          # 100 -> 128 (aligned first-matmul K)
    out_pad = _round_up(out_dim, 128)  # 784 -> 896 (lane-dense output stores)

    w1 = jnp.zeros((L_pad, H1), jnp.bfloat16)
    w1 = w1.at[:L, :].set(params["w1"].astype(jnp.bfloat16))
    w4 = jnp.zeros((H3, out_pad), jnp.bfloat16)
    w4 = w4.at[:, :out_dim].set(params["w4"].astype(jnp.bfloat16))
    b4 = jnp.zeros((1, out_pad), jnp.bfloat16)
    b4 = b4.at[:, :out_dim].set(params["b4"].astype(jnp.bfloat16))

    return {
        "w1": w1, "b1": params["b1"].astype(jnp.bfloat16),
        "w2": params["w2"].astype(jnp.bfloat16),
        "b2": params["b2"].astype(jnp.bfloat16),
        "w3": params["w3"].astype(jnp.bfloat16),
        "b3": params["b3"].astype(jnp.bfloat16),
        "w4": w4, "b4": b4,
    }


@partial(jax.jit, static_argnames=("out_dim", "batch_tile"))
def generator_forward(x, kparams, out_dim=IMAGE_DIM, batch_tile=256):
    """x: (B, latent_dim) float32. kparams: output of prepare_params().

    Returns (B, out_dim) float32.
    """
    B, L = x.shape
    L_pad = kparams["w1"].shape[0]
    out_pad = kparams["w4"].shape[1]

    # Batch tiling: shrink the tile to round_up(B, 8) for small batches so a
    # B=8 call runs one (8, ...) tile; otherwise tile at `batch_tile` (256 by
    # default — good MXU fill on v6e, ~15 MiB footprint so it fits v7x VMEM).
    bt = min(batch_tile, _round_up(B, 8))
    num_tiles = pl.cdiv(B, bt)
    B_pad = num_tiles * bt

    # Only per-call host prep: pad/cast the (small) input activations.
    x_p = jnp.zeros((B_pad, L_pad), jnp.bfloat16)
    x_p = x_p.at[:B, :L].set(x.astype(jnp.bfloat16))

    # Weight/bias blocks cover the full arrays with a constant index map, so
    # the pipeline fetches them once and keeps them resident across the grid.
    def full_spec(shape):
        return pl.BlockSpec(shape, lambda i: (0, 0))

    out = pl.pallas_call(
        generator_kernel,
        out_shape=jax.ShapeDtypeStruct((B_pad, out_pad), jnp.bfloat16),
        grid_spec=pltpu.PrefetchScalarGridSpec(
            num_scalar_prefetch=0,
            grid=(num_tiles,),
            in_specs=[
                pl.BlockSpec((bt, L_pad), lambda i: (i, 0)),
                full_spec(kparams["w1"].shape), full_spec(kparams["b1"].shape),
                full_spec(kparams["w2"].shape), full_spec(kparams["b2"].shape),
                full_spec(kparams["w3"].shape), full_spec(kparams["b3"].shape),
                full_spec(kparams["w4"].shape), full_spec(kparams["b4"].shape),
            ],
            out_specs=pl.BlockSpec((bt, out_pad), lambda i: (i, 0)),
        ),
        compiler_params=pltpu.CompilerParams(
            dimension_semantics=("parallel",),
            # Real buffers total ~<15 MiB with a 256-row tile (bf16 weights,
            # double-buffered x/out tiles, bf16 activations); 48 MiB leaves
            # headroom and stays inside v7x's 64 MiB per-TC VMEM.
            vmem_limit_bytes=48 << 20,
        ),
    )(x_p,
      kparams["w1"], kparams["b1"],
      kparams["w2"], kparams["b2"],
      kparams["w3"], kparams["b3"],
      kparams["w4"], kparams["b4"])

    return out[:B, :out_dim].astype(jnp.float32)


def init_params(key, latent_dim=LATENT_DIM, image_dim=IMAGE_DIM):
    """Deterministic init mimicking PyTorch's default Linear init
    (uniform in [-1/sqrt(fan_in), 1/sqrt(fan_in)]). Weights stored (in, out)."""
    dims = [(latent_dim, H1), (H1, H2), (H2, H3), (H3, image_dim)]
    params = {}
    for idx, (fan_in, fan_out) in enumerate(dims, start=1):
        key, kw, kb = jax.random.split(key, 3)
        bound = 1.0 / jnp.sqrt(jnp.float32(fan_in))
        params[f"w{idx}"] = jax.random.uniform(
            kw, (fan_in, fan_out), jnp.float32, -bound, bound)
        params[f"b{idx}"] = jax.random.uniform(
            kb, (1, fan_out), jnp.float32, -bound, bound)
    return params


def generator_reference(x, params):
    """Pure-JAX reference mirroring the kernel's dtype path: bf16 matmul
    operands, f32 MXU accumulation, bf16 bias/LeakyReLU/tanh epilogue."""
    h = x.astype(jnp.bfloat16)
    for idx in range(1, 5):
        w = params[f"w{idx}"].astype(jnp.bfloat16)
        b = params[f"b{idx}"].astype(jnp.bfloat16)
        h = jnp.dot(h, w, preferred_element_type=jnp.float32)
        h = h.astype(jnp.bfloat16) + b
        if idx < 4:
            h = jnp.maximum(h, 0.2 * h)
    return jnp.tanh(h).astype(jnp.float32)


if __name__ == "__main__":
    key = jax.random.PRNGKey(0)
    key, kx = jax.random.split(key)

    batch = 8
    x = jax.random.normal(kx, (batch, LATENT_DIM), jnp.float32)
    params = init_params(key)

    # One-time: pad + cast weights to bf16 (kept across calls, outside jit).
    kparams = jax.tree_util.tree_map(jax.block_until_ready, prepare_params(params))

    out = generator_forward(x, kparams, out_dim=IMAGE_DIM)
    out = jax.block_until_ready(out)

    ref = generator_reference(x, params)
    assert out.shape == (batch, IMAGE_DIM)
    # Both paths use bf16 operands + f32 accumulation + bf16 epilogue; the
    # tolerance covers MXU-vs-XLA reduction order and bf16 rounding of the
    # tanh output (values in [-1, 1]).
    assert jnp.allclose(out, ref, atol=2e-2, rtol=2e-2), "mismatch vs reference"

    print("KERNEL_OK")
</pallas_src>

<mosaic_0001>
module attributes {stable_mosaic.version = 11 : i64} {
  func.func @generator_kernel(%arg0: i32, %arg1: memref<8x128xbf16, #tpu.memory_space<vmem>>, %arg2: memref<128x256xbf16, #tpu.memory_space<vmem>>, %arg3: memref<1x256xbf16, #tpu.memory_space<vmem>>, %arg4: memref<256x512xbf16, #tpu.memory_space<vmem>>, %arg5: memref<1x512xbf16, #tpu.memory_space<vmem>>, %arg6: memref<512x1024xbf16, #tpu.memory_space<vmem>>, %arg7: memref<1x1024xbf16, #tpu.memory_space<vmem>>, %arg8: memref<1024x896xbf16, #tpu.memory_space<vmem>>, %arg9: memref<1x896xbf16, #tpu.memory_space<vmem>>, %arg10: memref<8x896xbf16, #tpu.memory_space<vmem>>) attributes {dimension_semantics = [#tpu.dimension_semantics<parallel>], iteration_bounds = array<i64: 1>, scalar_prefetch = 0 : i64, scratch_operands = 0 : i64, tpu.core_type = #tpu.core_type<tc>, window_params = [{transform_indices = @transform_0, window_bounds = array<i64: 8, 128>}, {pipeline_mode = #tpu.pipeline_mode<synchronous>, transform_indices = @transform_1, window_bounds = array<i64: 128, 256>}, {pipeline_mode = #tpu.pipeline_mode<synchronous>, transform_indices = @transform_2, window_bounds = array<i64: 1, 256>}, {pipeline_mode = #tpu.pipeline_mode<synchronous>, transform_indices = @transform_3, window_bounds = array<i64: 256, 512>}, {pipeline_mode = #tpu.pipeline_mode<synchronous>, transform_indices = @transform_4, window_bounds = array<i64: 1, 512>}, {pipeline_mode = #tpu.pipeline_mode<synchronous>, transform_indices = @transform_5, window_bounds = array<i64: 512, 1024>}, {pipeline_mode = #tpu.pipeline_mode<synchronous>, transform_indices = @transform_6, window_bounds = array<i64: 1, 1024>}, {pipeline_mode = #tpu.pipeline_mode<synchronous>, transform_indices = @transform_7, window_bounds = array<i64: 1024, 896>}, {pipeline_mode = #tpu.pipeline_mode<synchronous>, transform_indices = @transform_8, window_bounds = array<i64: 1, 896>}, {transform_indices = @transform_9, window_bounds = array<i64: 8, 896>}]} {
    %c0 = arith.constant 0 : index
    %c0_0 = arith.constant 0 : index
    %0 = vector.load %arg1[%c0, %c0_0] : memref<8x128xbf16, #tpu.memory_space<vmem>>, vector<8x128xbf16>
    %c0_1 = arith.constant 0 : index
    %c0_2 = arith.constant 0 : index
    %1 = vector.load %arg2[%c0_1, %c0_2] : memref<128x256xbf16, #tpu.memory_space<vmem>>, vector<128x256xbf16>
    %cst = arith.constant dense<0.000000e+00> : vector<8x256xf32>
    %2 = tpu.matmul %0, %1, %cst {dimension_numbers = #tpu.dot_dimension_numbers<[1], [0], [0], [1], [0, 0, 1, 1], [], []>} : vector<8x128xbf16>, vector<128x256xbf16>, vector<8x256xf32> -> vector<8x256xf32>
    %3 = arith.truncf %2 : vector<8x256xf32> to vector<8x256xbf16>
    %c0_3 = arith.constant 0 : index
    %c0_4 = arith.constant 0 : index
    %4 = vector.load %arg3[%c0_3, %c0_4] : memref<1x256xbf16, #tpu.memory_space<vmem>>, vector<1x256xbf16>
    %5 = vector.broadcast %4 : vector<1x256xbf16> to vector<8x256xbf16>
    %6 = arith.addf %3, %5 : vector<8x256xbf16>
    %cst_5 = arith.constant 2.001950e-01 : bf16
    %7 = vector.broadcast %cst_5 : bf16 to vector<8x256xbf16>
    %8 = arith.mulf %7, %6 : vector<8x256xbf16>
    %9 = arith.maximumf %6, %8 : vector<8x256xbf16>
    %c0_6 = arith.constant 0 : index
    %c0_7 = arith.constant 0 : index
    %10 = vector.load %arg4[%c0_6, %c0_7] : memref<256x512xbf16, #tpu.memory_space<vmem>>, vector<256x512xbf16>
    %cst_8 = arith.constant dense<0.000000e+00> : vector<8x512xf32>
    %11 = tpu.matmul %9, %10, %cst_8 {dimension_numbers = #tpu.dot_dimension_numbers<[1], [0], [0], [1], [0, 0, 1, 1], [], []>} : vector<8x256xbf16>, vector<256x512xbf16>, vector<8x512xf32> -> vector<8x512xf32>
    %12 = arith.truncf %11 : vector<8x512xf32> to vector<8x512xbf16>
    %c0_9 = arith.constant 0 : index
    %c0_10 = arith.constant 0 : index
    %13 = vector.load %arg5[%c0_9, %c0_10] : memref<1x512xbf16, #tpu.memory_space<vmem>>, vector<1x512xbf16>
    %14 = vector.broadcast %13 : vector<1x512xbf16> to vector<8x512xbf16>
    %15 = arith.addf %12, %14 : vector<8x512xbf16>
    %cst_11 = arith.constant 2.001950e-01 : bf16
    %16 = vector.broadcast %cst_11 : bf16 to vector<8x512xbf16>
    %17 = arith.mulf %16, %15 : vector<8x512xbf16>
    %18 = arith.maximumf %15, %17 : vector<8x512xbf16>
    %c0_12 = arith.constant 0 : index
    %c0_13 = arith.constant 0 : index
    %19 = vector.load %arg6[%c0_12, %c0_13] : memref<512x1024xbf16, #tpu.memory_space<vmem>>, vector<512x1024xbf16>
    %cst_14 = arith.constant dense<0.000000e+00> : vector<8x1024xf32>
    %20 = tpu.matmul %18, %19, %cst_14 {dimension_numbers = #tpu.dot_dimension_numbers<[1], [0], [0], [1], [0, 0, 1, 1], [], []>} : vector<8x512xbf16>, vector<512x1024xbf16>, vector<8x1024xf32> -> vector<8x1024xf32>
    %21 = arith.truncf %20 : vector<8x1024xf32> to vector<8x1024xbf16>
    %c0_15 = arith.constant 0 : index
    %c0_16 = arith.constant 0 : index
    %22 = vector.load %arg7[%c0_15, %c0_16] : memref<1x1024xbf16, #tpu.memory_space<vmem>>, vector<1x1024xbf16>
    %23 = vector.broadcast %22 : vector<1x1024xbf16> to vector<8x1024xbf16>
    %24 = arith.addf %21, %23 : vector<8x1024xbf16>
    %cst_17 = arith.constant 2.001950e-01 : bf16
    %25 = vector.broadcast %cst_17 : bf16 to vector<8x1024xbf16>
    %26 = arith.mulf %25, %24 : vector<8x1024xbf16>
    %27 = arith.maximumf %24, %26 : vector<8x1024xbf16>
    %c0_18 = arith.constant 0 : index
    %c0_19 = arith.constant 0 : index
    %28 = vector.load %arg8[%c0_18, %c0_19] : memref<1024x896xbf16, #tpu.memory_space<vmem>>, vector<1024x896xbf16>
    %cst_20 = arith.constant dense<0.000000e+00> : vector<8x896xf32>
    %29 = tpu.matmul %27, %28, %cst_20 {dimension_numbers = #tpu.dot_dimension_numbers<[1], [0], [0], [1], [0, 0, 1, 1], [], []>} : vector<8x1024xbf16>, vector<1024x896xbf16>, vector<8x896xf32> -> vector<8x896xf32>
    %30 = arith.truncf %29 : vector<8x896xf32> to vector<8x896xbf16>
    %c0_21 = arith.constant 0 : index
    %c0_22 = arith.constant 0 : index
    %31 = vector.load %arg9[%c0_21, %c0_22] : memref<1x896xbf16, #tpu.memory_space<vmem>>, vector<1x896xbf16>
    %32 = vector.broadcast %31 : vector<1x896xbf16> to vector<8x896xbf16>
    %33 = arith.addf %30, %32 : vector<8x896xbf16>
    %34 = math.tanh %33 : vector<8x896xbf16>
    %c0_23 = arith.constant 0 : index
    %c0_24 = arith.constant 0 : index
    %35 = vector.load %arg10[%c0_23, %c0_24] : memref<8x896xbf16, #tpu.memory_space<vmem>>, vector<8x896xbf16>
    tpu.vector_store %arg10[%c0_23, %c0_24], %34 {strides = array<i32>} : memref<8x896xbf16, #tpu.memory_space<vmem>>, vector<8x896xbf16>,
    return
  }
  func.func @transform_0(%arg0: i32) -> (i32, i32) {
    %c0_i32 = arith.constant 0 : i32
    %c0_i32_0 = arith.constant 0 : i32
    return %arg0, %c0_i32 : i32, i32
  }
  func.func @transform_1(%arg0: i32) -> (i32, i32) {
    %c0_i32 = arith.constant 0 : i32
    %c0_i32_0 = arith.constant 0 : i32
    %c0_i32_1 = arith.constant 0 : i32
    return %c0_i32, %c0_i32_0 : i32, i32
  }
  func.func @transform_2(%arg0: i32) -> (i32, i32) {
    %c0_i32 = arith.constant 0 : i32
    %c0_i32_0 = arith.constant 0 : i32
    %c0_i32_1 = arith.constant 0 : i32
    return %c0_i32, %c0_i32_0 : i32, i32
  }
  func.func @transform_3(%arg0: i32) -> (i32, i32) {
    %c0_i32 = arith.constant 0 : i32
    %c0_i32_0 = arith.constant 0 : i32
    %c0_i32_1 = arith.constant 0 : i32
    return %c0_i32, %c0_i32_0 : i32, i32
  }
  func.func @transform_4(%arg0: i32) -> (i32, i32) {
    %c0_i32 = arith.constant 0 : i32
    %c0_i32_0 = arith.constant 0 : i32
    %c0_i32_1 = arith.constant 0 : i32
    return %c0_i32, %c0_i32_0 : i32, i32
  }
  func.func @transform_5(%arg0: i32) -> (i32, i32) {
    %c0_i32 = arith.constant 0 : i32
    %c0_i32_0 = arith.constant 0 : i32
    %c0_i32_1 = arith.constant 0 : i32
    return %c0_i32, %c0_i32_0 : i32, i32
  }
  func.func @transform_6(%arg0: i32) -> (i32, i32) {
    %c0_i32 = arith.constant 0 : i32
    %c0_i32_0 = arith.constant 0 : i32
    %c0_i32_1 = arith.constant 0 : i32
    return %c0_i32, %c0_i32_0 : i32, i32
  }
  func.func @transform_7(%arg0: i32) -> (i32, i32) {
    %c0_i32 = arith.constant 0 : i32
    %c0_i32_0 = arith.constant 0 : i32
    %c0_i32_1 = arith.constant 0 : i32
    return %c0_i32, %c0_i32_0 : i32, i32
  }
  func.func @transform_8(%arg0: i32) -> (i32, i32) {
    %c0_i32 = arith.constant 0 : i32
    %c0_i32_0 = arith.constant 0 : i32
    %c0_i32_1 = arith.constant 0 : i32
    return %c0_i32, %c0_i32_0 : i32, i32
  }
  func.func @transform_9(%arg0: i32) -> (i32, i32) {
    %c0_i32 = arith.constant 0 : i32
    %c0_i32_0 = arith.constant 0 : i32
    return %arg0, %c0_i32 : i32, i32
  }
}

</mosaic_0001>

<bundles_post_ra>
// kernel: generator_forward.1
= control target key start
LH: loop header
LB: loop body
LE: loop exit
PB: predicated region body
PF: predicated region fallthrough
CT: control target
= control target key end

     0   :  { %14 = vsyncpa [#allocation3], 0  ;;  %s11064_s0 = inlined_call_operand.vmem [shape: bf16[8,128], index: 0, kind: input, shape index: {}]   ;;  %s11065_s1 = inlined_call_operand.hbm [shape: bf16[128,256], index: 1, kind: input, shape index: {}]   ;;  %s11066_s2 = inlined_call_operand.hbm [shape: bf16[1,256], index: 2, kind: input, shape index: {}]   ;;  %s11067_s3 = inlined_call_operand.hbm [shape: bf16[256,512], index: 3, kind: input, shape index: {}]   ;;  %s11068_s4 = inlined_call_operand.hbm [shape: bf16[1,512], index: 4, kind: input, shape index: {}]   ;;  %s11069_s5 = inlined_call_operand.hbm [shape: bf16[512,1024], index: 5, kind: input, shape index: {}]   ;;  %s11070_s6 = inlined_call_operand.hbm [shape: bf16[1,1024], index: 6, kind: input, shape index: {}]   ;;  %s11071_s7 = inlined_call_operand.hbm [shape: bf16[1024,896], index: 7, kind: input, shape index: {}]   ;;  %s11072_s8 = inlined_call_operand.hbm [shape: bf16[1,896], index: 8, kind: input, shape index: {}]   ;;  %s11073_s9 = inlined_call_operand.vmem [shape: bf16[8,896], index: 9, kind: output, shape index: {}]  }
   0x1   :  { %15 = vsyncpa [#allocation5], 0 }
   0x2   :  { %16 = vsyncpa [#allocation8], 0 }
   0x3   :  { %17 = vsyncpa [#allocation11], 0  ;;  %s39_s11 = sshll.u32 %s11066_s2, 4  ;;  %s40_s11 = int_to_ptr.hbm [resolvable:$true] %s39_s11 }
   0x4   :  { %18 = vsyncpa [#allocation14], 0  ;;  %s10697_s12 = smov [#allocation4]   ;;  %s63_s16 = sshll.u32 %s11068_s4, 4  ;;  %s64_s16 = int_to_ptr.hbm [resolvable:$true] %s63_s16 }
   0x5   :  { %s41_s13 = sshll.u32 %s10697_s12, 4  ;;  %s10698_s17 = smov [#allocation7]   ;;  %s42_s13 = int_to_ptr.vmem [resolvable:$true] %s41_s13 }
   0x6   :  { %44 = dma.hbm_to_vmem [thread:$0]  %s40_s11, 32, %s42_s13, [#allocation5]  }
   0x7   :  { %s65_s18 = sshll.u32 %s10698_s17, 4  ;;  %s87_s21 = sshll.u32 %s11070_s6, 4  ;;  %s66_s18 = int_to_ptr.vmem [resolvable:$true] %s65_s18  ;;  %s88_s21 = int_to_ptr.hbm [resolvable:$true] %s87_s21 }
   0x8   :  { %68 = dma.hbm_to_vmem [thread:$0]  %s64_s16, 64, %s66_s18, [#allocation8]  }
   0x9   :  { %s25_s23 = sshll.u32 %s11065_s1, 4  ;;  %s10699_s24 = smov [#allocation10]   ;;  %s26_s23 = int_to_ptr.hbm [resolvable:$true] %s25_s23 }
   0xa   :  { %s89_s25 = sshll.u32 %s10699_s24, 4  ;;  %s10700_s4 = smov [#allocation2]   ;;  %s90_s25 = int_to_ptr.vmem [resolvable:$true] %s89_s25 }
   0xb   :  { %92 = dma.hbm_to_vmem [thread:$0]  %s88_s21, 128, %s90_s25, [#allocation11]  }
   0xc   :  { %s27_s26 = sshll.u32 %s10700_s4, 4  ;;  %s10701_s27 = smov 128   ;;  %s28_s26 = int_to_ptr.vmem [resolvable:$true] %s27_s26 }
   0xd   :  { %s10702_s28 = smov 8   ;;  %s49_s30 = sshll.u32 %s11067_s3, 4  ;;  %s50_s30 = int_to_ptr.hbm [resolvable:$true] %s49_s30 }
   0xe   :  { %33 = dma.hbm_to_vmem [thread:$0]  %s26_s23, 2048, %s28_s26, [#allocation3], %s10701_s27, %s10701_s27, %s10702_s28  }
   0xf   :  { %s10703_s10 = smov [#allocation6]   ;;  %s73_s13 = sshll.u32 %s11069_s5, 4  ;;  %s74_s13 = int_to_ptr.hbm [resolvable:$true] %s73_s13 }
  0x10   :  { %s51_s11 = sshll.u32 %s10703_s10, 4  ;;  %s10704_s14 = smov 256   ;;  %s52_s11 = int_to_ptr.vmem [resolvable:$true] %s51_s11 }
  0x11   :  { %s10705_s15 = smov 16   ;;  %s10706_s16 = smov [#allocation9]  }
  0x12   :  { %57 = dma.hbm_to_vmem [thread:$0]  %s50_s30, 8192, %s52_s11, [#allocation5], %s10704_s14, %s10704_s14, %s10705_s15  }
  0x13   :  { %s75_s17 = sshll.u32 %s10706_s16, 4  ;;  %s10707_s18 = smov 512   ;;  %s76_s17 = int_to_ptr.vmem [resolvable:$true] %s75_s17 }
  0x14   :  { %s10708_s19 = smov 32   ;;  %s97_s21 = sshll.u32 %s11071_s7, 4  ;;  %s98_s21 = int_to_ptr.hbm [resolvable:$true] %s97_s21 }
  0x15   :  { %81 = dma.hbm_to_vmem [thread:$0]  %s74_s13, 32768, %s76_s17, [#allocation8], %s10707_s18, %s10707_s18, %s10708_s19  }
  0x16   :  { %s10709_s2 = smov [#allocation12]   ;;  %s111_s24 = sshll.u32 %s11072_s8, 4  ;;  %s112_s24 = int_to_ptr.hbm [resolvable:$true] %s111_s24 }
  0x17   :  { %s99_s22 = sshll.u32 %s10709_s2, 4  ;;  %s10710_s25 = smov 448   ;;  %s100_s22 = int_to_ptr.vmem [resolvable:$true] %s99_s22 }
  0x18   :  { %s10711_s4 = smov 28   ;;  %s10712_s26 = smov [#allocation13]  }
  0x19   :  { %105 = dma.hbm_to_vmem [thread:$0]  %s98_s21, 57344, %s100_s22, [#allocation11], %s10710_s25, %s10710_s25, %s10711_s4  }
  0x1a   :  { %s113_s27 = sshll.u32 %s10712_s26, 4  ;;  %s114_s27 = int_to_ptr.vmem [resolvable:$true] %s113_s27 }
  0x1b   :  { %116 = dma.hbm_to_vmem [thread:$0]  %s112_s24, 112, %s114_s27, [#allocation14]  }
  0x1c   :  { %10687 = dma.done.wait [#allocation3], 2048  }
  0x1d   :  { %10688 = vsyncadd [#allocation3], 4294965248 }
  0x1e   :  { %10689 = dma.done.wait [#allocation5], 8224  }
  0x1f   :  { %10690 = vsyncadd [#allocation5], 4294959072 }
  0x20   :  { %10691 = dma.done.wait [#allocation8], 32832  }
  0x21   :  { %10692 = vsyncadd [#allocation8], 4294934464 }
  0x22   :  { %10693 = dma.done.wait [#allocation11], 57472  }
  0x23   :  { %10694 = vsyncadd [#allocation11], 4294909824 }
  0x24   :  { %10695 = dma.done.wait [#allocation14], 112  }
  0x25   :  { %10696 = vsyncadd [#allocation14], 4294967184  ;;  %v6603_v0 = vld [vmem:[#allocation2 + $0x70] sm:$0xf]  ;;  %v9696_v1 = vld [vmem:[#allocation2 + $0x74] sm:$0xf0] }
  0x26   :  { %v9695_v2 = vld [vmem:[#allocation2 + $0x74] sm:$0xf]  ;;  %v6604_v3 = vor.u32 %v9696_v1, %v6603_v0  ;;  %v6605_v4 = vld [vmem:[#allocation2 + $0x78] sm:$0xf0]  ;;  %v6595_v5 = vld [vmem:[#allocation2 + $0x60] sm:$0xf] }
  0x27   :  { %v9694_v6 = vld [vmem:[#allocation2 + $0x64] sm:$0xf0]  ;;  %v6608_v7 = vor.u32 %v9695_v2, %v6605_v4  ;;  %v9693_v8 = vld [vmem:[#allocation2 + $0x64] sm:$0xf]  ;;  %v6597_v9 = vld [vmem:[#allocation2 + $0x68] sm:$0xf0] }
  0x28   :  { %246 = vmatpush.bf16.msra.mxu0 %v6604_v3  ;;  %v6596_v10 = vor.u32 %v9694_v6, %v6595_v5  ;;  %v6600_v11 = vor.u32 %v9693_v8, %v6597_v9  ;;  %v6587_v12 = vld [vmem:[#allocation2 + $0x50] sm:$0xf]  ;;  %v9692_v13 = vld [vmem:[#allocation2 + $0x54] sm:$0xf0]  ;;  %v9691_v14 = vld [vmem:[#allocation2 + $0x54] sm:$0xf] }
  0x29   :  { %259 = vmatpush.bf16.msra.mxu1 %v6608_v7  ;;  %v6589_v15 = vld [vmem:[#allocation2 + $0x58] sm:$0xf0]  ;;  %v6588_v16 = vor.u32 %v9692_v13, %v6587_v12  ;;  %v6579_v18 = vld [vmem:[#allocation2 + $0x40] sm:$0xf]  ;;  %v9690_v19 = vld [vmem:[#allocation2 + $0x44] sm:$0xf0] }
  0x2a   :  { %v6592_v17 = vor.u32 %v9691_v14, %v6589_v15  ;;  %v9689_v20 = vld [vmem:[#allocation2 + $0x44] sm:$0xf]  ;;  %v6581_v21 = vld [vmem:[#allocation2 + $0x48] sm:$0xf0]  ;;  %v6580_v22 = vor.u32 %v9690_v19, %v6579_v18  ;;  %v9727_v24 = vld [vmem:[#allocation6 + $0xec] sm:$0xf0] }
  0x2b   :  { %v6723_v23 = vld [vmem:[#allocation6 + $0xe0] sm:$0xf]  ;;  %v6584_v26 = vor.u32 %v9689_v20, %v6581_v21  ;;  %v6571_v27 = vld [vmem:[#allocation2 + $0x30] sm:$0xf]  ;;  %v9688_v28 = vld [vmem:[#allocation2 + $0x34] sm:$0xf0] }
  0x2c   :  { %247 = vmatpush.bf16.msra.mxu0 %v6596_v10  ;;  %v6851_v25 = vld [vmem:[#allocation6 + $0x1e0] sm:$0xf]  ;;  %v6724_v29 = vor.u32 %v9727_v24, %v6723_v23  ;;  %v9759_v30 = vld [vmem:[#allocation6 + $0x1ec] sm:$0xf0]  ;;  %v6573_v32 = vld [vmem:[#allocation2 + $0x38] sm:$0xf0]  ;;  %v6572_v38 = vor.u32 %v9688_v28, %v6571_v27 }
  0x2d   :  { %260 = vmatpush.bf16.msra.mxu1 %v6600_v11  ;;  %v9687_v31 = vld [vmem:[#allocation2 + $0x34] sm:$0xf]  ;;  %v6852_v33 = vor.u32 %v9759_v30, %v6851_v25  ;;  %v6707_v34 = vld [vmem:[#allocation6 + $0xc0] sm:$0xf]  ;;  %v9686_v40 = vld [vmem:[#allocation2 + $0x24] sm:$0xf0] }
  0x2e   :  { %686 = vmatpush.bf16.msra.mxu2 %v6724_v29  ;;  %v9723_v35 = vld [vmem:[#allocation6 + $0xcc] sm:$0xf0]  ;;  %v6835_v36 = vld [vmem:[#allocation6 + $0x1c0] sm:$0xf]  ;;  %v6576_v43 = vor.u32 %v9687_v31, %v6573_v32  ;;  %v6565_v47 = vld [vmem:[#allocation2 + $0x28] sm:$0xf0] }
  0x2f   :  { %v9755_v37 = vld [vmem:[#allocation6 + $0x1cc] sm:$0xf0]  ;;  %v6563_v39 = vld [vmem:[#allocation2 + $0x20] sm:$0xf]  ;;  %699 = vmatpush.bf16.msra.mxu3 %v6852_v33  ;;  %v6708_v41 = vor.u32 %v9723_v35, %v6707_v34  ;;  %v9685_v44 = vld [vmem:[#allocation2 + $0x24] sm:$0xf] }
  0x30   :  { %248 = vmatpush.bf16.msra.mxu0 %v6588_v16  ;;  %v6836_v42 = vor.u32 %v9755_v37, %v6835_v36  ;;  %v6691_v45 = vld [vmem:[#allocation6 + $0xa0] sm:$0xf]  ;;  %v9719_v46 = vld [vmem:[#allocation6 + $0xac] sm:$0xf0]  ;;  %v6564_v51 = vor.u32 %v9686_v40, %v6563_v39  ;;  %v6568_v56 = vor.u32 %v9685_v44, %v6565_v47  ;;  %v9684_v57 = vld [vmem:[#allocation2 + $0x14] sm:$0xf0] }
  0x31   :  { %261 = vmatpush.bf16.msra.mxu1 %v6592_v17  ;;  %v6819_v48 = vld [vmem:[#allocation6 + $0x1a0] sm:$0xf]  ;;  %v9751_v49 = vld [vmem:[#allocation6 + $0x1ac] sm:$0xf0]  ;;  %v6692_v50 = vor.u32 %v9719_v46, %v6691_v45  ;;  %v6557_v61 = vld [vmem:[#allocation2 + $0x18] sm:$0xf0] }
  0x32   :  { %687 = vmatpush.bf16.msra.mxu2 %v6708_v41  ;;  %v6555_v52 = vld [vmem:[#allocation2 + $0x10] sm:$0xf]  ;;  %v6820_v53 = vor.u32 %v9751_v49, %v6819_v48  ;;  %v6675_v54 = vld [vmem:[#allocation6 + $0x80] sm:$0xf]  ;;  %v9683_v60 = vld [vmem:[#allocation2 + $0x14] sm:$0xf] }
  0x33   :  { %700 = vmatpush.bf16.msra.mxu3 %v6836_v42  ;;  %v9715_v55 = vld [vmem:[#allocation6 + $0x8c] sm:$0xf0]  ;;  %v6803_v58 = vld [vmem:[#allocation6 + $0x180] sm:$0xf]  ;;  %v6556_v0 = vor.u32 %v9684_v57, %v6555_v52  ;;  %v9682_v1 = vld [vmem:[#allocation2 + $0x4] sm:$0xf0]  ;;  %v6560_v5 = vor.u32 %v9683_v60, %v6557_v61 }
  0x34   :  { %249 = vmatpush.bf16.msra.mxu0 %v6580_v22  ;;  %v9747_v59 = vld [vmem:[#allocation6 + $0x18c] sm:$0xf0]  ;;  %v6547_v62 = vld [vmem:[#allocation2] sm:$0xf]  ;;  %v6676_v63 = vor.u32 %v9715_v55, %v6675_v54  ;;  %v9681_v6 = vld [vmem:[#allocation2 + $0x4] sm:$0xf] }
  0x35   :  { %262 = vmatpush.bf16.msra.mxu1 %v6584_v26  ;;  %v6804_v2 = vor.u32 %v9747_v59, %v6803_v58  ;;  %v6659_v3 = vld [vmem:[#allocation6 + $0x60] sm:$0xf]  ;;  %v9711_v4 = vld [vmem:[#allocation6 + $0x6c] sm:$0xf0]  ;;  %v6549_v9 = vld [vmem:[#allocation2 + $0x8] sm:$0xf0]  ;;  %v6548_v15 = vor.u32 %v9682_v1, %v6547_v62 }
  0x36   :  { %688 = vmatpush.bf16.msra.mxu2 %v6692_v50  ;;  %v6787_v7 = vld [vmem:[#allocation6 + $0x160] sm:$0xf]  ;;  %v9743_v8 = vld [vmem:[#allocation6 + $0x16c] sm:$0xf0]  ;;  %v9725_v10 = vld [vmem:[#allocation6 + $0xe4] sm:$0xf]  ;;  %v6660_v14 = vor.u32 %v9711_v4, %v6659_v3  ;;  %v6552_v19 = vor.u32 %v9681_v6, %v6549_v9 }
  0x37   :  { %701 = vmatpush.bf16.msra.mxu3 %v6820_v53  ;;  %v6725_v11 = vld [vmem:[#allocation6 + $0xf0] sm:$0xf0]  ;;  %v9757_v12 = vld [vmem:[#allocation6 + $0x1e4] sm:$0xf]  ;;  %v6788_v16 = vor.u32 %v9743_v8, %v6787_v7  ;;  %v6643_v17 = vld [vmem:[#allocation6 + $0x40] sm:$0xf] }
  0x38   :  { %250 = vmatpush.bf16.msra.mxu0 %v6572_v38  ;;  %v6853_v13 = vld [vmem:[#allocation6 + $0x1f0] sm:$0xf0]  ;;  %v9707_v18 = vld [vmem:[#allocation6 + $0x4c] sm:$0xf0]  ;;  %v6728_v20 = vor.u32 %v9725_v10, %v6725_v11  ;;  %v6771_v21 = vld [vmem:[#allocation6 + $0x140] sm:$0xf] }
  0x39   :  { %263 = vmatpush.bf16.msra.mxu1 %v6576_v43  ;;  %v9739_v22 = vld [vmem:[#allocation6 + $0x14c] sm:$0xf0]  ;;  %v6856_v23 = vor.u32 %v9757_v12, %v6853_v13  ;;  %v9721_v24 = vld [vmem:[#allocation6 + $0xc4] sm:$0xf]  ;;  %v6709_v25 = vld [vmem:[#allocation6 + $0xd0] sm:$0xf0]  ;;  %v6644_v28 = vor.u32 %v9707_v18, %v6643_v17 }
  0x3a   :  { %689 = vmatpush.bf16.msra.mxu2 %v6676_v63  ;;  %v9753_v26 = vld [vmem:[#allocation6 + $0x1c4] sm:$0xf]  ;;  %v6837_v27 = vld [vmem:[#allocation6 + $0x1d0] sm:$0xf0]  ;;  %v6772_v30 = vor.u32 %v9739_v22, %v6771_v21  ;;  %v6627_v31 = vld [vmem:[#allocation6 + $0x20] sm:$0xf]  ;;  %v6712_v33 = vor.u32 %v9721_v24, %v6709_v25 }
  0x3b   :  { %702 = vmatpush.bf16.msra.mxu3 %v6804_v2  ;;  %v149_v29 = vld [vmem:[%s11064_s0] sm:$0xf]  ;;  %v9703_v32 = vld [vmem:[#allocation6 + $0x2c] sm:$0xf0]  ;;  %v6755_v34 = vld [vmem:[#allocation6 + $0x120] sm:$0xf]  ;;  %v6840_v36 = vor.u32 %v9753_v26, %v6837_v27 }
  0x3c   :  { %251 = vmatpush.bf16.msra.mxu0 %v6564_v51  ;;  %v9735_v35 = vld [vmem:[#allocation6 + $0x12c] sm:$0xf0]  ;;  %v9717_v37 = vld [vmem:[#allocation6 + $0xa4] sm:$0xf]  ;;  %v6693_v38 = vld [vmem:[#allocation6 + $0xb0] sm:$0xf0]  ;;  %v6628_v41 = vor.u32 %v9703_v32, %v6627_v31 }
  0x3d   :  { %264 = vmatpush.bf16.msra.mxu1 %v6568_v56  ;;  %v9749_v39 = vld [vmem:[#allocation6 + $0x1a4] sm:$0xf]  ;;  %v6821_v40 = vld [vmem:[#allocation6 + $0x1b0] sm:$0xf0]  ;;  %v6756_v42 = vor.u32 %v9735_v35, %v6755_v34  ;;  %v6696_v43 = vor.u32 %v9717_v37, %v6693_v38  ;;  %v6611_v6 = vld [vmem:[#allocation6] sm:$0xf] }
  0x3e   :  { %690 = vmatpush.bf16.msra.mxu2 %v6660_v14  ;;  %v6824_v44 = vor.u32 %v9749_v39, %v6821_v40  ;;  %v9713_v45 = vld [vmem:[#allocation6 + $0x84] sm:$0xf]  ;;  %v6677_v46 = vld [vmem:[#allocation6 + $0x90] sm:$0xf0]  ;;  %v9699_v7 = vld [vmem:[#allocation6 + $0xc] sm:$0xf0] }
  0x3f   :  { %703 = vmatpush.bf16.msra.mxu3 %v6788_v16  ;;  %v9745_v47 = vld [vmem:[#allocation6 + $0x184] sm:$0xf]  ;;  %v6805_v48 = vld [vmem:[#allocation6 + $0x190] sm:$0xf0]  ;;  %v6680_v49 = vor.u32 %v9713_v45, %v6677_v46  ;;  %v6739_v8 = vld [vmem:[#allocation6 + $0x100] sm:$0xf]  ;;  %v6612_v10 = vor.u32 %v9699_v7, %v6611_v6 }
  0x40   :  { %252 = vmatpush.bf16.msra.mxu0 %v6556_v0  ;;  %v6808_v50 = vor.u32 %v9745_v47, %v6805_v48  ;;  %v9709_v51 = vld [vmem:[#allocation6 + $0x64] sm:$0xf]  ;;  %v6661_v52 = vld [vmem:[#allocation6 + $0x70] sm:$0xf0]  ;;  %v9731_v9 = vld [vmem:[#allocation6 + $0x10c] sm:$0xf0] }
  0x41   :  { %265 = vmatpush.bf16.msra.mxu1 %v6560_v5  ;;  %v9741_v53 = vld [vmem:[#allocation6 + $0x164] sm:$0xf]  ;;  %v6789_v54 = vld [vmem:[#allocation6 + $0x170] sm:$0xf0]  ;;  %v6664_v55 = vor.u32 %v9709_v51, %v6661_v52  ;;  %v273_v5 = vld [vmem:[#allocation4] sm:$0x3]  ;;  %v6740_v11 = vor.u32 %v9731_v9, %v6739_v8 }
  0x42   :  { %691 = vmatpush.bf16.msra.mxu2 %v6644_v28  ;;  %v6792_v56 = vor.u32 %v9741_v53, %v6789_v54  ;;  %v9705_v57 = vld [vmem:[#allocation6 + $0x44] sm:$0xf]  ;;  %v6645_v58 = vld [vmem:[#allocation6 + $0x50] sm:$0xf0]  ;;  %275 = vst [vmem:[#allocation1] ss:$9 sm:$0xff] %v273_v5 }
  0x43   :  { %704 = vmatpush.bf16.msra.mxu3 %v6772_v30  ;;  %v9737_v59 = vld [vmem:[#allocation6 + $0x144] sm:$0xf]  ;;  %v6773_v60 = vld [vmem:[#allocation6 + $0x150] sm:$0xf0]  ;;  %v6648_v61 = vor.u32 %v9705_v57, %v6645_v58  ;;  %v6731_v17 = vld [vmem:[#allocation6 + $0xe8] sm:$0xf] }
  0x44   :  { %253 = vmatpush.bf16.msra.mxu0 %v6548_v15  ;;  %v6776_v62 = vor.u32 %v9737_v59, %v6773_v60  ;;  %v9701_v63 = vld [vmem:[#allocation6 + $0x24] sm:$0xf]  ;;  %v6629_v0 = vld [vmem:[#allocation6 + $0x30] sm:$0xf0]  ;;  %v9760_v21 = vld [vmem:[#allocation6 + $0x1f4] sm:$0xf0] }
  0x45   :  { %266 = vmatpush.bf16.msra.mxu1 %v6552_v19  ;;  %v9733_v1 = vld [vmem:[#allocation6 + $0x124] sm:$0xf]  ;;  %v6757_v2 = vld [vmem:[#allocation6 + $0x130] sm:$0xf0]  ;;  %v6632_v3 = vor.u32 %v9701_v63, %v6629_v0  ;;  %v9728_v19 = vld [vmem:[#allocation6 + $0xf4] sm:$0xf0] }
  0x46   :  { %692 = vmatpush.bf16.msra.mxu2 %v6628_v41  ;;  %v6760_v4 = vor.u32 %v9733_v1, %v6757_v2  ;;  %v9697_v12 = vld [vmem:[#allocation6 + $0x4] sm:$0xf]  ;;  %v6613_v13 = vld [vmem:[#allocation6 + $0x10] sm:$0xf0]  ;;  %v6732_v22 = vor.u32 %v9728_v19, %v6731_v17  ;;  %v9726_v24 = vld [vmem:[#allocation6 + $0xec] sm:$0xf] }
  0x47   :  { %254 = vmatmul.bf16.vlgmr.msra.gmra.mxu0 %v149_v29  ;;  %705 = vmatpush.bf16.msra.mxu3 %v6756_v42  ;;  %v9729_v14 = vld [vmem:[#allocation6 + $0x104] sm:$0xf]  ;;  %v6616_v15 = vor.u32 %v9697_v12, %v6613_v13  ;;  %v6741_v16 = vld [vmem:[#allocation6 + $0x110] sm:$0xf0]  ;;  %v6733_v25 = vld [vmem:[#allocation6 + $0xf8] sm:$0xf0] }
  0x48   :  { %712 = vmatpush.bf16.msrb.mxu0 %v6728_v20  ;;  %267 = vmatmul.bf16.vlgmr.msra.gmra.mxu1 %v149_v29  ;;  %v6744_v18 = vor.u32 %v9729_v14, %v6741_v16  ;;  %v6859_v20 = vld [vmem:[#allocation6 + $0x1e8] sm:$0xf]  ;;  %v9758_v26 = vld [vmem:[#allocation6 + $0x1ec] sm:$0xf]  ;;  %v6736_v27 = vor.u32 %v9726_v24, %v6733_v25  ;;  %v6861_v28 = vld [vmem:[#allocation6 + $0x1f8] sm:$0xf0] }
  0x49   :  { %725 = vmatpush.bf16.msrb.mxu1 %v6856_v23  ;;  %v6860_v23 = vor.u32 %v9760_v21, %v6859_v20  ;;  %v6715_v29 = vld [vmem:[#allocation6 + $0xc8] sm:$0xf]  ;;  %v9724_v30 = vld [vmem:[#allocation6 + $0xd4] sm:$0xf0]  ;;  %v6864_v31 = vor.u32 %v9758_v26, %v6861_v28  ;;  %v9722_v35 = vld [vmem:[#allocation6 + $0xcc] sm:$0xf] }
  0x4a   :  { %693 = vmatpush.bf16.msra.mxu2 %v6612_v10  ;;  %v6716_v32 = vor.u32 %v9724_v30, %v6715_v29  ;;  %v9756_v34 = vld [vmem:[#allocation6 + $0x1d4] sm:$0xf0]  ;;  %v6717_v37 = vld [vmem:[#allocation6 + $0xd8] sm:$0xf0]  ;;  %v9754_v38 = vld [vmem:[#allocation6 + $0x1cc] sm:$0xf] }
  0x4b   :  { %706 = vmatpush.bf16.msra.mxu3 %v6740_v11  ;;  %v6845_v39 = vld [vmem:[#allocation6 + $0x1d8] sm:$0xf0]  ;;  %v6720_v42 = vor.u32 %v9722_v35, %v6717_v37  ;;  %v9720_v45 = vld [vmem:[#allocation6 + $0xb4] sm:$0xf0]  ;;  %v6827_v46 = vld [vmem:[#allocation6 + $0x1a8] sm:$0xf] }
  0x4c   :  { %713 = vmatpush.bf16.msrb.mxu0 %v6712_v33  ;;  %v6843_v33 = vld [vmem:[#allocation6 + $0x1c8] sm:$0xf]  ;;  %v10790_v40 = vld [vmem:[#allocation1] sm:$0xff]  ;;  %v10792_v41 = vld [vmem:[#allocation1 + $0x9] sm:$0xff] }
  0x4d   :  { %726 = vmatpush.bf16.msrb.mxu1 %v6840_v36  ;;  %v6844_v36 = vor.u32 %v9756_v34, %v6843_v33  ;;  %v9752_v47 = vld [vmem:[#allocation6 + $0x1b4] sm:$0xf0]  ;;  %v9718_v48 = vld [vmem:[#allocation6 + $0xac] sm:$0xf]  ;;  %v6829_v54 = vld [vmem:[#allocation6 + $0x1b8] sm:$0xf0]  ;;  %v278_v35 = vpack.i.b16 %v10790_v40, %v10790_v40 }
  0x4e   :  { %738 = vmatpush.bf16.msrb.mxu2 %v6732_v22  ;;  %v6828_v52 = vor.u32 %v9752_v47, %v6827_v46  ;;  %v9750_v53 = vld [vmem:[#allocation6 + $0x1ac] sm:$0xf]  ;;  %v9716_v57 = vld [vmem:[#allocation6 + $0x94] sm:$0xf0]  ;;  %v6811_v59 = vld [vmem:[#allocation6 + $0x188] sm:$0xf] }
  0x4f   :  { %751 = vmatpush.bf16.msrb.mxu3 %v6860_v23  ;;  %v6832_v58 = vor.u32 %v9750_v53, %v6829_v54  ;;  %v9748_v60 = vld [vmem:[#allocation6 + $0x194] sm:$0xf0]  ;;  %v9746_v63 = vld [vmem:[#allocation6 + $0x18c] sm:$0xf]  ;;  %v6813_v0 = vld [vmem:[#allocation6 + $0x198] sm:$0xf0] }
  0x50   :  { %714 = vmatpush.bf16.msrb.mxu0 %v6696_v43  ;;  %v6848_v43 = vor.u32 %v9754_v38, %v6845_v39  ;;  %v6812_v2 = vor.u32 %v9748_v60, %v6811_v59  ;;  %v6667_v5 = vld [vmem:[#allocation6 + $0x68] sm:$0xf]  ;;  %v9712_v6 = vld [vmem:[#allocation6 + $0x74] sm:$0xf0]  ;;  %v9710_v10 = vld [vmem:[#allocation6 + $0x6c] sm:$0xf]  ;;  %v281_v38 = vpack.i.b16 %v10792_v41, %v10792_v41 }
  0x51   :  { %727 = vmatpush.bf16.msrb.mxu1 %v6824_v44  ;;  %v6699_v44 = vld [vmem:[#allocation6 + $0xa8] sm:$0xf]  ;;  %v6668_v8 = vor.u32 %v9712_v6, %v6667_v5  ;;  %v9744_v9 = vld [vmem:[#allocation6 + $0x174] sm:$0xf0]  ;;  %v6669_v11 = vld [vmem:[#allocation6 + $0x78] sm:$0xf0] }
  0x52   :  { %739 = vmatpush.bf16.msrb.mxu2 %v6716_v32  ;;  %v6700_v51 = vor.u32 %v9720_v45, %v6699_v44  ;;  %v6795_v7 = vld [vmem:[#allocation6 + $0x168] sm:$0xf]  ;;  %v6672_v13 = vor.u32 %v9710_v10, %v6669_v11  ;;  %v9742_v14 = vld [vmem:[#allocation6 + $0x16c] sm:$0xf]  ;;  %v9740_v20 = vld [vmem:[#allocation6 + $0x154] sm:$0xf0] }
  0x53   :  { %752 = vmatpush.bf16.msrb.mxu3 %v6844_v36  ;;  %v6796_v12 = vor.u32 %v9744_v9, %v6795_v7  ;;  %v6651_v16 = vld [vmem:[#allocation6 + $0x48] sm:$0xf]  ;;  %v9706_v21 = vld [vmem:[#allocation6 + $0x4c] sm:$0xf]  ;;  %v6653_v22 = vld [vmem:[#allocation6 + $0x58] sm:$0xf0] }
  0x54   :  { %715 = vmatpush.bf16.msrb.mxu0 %v6680_v49  ;;  %v6701_v49 = vld [vmem:[#allocation6 + $0xb8] sm:$0xf0]  ;;  %v6779_v19 = vld [vmem:[#allocation6 + $0x148] sm:$0xf]  ;;  %v9738_v23 = vld [vmem:[#allocation6 + $0x14c] sm:$0xf]  ;;  %v6656_v28 = vor.u32 %v9706_v21, %v6653_v22 }
  0x55   :  { %728 = vmatpush.bf16.msrb.mxu1 %v6808_v50  ;;  %v792_v50 = vld [vmem:[#allocation7] sm:$0xf]  ;;  %v6780_v25 = vor.u32 %v9740_v20, %v6779_v19  ;;  %v6781_v26 = vld [vmem:[#allocation6 + $0x158] sm:$0xf0]  ;;  %v9704_v29 = vld [vmem:[#allocation6 + $0x34] sm:$0xf0] }
  0x56   :  { %794 = vst [vmem:[#allocation1] ss:$9 sm:$0xff] %v792_v50  ;;  %740 = vmatpush.bf16.msrb.mxu2 %v6700_v51  ;;  %v6763_v30 = vld [vmem:[#allocation6 + $0x128] sm:$0xf]  ;;  %v6784_v32 = vor.u32 %v9738_v23, %v6781_v26  ;;  %v9702_v33 = vld [vmem:[#allocation6 + $0x2c] sm:$0xf] }
  0x57   :  { %753 = vmatpush.bf16.msrb.mxu3 %v6828_v52  ;;  %v6637_v34 = vld [vmem:[#allocation6 + $0x38] sm:$0xf0]  ;;  %v9734_v36 = vld [vmem:[#allocation6 + $0x12c] sm:$0xf]  ;;  %v9700_v45 = vld [vmem:[#allocation6 + $0x14] sm:$0xf0] }
  0x58   :  { %716 = vmatpush.bf16.msrb.mxu0 %v6664_v55  ;;  %v6704_v55 = vor.u32 %v9718_v48, %v6701_v49  ;;  %v6765_v37 = vld [vmem:[#allocation6 + $0x138] sm:$0xf0]  ;;  %v6640_v44 = vor.u32 %v9702_v33, %v6637_v34  ;;  %v6747_v46 = vld [vmem:[#allocation6 + $0x108] sm:$0xf]  ;;  %v9732_v47 = vld [vmem:[#allocation6 + $0x114] sm:$0xf0] }
  0x59   :  { %729 = vmatpush.bf16.msrb.mxu1 %v6792_v56  ;;  %v6683_v56 = vld [vmem:[#allocation6 + $0x88] sm:$0xf]  ;;  %v6768_v48 = vor.u32 %v9734_v36, %v6765_v37  ;;  %v9698_v49 = vld [vmem:[#allocation6 + $0xc] sm:$0xf]  ;;  %v6621_v50 = vld [vmem:[#allocation6 + $0x18] sm:$0xf0]  ;;  %v6748_v54 = vor.u32 %v9732_v47, %v6747_v46 }
  0x5a   :  { %v6684_v1 = vor.u32 %v9716_v57, %v6683_v56  ;;  %v9730_v40 = vld [vmem:[#allocation6 + $0x10c] sm:$0xf]  ;;  %v6749_v51 = vld [vmem:[#allocation6 + $0x118] sm:$0xf0]  ;;  %v280_v52 = vperm.slane %v278_v35, 0  ;;  %v283_v53 = vperm.slane %v281_v38, 0 }
  0x5b   :  { %754 = vmatpush.bf16.msrb.mxu3 %v6812_v2  ;;  %v6752_v57 = vor.u32 %v9730_v40, %v6749_v51  ;;  %v7091_v9 = vld [vmem:[#allocation9 + $0x1c0] sm:$0xf] }
  0x5c   :  { %717 = vmatpush.bf16.msrb.mxu0 %v6648_v61  ;;  %v9714_v61 = vld [vmem:[#allocation6 + $0x8c] sm:$0xf]  ;;  %741 = vmatpush.bf16.msrb.mxu2 %v6684_v1  ;;  %v286_v60 = vunpack.c.l.bf16 %v280_v52  ;;  %v9821_v10 = vld [vmem:[#allocation9 + $0x1dc] sm:$0xf0] }
  0x5d   :  { %730 = vmatpush.bf16.msrb.mxu1 %v6776_v62  ;;  %v6685_v62 = vld [vmem:[#allocation6 + $0x98] sm:$0xf0]  ;;  %v7347_v11 = vld [vmem:[#allocation9 + $0x3c0] sm:$0xf]  ;;  %v7092_v21 = vor.u32 %v9821_v10, %v7091_v9 }
  0x5e   :  { %v7059_v23 = vld [vmem:[#allocation9 + $0x180] sm:$0xf] }
  0x5f   :  { %755 = vmatpush.bf16.msrb.mxu3 %v6796_v12  ;;  %v9885_v12 = vld [vmem:[#allocation9 + $0x3dc] sm:$0xf0] }
  0x60   :  { %718 = vmatpush.bf16.msrb.mxu0 %v6632_v3  ;;  %v6688_v3 = vor.u32 %v9714_v61, %v6685_v62  ;;  %742 = vmatpush.bf16.msrb.mxu2 %v6668_v8  ;;  %v287_v61 = vunpack.c.l.bf16 %v283_v53  ;;  %v7348_v22 = vor.u32 %v9885_v12, %v7347_v11  ;;  %v9877_v26 = vld [vmem:[#allocation9 + $0x39c] sm:$0xf0] }
  0x61   :  { %731 = vmatpush.bf16.msrb.mxu1 %v6760_v4  ;;  %v6816_v4 = vor.u32 %v9746_v63, %v6813_v0  ;;  %v7027_v35 = vld [vmem:[#allocation9 + $0x140] sm:$0xf] }
  0x62   :  { %v9805_v36 = vld [vmem:[#allocation9 + $0x15c] sm:$0xf0] }
  0x63   :  { %756 = vmatpush.bf16.msrb.mxu3 %v6780_v25  ;;  %v7315_v25 = vld [vmem:[#allocation9 + $0x380] sm:$0xf]  ;;  %v7028_v47 = vor.u32 %v9805_v36, %v7027_v35  ;;  %v9873_v35 = vld [vmem:[#allocation9 + $0x384] sm:$0xf] }
  0x64   :  { %719 = vmatpush.bf16.msrb.mxu0 %v6616_v15  ;;  %v6797_v15 = vld [vmem:[#allocation6 + $0x178] sm:$0xf0]  ;;  %v7316_v34 = vor.u32 %v9877_v26, %v7315_v25  ;;  %v7283_v37 = vld [vmem:[#allocation9 + $0x340] sm:$0xf]  ;;  %v9817_v26 = vld [vmem:[#allocation9 + $0x1c4] sm:$0xf] }
  0x65   :  { %732 = vmatpush.bf16.msrb.mxu1 %v6744_v18  ;;  %v6800_v17 = vor.u32 %v9742_v14, %v6797_v15  ;;  %v9708_v18 = vld [vmem:[#allocation6 + $0x54] sm:$0xf0]  ;;  %v9869_v38 = vld [vmem:[#allocation9 + $0x35c] sm:$0xf0] }
  0x66   :  { %v6652_v24 = vor.u32 %v9708_v18, %v6651_v16  ;;  %v9949_v16 = vld [vmem:[#allocation9 + $0x5dc] sm:$0xf0] }
  0x67   :  { %v10013_v18 = vld [vmem:[#allocation9 + $0x7dc] sm:$0xf0] }
  0x68   :  { %764 = vmatpush.bf16.msra.mxu0 %v6736_v27  ;;  %v6635_v27 = vld [vmem:[#allocation6 + $0x28] sm:$0xf]  ;;  %743 = vmatpush.bf16.msrb.mxu2 %v6652_v24  ;;  %v9813_v24 = vld [vmem:[#allocation9 + $0x19c] sm:$0xf0] }
  0x69   :  { %777 = vmatpush.bf16.msra.mxu1 %v6864_v31  ;;  %v9736_v31 = vld [vmem:[#allocation6 + $0x134] sm:$0xf0]  ;;  %v6636_v39 = vor.u32 %v9704_v29, %v6635_v27  ;;  %v7571_v29 = vld [vmem:[#allocation9 + $0x580] sm:$0xf]  ;;  %v7060_v33 = vor.u32 %v9813_v24, %v7059_v23 }
  0x6a   :  { %v9997_v46 = vld [vmem:[#allocation9 + $0x75c] sm:$0xf0] }
  0x6b   :  { %v7251_v40 = vld [vmem:[#allocation9 + $0x300] sm:$0xf] }
  0x6c   :  { %765 = vmatpush.bf16.msra.mxu0 %v6720_v42  ;;  %v6764_v42 = vor.u32 %v9736_v31, %v6763_v30  ;;  %744 = vmatpush.bf16.msrb.mxu2 %v6636_v39  ;;  %v9941_v30 = vld [vmem:[#allocation9 + $0x59c] sm:$0xf0] }
  0x6d   :  { %778 = vmatpush.bf16.msra.mxu1 %v6848_v43  ;;  %v6619_v43 = vld [vmem:[#allocation6 + $0x8] sm:$0xf]  ;;  %v7827_v31 = vld [vmem:[#allocation9 + $0x780] sm:$0xf]  ;;  %v7572_v39 = vor.u32 %v9941_v30, %v7571_v29 }
  0x6e   :  { %757 = vmatpush.bf16.msrb.mxu3 %v6764_v42  ;;  %v6620_v41 = vor.u32 %v9700_v45, %v6619_v43  ;;  %v7539_v43 = vld [vmem:[#allocation9 + $0x540] sm:$0xf] }
  0x6f   :  { %v7795_v45 = vld [vmem:[#allocation9 + $0x740] sm:$0xf] }
  0x70   :  { %766 = vmatpush.bf16.msra.mxu0 %v6704_v55  ;;  %v6624_v55 = vor.u32 %v9698_v49, %v6621_v50  ;;  %745 = vmatpush.bf16.msrb.mxu2 %v6620_v41  ;;  %v6995_v49 = vld [vmem:[#allocation9 + $0x100] sm:$0xf]  ;;  %v7796_v53 = vor.u32 %v9997_v46, %v7795_v45  ;;  %v9801_v46 = vld [vmem:[#allocation9 + $0x144] sm:$0xf] }
  0x71   :  { %779 = vmatpush.bf16.msra.mxu1 %v6832_v58  ;;  %v9797_v50 = vld [vmem:[#allocation9 + $0x11c] sm:$0xf0] }
  0x72   :  { %758 = vmatpush.bf16.msrb.mxu3 %v6748_v54  ;;  %v9861_v51 = vld [vmem:[#allocation9 + $0x31c] sm:$0xf0] }
  0x73   :  { %v7507_v41 = vld [vmem:[#allocation9 + $0x500] sm:$0xf] }
  0x74   :  { %767 = vmatpush.bf16.msra.mxu0 %v6688_v3  ;;  %v9925_v54 = vld [vmem:[#allocation9 + $0x51c] sm:$0xf0] }
  0x75   :  { %780 = vmatpush.bf16.msra.mxu1 %v6816_v4  ;;  %v7187_v9 = vld [vmem:[#allocation9 + $0x280] sm:$0xf] }
  0x76   :  { %v9845_v10 = vld [vmem:[#allocation9 + $0x29c] sm:$0xf0] }
  0x77   :  { %v6867_v23 = vld [vmem:[#allocation9] sm:$0xf] }
  0x78   :  { %768 = vmatpush.bf16.msra.mxu0 %v6672_v13  ;;  %v7603_v13 = vld [vmem:[#allocation9 + $0x5c0] sm:$0xf] }
  0x79   :  { %781 = vmatpush.bf16.msra.mxu1 %v6800_v17  ;;  %v7859_v17 = vld [vmem:[#allocation9 + $0x7c0] sm:$0xf]  ;;  %v7604_v27 = vor.u32 %v9949_v16, %v7603_v13 }
  0x7a   :  { %v9773_v16 = vld [vmem:[#allocation9 + $0x5c] sm:$0xf0] }
  0x7b   :  { %v9765_v24 = vld [vmem:[#allocation9 + $0x1c] sm:$0xf0] }
  0x7c   :  { %769 = vmatpush.bf16.msra.mxu0 %v6656_v28  ;;  %v7860_v28 = vor.u32 %v10013_v18, %v7859_v17  ;;  %v7155_v17 = vld [vmem:[#allocation9 + $0x240] sm:$0xf]  ;;  %v6868_v29 = vor.u32 %v9765_v24, %v6867_v23  ;;  %v7189_v23 = vld [vmem:[#allocation9 + $0x2a0] sm:$0xf0] }
  0x7d   :  { %782 = vmatpush.bf16.msra.mxu1 %v6784_v32  ;;  %v10005_v32 = vld [vmem:[#allocation9 + $0x79c] sm:$0xf0]  ;;  %v9937_v24 = vld [vmem:[#allocation9 + $0x584] sm:$0xf] }
  0x7e   :  { %v7828_v42 = vor.u32 %v10005_v32, %v7827_v31  ;;  %v9837_v18 = vld [vmem:[#allocation9 + $0x25c] sm:$0xf0] }
  0x7f   :  { %v7123_v25 = vld [vmem:[#allocation9 + $0x200] sm:$0xf] }
  0x80   :  { %770 = vmatpush.bf16.msra.mxu0 %v6640_v44  ;;  %v9933_v44 = vld [vmem:[#allocation9 + $0x55c] sm:$0xf0] }
  0x81   :  { %783 = vmatpush.bf16.msra.mxu1 %v6768_v48  ;;  %v7284_v48 = vor.u32 %v9869_v38, %v7283_v37  ;;  %v7540_v52 = vor.u32 %v9933_v44, %v7539_v43  ;;  %v7317_v37 = vld [vmem:[#allocation9 + $0x3a0] sm:$0xf0]  ;;  %v7699_v43 = vld [vmem:[#allocation9 + $0x680] sm:$0xf] }
  0x82   :  { %v7320_v38 = vor.u32 %v9873_v35, %v7317_v37  ;;  %v9973_v45 = vld [vmem:[#allocation9 + $0x69c] sm:$0xf0]  ;;  %v7541_v35 = vld [vmem:[#allocation9 + $0x560] sm:$0xf0] }
  0x84   :  { %771 = vmatpush.bf16.msra.mxu0 %v6624_v55  ;;  %v7763_v55 = vld [vmem:[#allocation9 + $0x700] sm:$0xf] }
  0x85   :  { %784 = vmatpush.bf16.msra.mxu1 %v6752_v57  ;;  %v6996_v57 = vor.u32 %v9797_v50, %v6995_v49  ;;  %v9865_v50 = vld [vmem:[#allocation9 + $0x344] sm:$0xf] }
  0xc4   :  { %v255_v56 = vpop.f32.mrf.mxu0 }
  0xc5   :  { %v268_v58 = vpop.f32.mrf.mxu1 }
  0xc6   :  { %v272_v59 = vpack.c.bf16 %v268_v58, %v255_v56  ;;  %v9989_v56 = vld [vmem:[#allocation9 + $0x71c] sm:$0xf0]  ;;  %v7252_v58 = vor.u32 %v9861_v51, %v7251_v40  ;;  %v7285_v40 = vld [vmem:[#allocation9 + $0x360] sm:$0xf0] }
  0xc7   :  { %v7288_v51 = vor.u32 %v9865_v50, %v7285_v40  ;;  %v7509_v50 = vld [vmem:[#allocation9 + $0x520] sm:$0xf0] }
  0xc8   :  { %v284_v62 = vunpack.c.l.bf16 %v272_v59  ;;  %v285_v63 = vunpack.c.h.bf16 %v272_v59  ;;  %v6963_v59 = vld [vmem:[#allocation9 + $0xc0] sm:$0xf]  ;;  %v9985_v40 = vld [vmem:[#allocation9 + $0x704] sm:$0xf] }
  0xca   :  { %v288_v0 = vadd.f32 %v286_v60, %v284_v62  ;;  %v289_v1 = vadd.f32 %v287_v61, %v285_v63  ;;  %v9789_v60 = vld [vmem:[#allocation9 + $0xdc] sm:$0xf0]  ;;  %v7508_v63 = vor.u32 %v9925_v54, %v7507_v41 }
  0xcb   :  { %v7219_v61 = vld [vmem:[#allocation9 + $0x2c0] sm:$0xf] }
  0xcc   :  { %v290_v2 = vpack.c.bf16 %v289_v1, %v288_v0  ;;  %v257_v3 = vpop.f32.mrf.mxu0  ;;  %v9853_v62 = vld [vmem:[#allocation9 + $0x2dc] sm:$0xf0]  ;;  %v7764_v0 = vor.u32 %v9989_v56, %v7763_v55  ;;  %v9793_v56 = vld [vmem:[#allocation9 + $0x104] sm:$0xf] }
  0xcd   :  { %v270_v4 = vpop.f32.mrf.mxu1  ;;  %v7475_v1 = vld [vmem:[#allocation9 + $0x4c0] sm:$0xf] }
  0xce   :  { %v291_v5 = vunpack.c.l.bf16 %v290_v2  ;;  %v292_v6 = vunpack.c.h.bf16 %v290_v2  ;;  %v9917_v2 = vld [vmem:[#allocation9 + $0x4dc] sm:$0xf0] }
  0xcf   :  { %v7731_v3 = vld [vmem:[#allocation9 + $0x6c0] sm:$0xf]  ;;  %v7476_v11 = vor.u32 %v9917_v2, %v7475_v1 }
  0xd0   :  { %v293_v7 = vmul.f32 0.20019531, %v291_v5  ;;  %v294_v8 = vmul.f32 0.20019531, %v292_v6  ;;  %v9981_v4 = vld [vmem:[#allocation9 + $0x6dc] sm:$0xf0] }
  0xd1   :  { %v7732_v12 = vor.u32 %v9981_v4, %v7731_v3  ;;  %v7667_v41 = vld [vmem:[#allocation9 + $0x640] sm:$0xf]  ;;  %v9785_v4 = vld [vmem:[#allocation9 + $0xc4] sm:$0xf] }
  0xd2   :  { %v298_v14 = vmax.f32 %v291_v5, %v293_v7  ;;  %v299_v15 = vmax.f32 %v292_v6, %v294_v8  ;;  %v6964_v5 = vor.u32 %v9789_v60, %v6963_v59  ;;  %v7220_v6 = vor.u32 %v9853_v62, %v7219_v61  ;;  %v6931_v7 = vld [vmem:[#allocation9 + $0x80] sm:$0xf]  ;;  %v9857_v60 = vld [vmem:[#allocation9 + $0x304] sm:$0xf] }
  0xd3   :  { %v9781_v8 = vld [vmem:[#allocation9 + $0x9c] sm:$0xf0]  ;;  %v7253_v61 = vld [vmem:[#allocation9 + $0x320] sm:$0xf0] }
  0xd4   :  { %v10798_v19 = vpack.c.bf16 %v298_v14, %v298_v14  ;;  %v10800_v20 = vpack.c.bf16 %v299_v15, %v299_v15  ;;  %v6932_v13 = vor.u32 %v9781_v8, %v6931_v7  ;;  %v7188_v14 = vor.u32 %v9845_v10, %v7187_v9  ;;  %v6899_v15 = vld [vmem:[#allocation9 + $0x40] sm:$0xf]  ;;  %v9849_v7 = vld [vmem:[#allocation9 + $0x2c4] sm:$0xf] }
  0xd5   :  { %v9965_v55 = vld [vmem:[#allocation9 + $0x65c] sm:$0xf0]  ;;  %v7256_v62 = vor.u32 %v9857_v60, %v7253_v61  ;;  %v7221_v8 = vld [vmem:[#allocation9 + $0x2e0] sm:$0xf0] }
  0xd6   :  { %694 = vmatmul.bf16.vlgmr.msra.gmra.mxu2 %v10798_v19  ;;  %707 = vmatmul.bf16.vlgmr.msra.gmra.mxu3 %v10800_v20  ;;  %v7635_v1 = vld [vmem:[#allocation9 + $0x600] sm:$0xf]  ;;  %v7224_v10 = vor.u32 %v9849_v7, %v7221_v8  ;;  %v9905_v61 = vld [vmem:[#allocation9 + $0x484] sm:$0xf] }
  0xd7   :  { %720 = vmatmul.bf16.vlgmr.msrb.gmra.mxu0 %v10798_v19  ;;  %733 = vmatmul.bf16.vlgmr.msrb.gmra.mxu1 %v10800_v20  ;;  %v9957_v3 = vld [vmem:[#allocation9 + $0x61c] sm:$0xf0]  ;;  %v9897_v7 = vld [vmem:[#allocation9 + $0x444] sm:$0xf] }
  0xd8   :  { %2383 = vmatpush.bf16.msra.mxu2 %v7092_v21  ;;  %2396 = vmatpush.bf16.msra.mxu3 %v7348_v22  ;;  %v6900_v21 = vor.u32 %v9773_v16, %v6899_v15  ;;  %v7156_v22 = vor.u32 %v9837_v18, %v7155_v17  ;;  %v7861_v15 = vld [vmem:[#allocation9 + $0x7e0] sm:$0xf0] }
  0xd9   :  { %2409 = vmatpush.bf16.msrb.mxu0 %v7604_v27  ;;  %2422 = vmatpush.bf16.msrb.mxu1 %v7860_v28  ;;  %v9881_v27 = vld [vmem:[#allocation9 + $0x3c4] sm:$0xf] }
  0xda   :  { %v7349_v28 = vld [vmem:[#allocation9 + $0x3e0] sm:$0xf0] }
  0xdb   :  { %v7352_v32 = vor.u32 %v9881_v27, %v7349_v28  ;;  %v9777_v17 = vld [vmem:[#allocation9 + $0x84] sm:$0xf] }
  0xdc   :  { %2384 = vmatpush.bf16.msra.mxu2 %v7060_v33  ;;  %2397 = vmatpush.bf16.msra.mxu3 %v7316_v34  ;;  %v9809_v33 = vld [vmem:[#allocation9 + $0x184] sm:$0xf] }
  0xdd   :  { %2410 = vmatpush.bf16.msrb.mxu0 %v7572_v39  ;;  %2423 = vmatpush.bf16.msrb.mxu1 %v7828_v42  ;;  %v7061_v34 = vld [vmem:[#allocation9 + $0x1a0] sm:$0xf0]  ;;  %v7443_v39 = vld [vmem:[#allocation9 + $0x480] sm:$0xf] }
  0xde   :  { %v7064_v36 = vor.u32 %v9809_v33, %v7061_v34  ;;  %v9909_v42 = vld [vmem:[#allocation9 + $0x49c] sm:$0xf0]  ;;  %v6933_v18 = vld [vmem:[#allocation9 + $0xa0] sm:$0xf0] }
  0xdf   :  { %v7444_v44 = vor.u32 %v9909_v42, %v7443_v39  ;;  %v7829_v27 = vld [vmem:[#allocation9 + $0x7a0] sm:$0xf0] }
  0xe0   :  { %2385 = vmatpush.bf16.msra.mxu2 %v7028_v47  ;;  %2398 = vmatpush.bf16.msra.mxu3 %v7284_v48  ;;  %v7029_v47 = vld [vmem:[#allocation9 + $0x160] sm:$0xf0]  ;;  %v7700_v48 = vor.u32 %v9973_v45, %v7699_v43 }
  0xe1   :  { %2411 = vmatpush.bf16.msrb.mxu0 %v7540_v52  ;;  %2424 = vmatpush.bf16.msrb.mxu1 %v7796_v53  ;;  %v7032_v49 = vor.u32 %v9801_v46, %v7029_v47  ;;  %v7411_v52 = vld [vmem:[#allocation9 + $0x440] sm:$0xf]  ;;  %v7157_v33 = vld [vmem:[#allocation9 + $0x260] sm:$0xf0] }
  0xe2   :  { %v9901_v53 = vld [vmem:[#allocation9 + $0x45c] sm:$0xf0]  ;;  %v9929_v34 = vld [vmem:[#allocation9 + $0x544] sm:$0xf] }
  0xe3   :  { %v7412_v54 = vor.u32 %v9901_v53, %v7411_v52  ;;  %v7544_v37 = vor.u32 %v9929_v34, %v7541_v35  ;;  %v7797_v39 = vld [vmem:[#allocation9 + $0x760] sm:$0xf0] }
  0xe4   :  { %2386 = vmatpush.bf16.msra.mxu2 %v6996_v57  ;;  %2399 = vmatpush.bf16.msra.mxu3 %v7252_v58  ;;  %v6997_v57 = vld [vmem:[#allocation9 + $0x120] sm:$0xf0]  ;;  %v7668_v58 = vor.u32 %v9965_v55, %v7667_v41 }
  0xe5   :  { %2412 = vmatpush.bf16.msrb.mxu0 %v7508_v63  ;;  %2425 = vmatpush.bf16.msrb.mxu1 %v7764_v0  ;;  %v7000_v59 = vor.u32 %v9793_v56, %v6997_v57  ;;  %v7379_v63 = vld [vmem:[#allocation9 + $0x400] sm:$0xf]  ;;  %v9761_v43 = vld [vmem:[#allocation9 + $0x4] sm:$0xf] }
  0xe6   :  { %746 = vmatmul.bf16.vlgmr.msrb.gmra.mxu2 %v10798_v19  ;;  %759 = vmatmul.bf16.vlgmr.msrb.gmra.mxu3 %v10800_v20  ;;  %v9893_v0 = vld [vmem:[#allocation9 + $0x41c] sm:$0xf0]  ;;  %v9825_v45 = vld [vmem:[#allocation9 + $0x204] sm:$0xf] }
  0xe7   :  { %772 = vmatmul.bf16.vlgmr.msra.gmra.mxu0 %v10798_v19  ;;  %785 = vmatmul.bf16.vlgmr.msra.gmra.mxu1 %v10800_v20  ;;  %v9829_v19 = vld [vmem:[#allocation9 + $0x21c] sm:$0xf0]  ;;  %v7093_v20 = vld [vmem:[#allocation9 + $0x1e0] sm:$0xf0]  ;;  %v7380_v2 = vor.u32 %v9893_v0, %v7379_v63 }
  0xe8   :  { %2387 = vmatpush.bf16.msra.mxu2 %v6964_v5  ;;  %2400 = vmatpush.bf16.msra.mxu3 %v7220_v6  ;;  %v7124_v30 = vor.u32 %v9829_v19, %v7123_v25  ;;  %v7096_v31 = vor.u32 %v9817_v26, %v7093_v20  ;;  %v7636_v5 = vor.u32 %v9957_v3, %v7635_v1  ;;  %v6965_v6 = vld [vmem:[#allocation9 + $0xe0] sm:$0xf0] }
  0xe9   :  { %2413 = vmatpush.bf16.msrb.mxu0 %v7476_v11  ;;  %2426 = vmatpush.bf16.msrb.mxu1 %v7732_v12  ;;  %v6968_v9 = vor.u32 %v9785_v4, %v6965_v6  ;;  %v9945_v11 = vld [vmem:[#allocation9 + $0x5c4] sm:$0xf] }
  0xea   :  { %v7605_v12 = vld [vmem:[#allocation9 + $0x5e0] sm:$0xf0] }
  0xeb   :  { %v7573_v25 = vld [vmem:[#allocation9 + $0x5a0] sm:$0xf0] }
  0xec   :  { %2388 = vmatpush.bf16.msra.mxu2 %v6932_v13  ;;  %2401 = vmatpush.bf16.msra.mxu3 %v7188_v14  ;;  %v10009_v13 = vld [vmem:[#allocation9 + $0x7c4] sm:$0xf]  ;;  %v7608_v14 = vor.u32 %v9945_v11, %v7605_v12  ;;  %v7576_v26 = vor.u32 %v9937_v24, %v7573_v25  ;;  %v798_v25 = vld [vmem:[#allocation1 + $0x1b] sm:$0xff] }
  0xed   :  { %2414 = vmatpush.bf16.msrb.mxu0 %v7444_v44  ;;  %2427 = vmatpush.bf16.msrb.mxu1 %v7700_v48  ;;  %v7864_v16 = vor.u32 %v10009_v13, %v7861_v15  ;;  %v10001_v20 = vld [vmem:[#allocation9 + $0x784] sm:$0xf] }
  0xee   :  { %v7832_v28 = vor.u32 %v10001_v20, %v7829_v27  ;;  %v6869_v44 = vld [vmem:[#allocation9 + $0x20] sm:$0xf0] }
  0xef   :  { %v6872_v46 = vor.u32 %v9761_v43, %v6869_v44  ;;  %v7125_v47 = vld [vmem:[#allocation9 + $0x220] sm:$0xf0] }
  0xf0   :  { %2389 = vmatpush.bf16.msra.mxu2 %v6900_v21  ;;  %2402 = vmatpush.bf16.msra.mxu3 %v7156_v22  ;;  %v9841_v21 = vld [vmem:[#allocation9 + $0x284] sm:$0xf]  ;;  %v6936_v22 = vor.u32 %v9777_v17, %v6933_v18  ;;  %v7128_v48 = vor.u32 %v9825_v45, %v7125_v47  ;;  %v808_v47 = vpack.i.b16 %v798_v25, %v798_v25  ;;  %v7003_v25 = vld [vmem:[#allocation9 + $0x108] sm:$0xf] }
  0xf1   :  { %2415 = vmatpush.bf16.msrb.mxu0 %v7412_v54  ;;  %2428 = vmatpush.bf16.msrb.mxu1 %v7668_v58  ;;  %v7192_v19 = vor.u32 %v9841_v21, %v7189_v23  ;;  %v7765_v52 = vld [vmem:[#allocation9 + $0x720] sm:$0xf0]  ;;  %v795_v58 = vld [vmem:[#allocation1] sm:$0xff] }
  0xf2   :  { %v7768_v53 = vor.u32 %v9985_v40, %v7765_v52  ;;  %v9913_v41 = vld [vmem:[#allocation9 + $0x4c4] sm:$0xf]  ;;  %v9886_v52 = vld [vmem:[#allocation9 + $0x3e4] sm:$0xf0] }
  0xf3   :  { %v7477_v54 = vld [vmem:[#allocation9 + $0x4e0] sm:$0xf0] }
  0xf4   :  { %2390 = vmatpush.bf16.msra.mxu2 %v6868_v29  ;;  %2403 = vmatpush.bf16.msra.mxu3 %v7124_v30  ;;  %v9769_v29 = vld [vmem:[#allocation9 + $0x44] sm:$0xf]  ;;  %v7480_v56 = vor.u32 %v9913_v41, %v7477_v54 }
  0xf5   :  { %2416 = vmatpush.bf16.msrb.mxu0 %v7380_v2  ;;  %2429 = vmatpush.bf16.msrb.mxu1 %v7636_v5  ;;  %v6901_v30 = vld [vmem:[#allocation9 + $0x60] sm:$0xf0]  ;;  %v799_v5 = vpack.i.b16 %v795_v58, %v795_v58 }
  0xf6   :  { %v9977_v55 = vld [vmem:[#allocation9 + $0x6c4] sm:$0xf] }
  0xf7   :  { %v7733_v57 = vld [vmem:[#allocation9 + $0x6e0] sm:$0xf0]  ;;  %v801_v13 = vperm.slane %v799_v5, 0 }
  0xf8   :  { %2435 = vmatpush.bf16.msrb.mxu2 %v7096_v31  ;;  %2448 = vmatpush.bf16.msrb.mxu3 %v7352_v32  ;;  %v9833_v31 = vld [vmem:[#allocation9 + $0x244] sm:$0xf]  ;;  %v6904_v32 = vor.u32 %v9769_v29, %v6901_v30  ;;  %v7736_v60 = vor.u32 %v9977_v55, %v7733_v57  ;;  %v810_v55 = vperm.slane %v808_v47, 0 }
  0xf9   :  { %2461 = vmatpush.bf16.msra.mxu0 %v7608_v14  ;;  %2474 = vmatpush.bf16.msra.mxu1 %v7864_v16  ;;  %v9969_v63 = vld [vmem:[#allocation9 + $0x684] sm:$0xf]  ;;  %v815_v29 = vunpack.c.l.bf16 %v801_v13 }
  0xfa   :  { %v7701_v1 = vld [vmem:[#allocation9 + $0x6a0] sm:$0xf0] }
  0xfb   :  { %v7704_v2 = vor.u32 %v9969_v63, %v7701_v1  ;;  %v7413_v8 = vld [vmem:[#allocation9 + $0x460] sm:$0xf0]  ;;  %v9814_v1 = vld [vmem:[#allocation9 + $0x1a4] sm:$0xf0] }
  0xfc   :  { %2436 = vmatpush.bf16.msrb.mxu2 %v7064_v36  ;;  %2449 = vmatpush.bf16.msrb.mxu3 %v7320_v38  ;;  %v7160_v36 = vor.u32 %v9833_v31, %v7157_v33  ;;  %v9993_v38 = vld [vmem:[#allocation9 + $0x744] sm:$0xf] }
  0xfd   :  { %2462 = vmatpush.bf16.msra.mxu0 %v7576_v26  ;;  %2475 = vmatpush.bf16.msra.mxu1 %v7832_v28  ;;  %v7800_v42 = vor.u32 %v9993_v38, %v7797_v39  ;;  %v7669_v11 = vld [vmem:[#allocation9 + $0x660] sm:$0xf0] }
  0xfe   :  { %v797_v15 = vld [vmem:[#allocation1 + $0x12] sm:$0xff] }
  0xff   :  { %v9889_v18 = vld [vmem:[#allocation9 + $0x404] sm:$0xf] }
 0x100   :  { %2437 = vmatpush.bf16.msrb.mxu2 %v7032_v49  ;;  %2450 = vmatpush.bf16.msrb.mxu3 %v7288_v51  ;;  %v9921_v49 = vld [vmem:[#allocation9 + $0x504] sm:$0xf] }
 0x101   :  { %2463 = vmatpush.bf16.msra.mxu0 %v7544_v37  ;;  %2476 = vmatpush.bf16.msra.mxu1 %v7800_v42  ;;  %v7512_v51 = vor.u32 %v9921_v49, %v7509_v50  ;;  %v7381_v21 = vld [vmem:[#allocation9 + $0x420] sm:$0xf0]  ;;  %v9822_v49 = vld [vmem:[#allocation9 + $0x1e4] sm:$0xf0] }
 0x102   :  { %v7384_v26 = vor.u32 %v9889_v18, %v7381_v21  ;;  %v7637_v20 = vld [vmem:[#allocation9 + $0x620] sm:$0xf0] }
 0x104   :  { %2438 = vmatpush.bf16.msrb.mxu2 %v7000_v59  ;;  %2451 = vmatpush.bf16.msrb.mxu3 %v7256_v62  ;;  %v796_v59 = vld [vmem:[#allocation1 + $0x9] sm:$0xff]  ;;  %v7445_v62 = vld [vmem:[#allocation9 + $0x4a0] sm:$0xf0] }
 0x105   :  { %2464 = vmatpush.bf16.msra.mxu0 %v7512_v51  ;;  %2477 = vmatpush.bf16.msra.mxu1 %v7768_v53  ;;  %v7448_v0 = vor.u32 %v9905_v61, %v7445_v62  ;;  %v802_v6 = vpack.i.b16 %v796_v59, %v796_v59  ;;  %v7355_v51 = vld [vmem:[#allocation9 + $0x3c8] sm:$0xf] }
 0x106   :  { %v7356_v59 = vor.u32 %v9886_v52, %v7355_v51 }
 0x107   :  { %v804_v14 = vperm.slane %v802_v6, 0  ;;  %v818_v6 = vunpack.c.l.bf16 %v810_v55  ;;  %v9942_v55 = vld [vmem:[#allocation9 + $0x5a4] sm:$0xf0] }
 0x108   :  { %2439 = vmatpush.bf16.msrb.mxu2 %v6968_v9  ;;  %2452 = vmatpush.bf16.msrb.mxu3 %v7224_v10  ;;  %v9961_v9 = vld [vmem:[#allocation9 + $0x644] sm:$0xf]  ;;  %v7416_v10 = vor.u32 %v9897_v7, %v7413_v8 }
 0x109   :  { %2465 = vmatpush.bf16.msra.mxu0 %v7480_v56  ;;  %2478 = vmatpush.bf16.msra.mxu1 %v7736_v60  ;;  %v7672_v12 = vor.u32 %v9961_v9, %v7669_v11  ;;  %v816_v30 = vunpack.c.l.bf16 %v804_v14  ;;  %v7067_v60 = vld [vmem:[#allocation9 + $0x188] sm:$0xf] }
 0x10a   :  { %v7068_v9 = vor.u32 %v9814_v1, %v7067_v60  ;;  %v7035_v11 = vld [vmem:[#allocation9 + $0x148] sm:$0xf] }
 0x10b   :  { %v9806_v14 = vld [vmem:[#allocation9 + $0x164] sm:$0xf0] }
 0x10c   :  { %2440 = vmatpush.bf16.msrb.mxu2 %v6936_v22  ;;  %2453 = vmatpush.bf16.msrb.mxu3 %v7192_v19  ;;  %v9953_v22 = vld [vmem:[#allocation9 + $0x604] sm:$0xf]  ;;  %v6907_v60 = vld [vmem:[#allocation9 + $0x48] sm:$0xf] }
 0x10d   :  { %2466 = vmatpush.bf16.msra.mxu0 %v7448_v0  ;;  %2479 = vmatpush.bf16.msra.mxu1 %v7704_v2  ;;  %v2803_v19 = vld [vmem:[#allocation10] sm:$0xff]  ;;  %v7640_v27 = vor.u32 %v9953_v22, %v7637_v20  ;;  %v7323_v2 = vld [vmem:[#allocation9 + $0x388] sm:$0xf] }
 0x10e   :  { %2805 = vst [vmem:[#allocation1] ss:$9 sm:$0xff] %v2803_v19  ;;  %v7259_v20 = vld [vmem:[#allocation9 + $0x308] sm:$0xf] }
 0x110   :  { %2441 = vmatpush.bf16.msrb.mxu2 %v6904_v32  ;;  %2454 = vmatpush.bf16.msrb.mxu3 %v7160_v36 }
 0x111   :  { %2467 = vmatpush.bf16.msra.mxu0 %v7416_v10  ;;  %2480 = vmatpush.bf16.msra.mxu1 %v7672_v12 }
 0x114   :  { %2442 = vmatpush.bf16.msrb.mxu2 %v6872_v46  ;;  %2455 = vmatpush.bf16.msrb.mxu3 %v7128_v48  ;;  %v805_v46 = vpack.i.b16 %v797_v15, %v797_v15  ;;  %v7099_v48 = vld [vmem:[#allocation9 + $0x1c8] sm:$0xf] }
 0x115   :  { %2468 = vmatpush.bf16.msra.mxu0 %v7384_v26  ;;  %2481 = vmatpush.bf16.msra.mxu1 %v7640_v27  ;;  %v7100_v58 = vor.u32 %v9822_v49, %v7099_v48  ;;  %v7291_v15 = vld [vmem:[#allocation9 + $0x348] sm:$0xf] }
 0x116   :  { %v807_v54 = vperm.slane %v805_v46, 0  ;;  %v9798_v26 = vld [vmem:[#allocation9 + $0x124] sm:$0xf0] }
 0x117   :  { %v9862_v27 = vld [vmem:[#allocation9 + $0x324] sm:$0xf0] }
 0x118   :  { %v817_v5 = vunpack.c.l.bf16 %v807_v54  ;;  %v7579_v54 = vld [vmem:[#allocation9 + $0x588] sm:$0xf] }
 0x154   :  { %v721_v3 = vpop.f32.mrf.mxu0  ;;  %v734_v4 = vpop.f32.mrf.mxu1 }
 0x155   :  { %v735_v23 = vadd.f32 %v734_v4, %v721_v3  ;;  %v9878_v3 = vld [vmem:[#allocation9 + $0x3a4] sm:$0xf0] }
 0x156   :  { %v7324_v10 = vor.u32 %v9878_v3, %v7323_v2  ;;  %v7163_v2 = vld [vmem:[#allocation9 + $0x248] sm:$0xf] }
 0x157   :  { %v9838_v3 = vld [vmem:[#allocation9 + $0x264] sm:$0xf0] }
 0x159   :  { %v695_v16 = vpop.f32.mrf.mxu2  ;;  %v708_v17 = vpop.f32.mrf.mxu3 }
 0x15a   :  { %v709_v24 = vadd.f32 %v708_v17, %v695_v16  ;;  %v9870_v16 = vld [vmem:[#allocation9 + $0x364] sm:$0xf0] }
 0x15c   :  { %v790_v28 = vpack.c.bf16 %v735_v23, %v709_v24  ;;  %v723_v31 = vpop.f32.mrf.mxu0  ;;  %v736_v32 = vpop.f32.mrf.mxu1  ;;  %v7036_v23 = vor.u32 %v9806_v14, %v7035_v11  ;;  %v7292_v24 = vor.u32 %v9870_v16, %v7291_v15  ;;  %v9766_v11 = vld [vmem:[#allocation9 + $0x24] sm:$0xf0] }
 0x15d   :  { %v7260_v31 = vor.u32 %v9862_v27, %v7259_v20  ;;  %v9830_v15 = vld [vmem:[#allocation9 + $0x224] sm:$0xf0] }
 0x15e   :  { %v811_v33 = vunpack.c.l.bf16 %v790_v28  ;;  %v812_v34 = vunpack.c.h.bf16 %v790_v28  ;;  %v7515_v16 = vld [vmem:[#allocation9 + $0x508] sm:$0xf] }
 0x160   :  { %v819_v35 = vadd.f32 %v815_v29, %v811_v33  ;;  %v820_v36 = vadd.f32 %v816_v30, %v812_v34  ;;  %v7004_v30 = vor.u32 %v9798_v26, %v7003_v25  ;;  %v6971_v34 = vld [vmem:[#allocation9 + $0xc8] sm:$0xf]  ;;  %v7357_v25 = vld [vmem:[#allocation9 + $0x3e8] sm:$0xf0] }
 0x161   :  { %v697_v37 = vpop.f32.mrf.mxu2  ;;  %v710_v38 = vpop.f32.mrf.mxu3 }
 0x162   :  { %v823_v39 = vpack.c.bf16 %v820_v36, %v819_v35  ;;  %v9790_v35 = vld [vmem:[#allocation9 + $0xe4] sm:$0xf0] }
 0x163   :  { %v7227_v36 = vld [vmem:[#allocation9 + $0x2c8] sm:$0xf]  ;;  %v6972_v48 = vor.u32 %v9790_v35, %v6971_v34  ;;  %v9810_v34 = vld [vmem:[#allocation9 + $0x18c] sm:$0xf] }
 0x164   :  { %v825_v42 = vunpack.c.l.bf16 %v823_v39  ;;  %v826_v43 = vunpack.c.h.bf16 %v823_v39  ;;  %v773_v44 = vpop.f32.mrf.mxu0  ;;  %v786_v45 = vpop.f32.mrf.mxu1  ;;  %v9854_v37 = vld [vmem:[#allocation9 + $0x2e4] sm:$0xf0]  ;;  %v7069_v35 = vld [vmem:[#allocation9 + $0x1a8] sm:$0xf0] }
 0x165   :  { %v787_v63 = vadd.f32 %v786_v45, %v773_v44  ;;  %v7611_v38 = vld [vmem:[#allocation9 + $0x5c8] sm:$0xf]  ;;  %v7228_v49 = vor.u32 %v9854_v37, %v7227_v36  ;;  %v9874_v36 = vld [vmem:[#allocation9 + $0x38c] sm:$0xf] }
 0x166   :  { %v829_v50 = vmul.f32 0.20019531, %v825_v42  ;;  %v830_v40 = vmul.f32 0.20019531, %v826_v43  ;;  %v7867_v44 = vld [vmem:[#allocation9 + $0x7c8] sm:$0xf]  ;;  %v7325_v37 = vld [vmem:[#allocation9 + $0x3a8] sm:$0xf0] }
 0x167   :  { %v10014_v45 = vld [vmem:[#allocation9 + $0x7e4] sm:$0xf0] }
 0x168   :  { %v839_v53 = vmax.f32 %v825_v42, %v829_v50  ;;  %v840_v41 = vmax.f32 %v826_v43, %v830_v40  ;;  %v9950_v43 = vld [vmem:[#allocation9 + $0x5e4] sm:$0xf0]  ;;  %v7868_v52 = vor.u32 %v10014_v45, %v7867_v44  ;;  %v7072_v44 = vor.u32 %v9810_v34, %v7069_v35  ;;  %v9770_v34 = vld [vmem:[#allocation9 + $0x4c] sm:$0xf] }
 0x169   :  { %v747_v56 = vpop.f32.mrf.mxu2  ;;  %v760_v57 = vpop.f32.mrf.mxu3  ;;  %v6939_v50 = vld [vmem:[#allocation9 + $0x88] sm:$0xf]  ;;  %v7612_v51 = vor.u32 %v9950_v43, %v7611_v38  ;;  %v7328_v45 = vor.u32 %v9874_v36, %v7325_v37  ;;  %v6909_v35 = vld [vmem:[#allocation9 + $0x68] sm:$0xf0] }
 0x16a   :  { %v10810_v61 = vpack.c.bf16 %v839_v53, %v839_v53  ;;  %v10812_v62 = vpack.c.bf16 %v840_v41, %v840_v41  ;;  %v761_v0 = vadd.f32 %v760_v57, %v747_v56  ;;  %v9782_v40 = vld [vmem:[#allocation9 + $0xa4] sm:$0xf0] }
 0x16b   :  { %v7195_v53 = vld [vmem:[#allocation9 + $0x288] sm:$0xf] }
 0x16c   :  { %v791_v4 = vpack.c.bf16 %v787_v63, %v761_v0  ;;  %v775_v7 = vpop.f32.mrf.mxu0  ;;  %v788_v8 = vpop.f32.mrf.mxu1  ;;  %2391 = vmatmul.bf16.vlgmr.msra.gmra.mxu2 %v10810_v61  ;;  %2404 = vmatmul.bf16.vlgmr.msra.gmra.mxu3 %v10812_v62  ;;  %v9846_v41 = vld [vmem:[#allocation9 + $0x2a4] sm:$0xf0]  ;;  %v7580_v0 = vor.u32 %v9942_v55, %v7579_v54 }
 0x16d   :  { %2487 = vmatpush.bf16.msra.mxu2 %v7100_v58  ;;  %2500 = vmatpush.bf16.msra.mxu3 %v7356_v59  ;;  %v7835_v56 = vld [vmem:[#allocation9 + $0x788] sm:$0xf]  ;;  %v6940_v58 = vor.u32 %v9782_v40, %v6939_v50  ;;  %v7196_v59 = vor.u32 %v9846_v41, %v7195_v53  ;;  %v9802_v50 = vld [vmem:[#allocation9 + $0x14c] sm:$0xf] }
 0x16e   :  { %v813_v12 = vunpack.c.l.bf16 %v791_v4  ;;  %v814_v13 = vunpack.c.h.bf16 %v791_v4  ;;  %v10006_v57 = vld [vmem:[#allocation9 + $0x7a4] sm:$0xf0]  ;;  %v7037_v40 = vld [vmem:[#allocation9 + $0x168] sm:$0xf0] }
 0x16f   :  { %v9774_v63 = vld [vmem:[#allocation9 + $0x64] sm:$0xf0]  ;;  %v7836_v1 = vor.u32 %v10006_v57, %v7835_v56  ;;  %v7040_v56 = vor.u32 %v9802_v50, %v7037_v40  ;;  %v9762_v50 = vld [vmem:[#allocation9 + $0xc] sm:$0xf] }
 0x170   :  { %v821_v17 = vadd.f32 %v817_v5, %v813_v12  ;;  %v822_v18 = vadd.f32 %v818_v6, %v814_v13  ;;  %v7547_v4 = vld [vmem:[#allocation9 + $0x548] sm:$0xf]  ;;  %v6908_v8 = vor.u32 %v9774_v63, %v6907_v60  ;;  %v9794_v60 = vld [vmem:[#allocation9 + $0x10c] sm:$0xf] }
 0x171   :  { %2488 = vmatpush.bf16.msra.mxu2 %v7068_v9  ;;  %2501 = vmatpush.bf16.msra.mxu3 %v7324_v10  ;;  %v749_v21 = vpop.f32.mrf.mxu2  ;;  %v762_v22 = vpop.f32.mrf.mxu3  ;;  %v9934_v5 = vld [vmem:[#allocation9 + $0x564] sm:$0xf0]  ;;  %v7164_v9 = vor.u32 %v9838_v3, %v7163_v2  ;;  %v7005_v63 = vld [vmem:[#allocation9 + $0x128] sm:$0xf0] }
 0x172   :  { %v824_v19 = vpack.c.bf16 %v822_v18, %v821_v17  ;;  %v7803_v6 = vld [vmem:[#allocation9 + $0x748] sm:$0xf]  ;;  %v7548_v13 = vor.u32 %v9934_v5, %v7547_v4  ;;  %v9818_v22 = vld [vmem:[#allocation9 + $0x1cc] sm:$0xf] }
 0x173   :  { %v9998_v7 = vld [vmem:[#allocation9 + $0x764] sm:$0xf0]  ;;  %v6877_v40 = vld [vmem:[#allocation9 + $0x28] sm:$0xf0] }
 0x174   :  { %v827_v28 = vunpack.c.l.bf16 %v824_v19  ;;  %v828_v29 = vunpack.c.h.bf16 %v824_v19  ;;  %v6875_v10 = vld [vmem:[#allocation9 + $0x8] sm:$0xf]  ;;  %v7804_v14 = vor.u32 %v9998_v7, %v7803_v6  ;;  %v7008_v7 = vor.u32 %v9794_v60, %v7005_v63  ;;  %v7363_v60 = vld [vmem:[#allocation9 + $0x3d0] sm:$0xf] }
 0x175   :  { %2489 = vmatpush.bf16.msra.mxu2 %v7036_v23  ;;  %2502 = vmatpush.bf16.msra.mxu3 %v7292_v24  ;;  %v7131_v12 = vld [vmem:[#allocation9 + $0x208] sm:$0xf]  ;;  %v7101_v23 = vld [vmem:[#allocation9 + $0x1e8] sm:$0xf0]  ;;  %v6876_v19 = vor.u32 %v9766_v11, %v6875_v10  ;;  %v9887_v63 = vld [vmem:[#allocation9 + $0x3ec] sm:$0xf0] }
 0x176   :  { %v831_v32 = vmul.f32 0.20019531, %v827_v28  ;;  %v832_v33 = vmul.f32 0.20019531, %v828_v29  ;;  %v9926_v17 = vld [vmem:[#allocation9 + $0x524] sm:$0xf0]  ;;  %v9882_v24 = vld [vmem:[#allocation9 + $0x3cc] sm:$0xf]  ;;  %v7132_v26 = vor.u32 %v9830_v15, %v7131_v12 }
 0x177   :  { %v7771_v18 = vld [vmem:[#allocation9 + $0x708] sm:$0xf]  ;;  %v7516_v20 = vor.u32 %v9926_v17, %v7515_v16  ;;  %v9786_v10 = vld [vmem:[#allocation9 + $0xcc] sm:$0xf] }
 0x178   :  { %v841_v39 = vmax.f32 %v827_v28, %v831_v32  ;;  %v842_v42 = vmax.f32 %v828_v29, %v832_v33  ;;  %v9990_v21 = vld [vmem:[#allocation9 + $0x724] sm:$0xf0]  ;;  %v6973_v11 = vld [vmem:[#allocation9 + $0xe8] sm:$0xf0] }
 0x179   :  { %2490 = vmatpush.bf16.msra.mxu2 %v7004_v30  ;;  %2503 = vmatpush.bf16.msra.mxu3 %v7260_v31  ;;  %v7772_v27 = vor.u32 %v9990_v21, %v7771_v18  ;;  %v7483_v28 = vld [vmem:[#allocation9 + $0x4c8] sm:$0xf]  ;;  %v7104_v30 = vor.u32 %v9818_v22, %v7101_v23  ;;  %v7360_v31 = vor.u32 %v9882_v24, %v7357_v25  ;;  %v9850_v12 = vld [vmem:[#allocation9 + $0x2cc] sm:$0xf] }
 0x17a   :  { %v10816_v46 = vpack.c.bf16 %v841_v39, %v841_v39  ;;  %v10818_v47 = vpack.c.bf16 %v842_v42, %v842_v42  ;;  %v9918_v29 = vld [vmem:[#allocation9 + $0x4e4] sm:$0xf0]  ;;  %v7613_v15 = vld [vmem:[#allocation9 + $0x5e8] sm:$0xf0]  ;;  %v6976_v22 = vor.u32 %v9786_v10, %v6973_v11  ;;  %v7075_v10 = vld [vmem:[#allocation9 + $0x190] sm:$0xf] }
 0x17b   :  { %v7739_v32 = vld [vmem:[#allocation9 + $0x6c8] sm:$0xf]  ;;  %v7484_v38 = vor.u32 %v9918_v29, %v7483_v28  ;;  %v10010_v16 = vld [vmem:[#allocation9 + $0x7cc] sm:$0xf]  ;;  %v9815_v11 = vld [vmem:[#allocation9 + $0x1ac] sm:$0xf0] }
 0x17c   :  { %2417 = vmatmul.bf16.vlgmr.msrb.gmra.mxu0 %v10816_v46  ;;  %2430 = vmatmul.bf16.vlgmr.msrb.gmra.mxu1 %v10818_v47  ;;  %v9982_v33 = vld [vmem:[#allocation9 + $0x6e4] sm:$0xf0]  ;;  %v7869_v17 = vld [vmem:[#allocation9 + $0x7e8] sm:$0xf0] }
 0x17d   :  { %2443 = vmatmul.bf16.vlgmr.msrb.gmra.mxu2 %v10810_v61  ;;  %2456 = vmatmul.bf16.vlgmr.msrb.gmra.mxu3 %v10812_v62  ;;  %v7740_v39 = vor.u32 %v9982_v33, %v7739_v32  ;;  %v7451_v42 = vld [vmem:[#allocation9 + $0x488] sm:$0xf]  ;;  %v9778_v24 = vld [vmem:[#allocation9 + $0x8c] sm:$0xf] }
 0x17e   :  { %2491 = vmatpush.bf16.msra.mxu2 %v6972_v48  ;;  %2504 = vmatpush.bf16.msra.mxu3 %v7228_v49  ;;  %v9910_v43 = vld [vmem:[#allocation9 + $0x4a4] sm:$0xf0]  ;;  %v6941_v25 = vld [vmem:[#allocation9 + $0xa8] sm:$0xf0] }
 0x17f   :  { %2513 = vmatpush.bf16.msrb.mxu0 %v7612_v51  ;;  %2526 = vmatpush.bf16.msrb.mxu1 %v7868_v52  ;;  %v7707_v48 = vld [vmem:[#allocation9 + $0x688] sm:$0xf]  ;;  %v9866_v51 = vld [vmem:[#allocation9 + $0x34c] sm:$0xf]  ;;  %v7452_v53 = vor.u32 %v9910_v43, %v7451_v42  ;;  %v6944_v32 = vor.u32 %v9778_v24, %v6941_v25  ;;  %v7043_v24 = vld [vmem:[#allocation9 + $0x150] sm:$0xf] }
 0x180   :  { %v9974_v49 = vld [vmem:[#allocation9 + $0x6a4] sm:$0xf0]  ;;  %v7293_v52 = vld [vmem:[#allocation9 + $0x368] sm:$0xf0]  ;;  %v9807_v25 = vld [vmem:[#allocation9 + $0x16c] sm:$0xf0] }
 0x181   :  { %v7708_v41 = vor.u32 %v9974_v49, %v7707_v48  ;;  %v7419_v54 = vld [vmem:[#allocation9 + $0x448] sm:$0xf]  ;;  %v7296_v57 = vor.u32 %v9866_v51, %v7293_v52  ;;  %v9938_v28 = vld [vmem:[#allocation9 + $0x58c] sm:$0xf]  ;;  %v6912_v48 = vor.u32 %v9770_v34, %v6909_v35  ;;  %v7011_v34 = vld [vmem:[#allocation9 + $0x110] sm:$0xf] }
 0x182   :  { %2492 = vmatpush.bf16.msra.mxu2 %v6940_v58  ;;  %2505 = vmatpush.bf16.msra.mxu3 %v7196_v59  ;;  %v9902_v55 = vld [vmem:[#allocation9 + $0x464] sm:$0xf0]  ;;  %v7581_v29 = vld [vmem:[#allocation9 + $0x5a8] sm:$0xf0]  ;;  %v9799_v35 = vld [vmem:[#allocation9 + $0x12c] sm:$0xf0] }
 0x183   :  { %2514 = vmatpush.bf16.msrb.mxu0 %v7580_v0  ;;  %2527 = vmatpush.bf16.msrb.mxu1 %v7836_v1  ;;  %v7675_v58 = vld [vmem:[#allocation9 + $0x648] sm:$0xf]  ;;  %v9858_v0 = vld [vmem:[#allocation9 + $0x30c] sm:$0xf]  ;;  %v7420_v2 = vor.u32 %v9902_v55, %v7419_v54  ;;  %v7584_v36 = vor.u32 %v9938_v28, %v7581_v29 }
 0x184   :  { %v9966_v59 = vld [vmem:[#allocation9 + $0x664] sm:$0xf0]  ;;  %v7261_v1 = vld [vmem:[#allocation9 + $0x328] sm:$0xf0] }
 0x185   :  { %v7676_v3 = vor.u32 %v9966_v59, %v7675_v58  ;;  %v7387_v4 = vld [vmem:[#allocation9 + $0x408] sm:$0xf]  ;;  %v9930_v42 = vld [vmem:[#allocation9 + $0x54c] sm:$0xf]  ;;  %v7107_v58 = vld [vmem:[#allocation9 + $0x1d0] sm:$0xf] }
 0x186   :  { %2493 = vmatpush.bf16.msra.mxu2 %v6908_v8  ;;  %2506 = vmatpush.bf16.msra.mxu3 %v7164_v9  ;;  %v9894_v5 = vld [vmem:[#allocation9 + $0x424] sm:$0xf0]  ;;  %v7264_v8 = vor.u32 %v9858_v0, %v7261_v1  ;;  %v7549_v43 = vld [vmem:[#allocation9 + $0x568] sm:$0xf0]  ;;  %v9823_v59 = vld [vmem:[#allocation9 + $0x1ec] sm:$0xf0]  ;;  %v6880_v0 = vor.u32 %v9762_v50, %v6877_v40 }
 0x187   :  { %2515 = vmatpush.bf16.msrb.mxu0 %v7548_v13  ;;  %2528 = vmatpush.bf16.msrb.mxu1 %v7804_v14  ;;  %v7643_v6 = vld [vmem:[#allocation9 + $0x608] sm:$0xf]  ;;  %v7229_v13 = vld [vmem:[#allocation9 + $0x2e8] sm:$0xf0]  ;;  %v7388_v18 = vor.u32 %v9894_v5, %v7387_v4  ;;  %v7552_v52 = vor.u32 %v9930_v42, %v7549_v43  ;;  %v6979_v50 = vld [vmem:[#allocation9 + $0xd0] sm:$0xf] }
 0x188   :  { %v9958_v9 = vld [vmem:[#allocation9 + $0x624] sm:$0xf0]  ;;  %v9946_v14 = vld [vmem:[#allocation9 + $0x5cc] sm:$0xf]  ;;  %v7232_v23 = vor.u32 %v9850_v12, %v7229_v13  ;;  %v7331_v12 = vld [vmem:[#allocation9 + $0x390] sm:$0xf] }
 0x189   :  { %v7644_v21 = vor.u32 %v9958_v9, %v7643_v6  ;;  %v9826_v51 = vld [vmem:[#allocation9 + $0x20c] sm:$0xf]  ;;  %v7108_v6 = vor.u32 %v9823_v59, %v7107_v58  ;;  %v9879_v13 = vld [vmem:[#allocation9 + $0x3ac] sm:$0xf0] }
 0x18a   :  { %2494 = vmatpush.bf16.msra.mxu2 %v6876_v19  ;;  %2507 = vmatpush.bf16.msra.mxu3 %v7132_v26  ;;  %v7616_v19 = vor.u32 %v9946_v14, %v7613_v15  ;;  %v7872_v26 = vor.u32 %v10010_v16, %v7869_v17  ;;  %v9922_v54 = vld [vmem:[#allocation9 + $0x50c] sm:$0xf]  ;;  %v9791_v40 = vld [vmem:[#allocation9 + $0xec] sm:$0xf0] }
 0x18b   :  { %2516 = vmatpush.bf16.msrb.mxu0 %v7516_v20  ;;  %2529 = vmatpush.bf16.msrb.mxu1 %v7772_v27  ;;  %v9842_v20 = vld [vmem:[#allocation9 + $0x28c] sm:$0xf]  ;;  %v6980_v58 = vor.u32 %v9791_v40, %v6979_v50  ;;  %v9811_v50 = vld [vmem:[#allocation9 + $0x194] sm:$0xf] }
 0x18c   :  { %2469 = vmatmul.bf16.vlgmr.msra.gmra.mxu0 %v10816_v46  ;;  %2482 = vmatmul.bf16.vlgmr.msra.gmra.mxu1 %v10818_v47  ;;  %v7197_v27 = vld [vmem:[#allocation9 + $0x2a8] sm:$0xf0]  ;;  %v7077_v40 = vld [vmem:[#allocation9 + $0x1b0] sm:$0xf0] }
 0x18d   :  { %2495 = vmatmul.bf16.vlgmr.msra.gmra.mxu2 %v10810_v61  ;;  %2508 = vmatmul.bf16.vlgmr.msra.gmra.mxu3 %v10812_v62  ;;  %v7200_v33 = vor.u32 %v9842_v20, %v7197_v27  ;;  %v7517_v55 = vld [vmem:[#allocation9 + $0x528] sm:$0xf0] }
 0x18e   :  { %2539 = vmatpush.bf16.msrb.mxu2 %v7104_v30  ;;  %2552 = vmatpush.bf16.msrb.mxu3 %v7360_v31  ;;  %v10002_v30 = vld [vmem:[#allocation9 + $0x78c] sm:$0xf] }
 0x18f   :  { %2517 = vmatpush.bf16.msrb.mxu0 %v7484_v38  ;;  %2530 = vmatpush.bf16.msrb.mxu1 %v7740_v39  ;;  %v7837_v31 = vld [vmem:[#allocation9 + $0x7a8] sm:$0xf0] }
 0x190   :  { %v7840_v37 = vor.u32 %v10002_v30, %v7837_v31  ;;  %v9834_v38 = vld [vmem:[#allocation9 + $0x24c] sm:$0xf]  ;;  %v7044_v30 = vor.u32 %v9807_v25, %v7043_v24  ;;  %v6883_v24 = vld [vmem:[#allocation9 + $0x10] sm:$0xf] }
 0x191   :  { %v7165_v39 = vld [vmem:[#allocation9 + $0x268] sm:$0xf0]  ;;  %v9767_v25 = vld [vmem:[#allocation9 + $0x2c] sm:$0xf0] }
 0x192   :  { %2540 = vmatpush.bf16.msrb.mxu2 %v7072_v44  ;;  %2553 = vmatpush.bf16.msrb.mxu3 %v7328_v45  ;;  %v9994_v44 = vld [vmem:[#allocation9 + $0x74c] sm:$0xf]  ;;  %v7168_v49 = vor.u32 %v9834_v38, %v7165_v39 }
 0x193   :  { %2518 = vmatpush.bf16.msrb.mxu0 %v7452_v53  ;;  %2531 = vmatpush.bf16.msrb.mxu1 %v7708_v41  ;;  %v7805_v45 = vld [vmem:[#allocation9 + $0x768] sm:$0xf0] }
 0x194   :  { %v7808_v53 = vor.u32 %v9994_v44, %v7805_v45  ;;  %v7133_v41 = vld [vmem:[#allocation9 + $0x228] sm:$0xf0]  ;;  %v7012_v45 = vor.u32 %v9799_v35, %v7011_v34  ;;  %v9883_v34 = vld [vmem:[#allocation9 + $0x3d4] sm:$0xf] }
 0x195   :  { %v7136_v1 = vor.u32 %v9826_v51, %v7133_v41  ;;  %v9914_v4 = vld [vmem:[#allocation9 + $0x4cc] sm:$0xf]  ;;  %v7235_v51 = vld [vmem:[#allocation9 + $0x2d0] sm:$0xf]  ;;  %v7365_v35 = vld [vmem:[#allocation9 + $0x3f0] sm:$0xf0] }
 0x196   :  { %2541 = vmatpush.bf16.msrb.mxu2 %v7040_v56  ;;  %2554 = vmatpush.bf16.msrb.mxu3 %v7296_v57  ;;  %v9986_v56 = vld [vmem:[#allocation9 + $0x70c] sm:$0xf]  ;;  %v9951_v41 = vld [vmem:[#allocation9 + $0x5ec] sm:$0xf0] }
 0x197   :  { %2519 = vmatpush.bf16.msrb.mxu0 %v7420_v2  ;;  %2532 = vmatpush.bf16.msrb.mxu1 %v7676_v3  ;;  %v7773_v57 = vld [vmem:[#allocation9 + $0x728] sm:$0xf0]  ;;  %v7520_v2 = vor.u32 %v9922_v54, %v7517_v55  ;;  %v7875_v54 = vld [vmem:[#allocation9 + $0x7d0] sm:$0xf] }
 0x198   :  { %v7776_v3 = vor.u32 %v9986_v56, %v7773_v57  ;;  %v7485_v5 = vld [vmem:[#allocation9 + $0x4e8] sm:$0xf0]  ;;  %v10015_v55 = vld [vmem:[#allocation9 + $0x7ec] sm:$0xf0] }
 0x199   :  { %v7741_v9 = vld [vmem:[#allocation9 + $0x6e8] sm:$0xf0]  ;;  %v7488_v14 = vor.u32 %v9914_v4, %v7485_v5  ;;  %v7587_v4 = vld [vmem:[#allocation9 + $0x590] sm:$0xf] }
 0x19a   :  { %2542 = vmatpush.bf16.msrb.mxu2 %v7008_v7  ;;  %2555 = vmatpush.bf16.msrb.mxu3 %v7264_v8  ;;  %v7364_v7 = vor.u32 %v9887_v63, %v7363_v60  ;;  %v9978_v8 = vld [vmem:[#allocation9 + $0x6cc] sm:$0xf]  ;;  %v6947_v60 = vld [vmem:[#allocation9 + $0x90] sm:$0xf] }
 0x19b   :  { %2520 = vmatpush.bf16.msrb.mxu0 %v7388_v18  ;;  %2533 = vmatpush.bf16.msrb.mxu1 %v7644_v21  ;;  %v7744_v15 = vor.u32 %v9978_v8, %v7741_v9  ;;  %v9906_v16 = vld [vmem:[#allocation9 + $0x48c] sm:$0xf]  ;;  %v7076_v18 = vor.u32 %v9815_v11, %v7075_v10  ;;  %v7332_v21 = vor.u32 %v9879_v13, %v7331_v12  ;;  %v9783_v63 = vld [vmem:[#allocation9 + $0xac] sm:$0xf0] }
 0x19c   :  { %v7453_v17 = vld [vmem:[#allocation9 + $0x4a8] sm:$0xf0]  ;;  %v9943_v5 = vld [vmem:[#allocation9 + $0x5ac] sm:$0xf0]  ;;  %v6948_v8 = vor.u32 %v9783_v63, %v6947_v60  ;;  %v9803_v60 = vld [vmem:[#allocation9 + $0x154] sm:$0xf] }
 0x19d   :  { %v7456_v20 = vor.u32 %v9906_v16, %v7453_v17  ;;  %v9898_v28 = vld [vmem:[#allocation9 + $0x44c] sm:$0xf]  ;;  %v6915_v10 = vld [vmem:[#allocation9 + $0x50] sm:$0xf]  ;;  %v7588_v12 = vor.u32 %v9943_v5, %v7587_v4  ;;  %v7045_v63 = vld [vmem:[#allocation9 + $0x170] sm:$0xf0] }
 0x19e   :  { %2543 = vmatpush.bf16.msrb.mxu2 %v6976_v22  ;;  %2556 = vmatpush.bf16.msrb.mxu3 %v7232_v23  ;;  %v9970_v22 = vld [vmem:[#allocation9 + $0x68c] sm:$0xf]  ;;  %v9775_v11 = vld [vmem:[#allocation9 + $0x6c] sm:$0xf0] }
 0x19f   :  { %2565 = vmatpush.bf16.msra.mxu0 %v7616_v19  ;;  %2578 = vmatpush.bf16.msra.mxu1 %v7872_v26  ;;  %v7709_v23 = vld [vmem:[#allocation9 + $0x6a8] sm:$0xf0]  ;;  %v7299_v19 = vld [vmem:[#allocation9 + $0x350] sm:$0xf] }
 0x1a0   :  { %2521 = vmatmul.bf16.vlgmr.msrb.gmra.mxu0 %v10816_v46  ;;  %2534 = vmatmul.bf16.vlgmr.msrb.gmra.mxu1 %v10818_v47  ;;  %v9871_v26 = vld [vmem:[#allocation9 + $0x36c] sm:$0xf0]  ;;  %v7712_v27 = vor.u32 %v9970_v22, %v7709_v23  ;;  %v7421_v29 = vld [vmem:[#allocation9 + $0x468] sm:$0xf0]  ;;  %v6916_v22 = vor.u32 %v9775_v11, %v6915_v10  ;;  %v9795_v10 = vld [vmem:[#allocation9 + $0x114] sm:$0xf] }
 0x1a1   :  { %v7300_v31 = vor.u32 %v9871_v26, %v7299_v19  ;;  %v7424_v38 = vor.u32 %v9898_v28, %v7421_v29  ;;  %v9890_v42 = vld [vmem:[#allocation9 + $0x40c] sm:$0xf]  ;;  %v7555_v16 = vld [vmem:[#allocation9 + $0x550] sm:$0xf]  ;;  %v7013_v11 = vld [vmem:[#allocation9 + $0x130] sm:$0xf0] }
 0x1a2   :  { %2544 = vmatpush.bf16.msrb.mxu2 %v6944_v32  ;;  %2557 = vmatpush.bf16.msrb.mxu3 %v7200_v33  ;;  %v9962_v32 = vld [vmem:[#allocation9 + $0x64c] sm:$0xf]  ;;  %v9935_v17 = vld [vmem:[#allocation9 + $0x56c] sm:$0xf0] }
 0x1a3   :  { %2566 = vmatpush.bf16.msra.mxu0 %v7584_v36  ;;  %2579 = vmatpush.bf16.msra.mxu1 %v7840_v37  ;;  %v7677_v33 = vld [vmem:[#allocation9 + $0x668] sm:$0xf0]  ;;  %v7267_v36 = vld [vmem:[#allocation9 + $0x310] sm:$0xf]  ;;  %v7556_v26 = vor.u32 %v9935_v17, %v7555_v16 }
 0x1a4   :  { %v9863_v37 = vld [vmem:[#allocation9 + $0x32c] sm:$0xf0]  ;;  %v7680_v39 = vor.u32 %v9962_v32, %v7677_v33  ;;  %v7389_v43 = vld [vmem:[#allocation9 + $0x428] sm:$0xf0]  ;;  %v9819_v32 = vld [vmem:[#allocation9 + $0x1d4] sm:$0xf] }
 0x1a5   :  { %v9954_v44 = vld [vmem:[#allocation9 + $0x60c] sm:$0xf]  ;;  %v7392_v56 = vor.u32 %v9890_v42, %v7389_v43  ;;  %v7139_v19 = vld [vmem:[#allocation9 + $0x210] sm:$0xf]  ;;  %v7109_v33 = vld [vmem:[#allocation9 + $0x1f0] sm:$0xf0] }
 0x1a6   :  { %2545 = vmatpush.bf16.msrb.mxu2 %v6912_v48  ;;  %2558 = vmatpush.bf16.msrb.mxu3 %v7168_v49  ;;  %v7268_v48 = vor.u32 %v9863_v37, %v7267_v36  ;;  %v7645_v49 = vld [vmem:[#allocation9 + $0x628] sm:$0xf0]  ;;  %v7523_v28 = vld [vmem:[#allocation9 + $0x510] sm:$0xf]  ;;  %v6884_v36 = vor.u32 %v9767_v25, %v6883_v24  ;;  %v9787_v24 = vld [vmem:[#allocation9 + $0xd4] sm:$0xf] }
 0x1a7   :  { %2567 = vmatpush.bf16.msra.mxu0 %v7552_v52  ;;  %2580 = vmatpush.bf16.msra.mxu1 %v7808_v53  ;;  %v9855_v52 = vld [vmem:[#allocation9 + $0x2ec] sm:$0xf0]  ;;  %v7648_v57 = vor.u32 %v9954_v44, %v7645_v49  ;;  %v7112_v44 = vor.u32 %v9819_v32, %v7109_v33  ;;  %v6981_v25 = vld [vmem:[#allocation9 + $0xf0] sm:$0xf0] }
 0x1a8   :  { %v7619_v53 = vld [vmem:[#allocation9 + $0x5d0] sm:$0xf]  ;;  %v7236_v59 = vor.u32 %v9855_v52, %v7235_v51  ;;  %v9875_v51 = vld [vmem:[#allocation9 + $0x394] sm:$0xf]  ;;  %v6984_v32 = vor.u32 %v9787_v24, %v6981_v25  ;;  %v7083_v24 = vld [vmem:[#allocation9 + $0x198] sm:$0xf] }
 0x1a9   :  { %v9927_v29 = vld [vmem:[#allocation9 + $0x52c] sm:$0xf0]  ;;  %v7333_v52 = vld [vmem:[#allocation9 + $0x3b0] sm:$0xf0]  ;;  %v9816_v25 = vld [vmem:[#allocation9 + $0x1b4] sm:$0xf0] }
 0x1aa   :  { %2546 = vmatpush.bf16.msrb.mxu2 %v6880_v0  ;;  %2559 = vmatpush.bf16.msrb.mxu3 %v7136_v1  ;;  %v7620_v0 = vor.u32 %v9951_v41, %v7619_v53  ;;  %v7876_v1 = vor.u32 %v10015_v55, %v7875_v54  ;;  %v7491_v42 = vld [vmem:[#allocation9 + $0x4d0] sm:$0xf] }
 0x1ab   :  { %2568 = vmatpush.bf16.msra.mxu0 %v7520_v2  ;;  %2581 = vmatpush.bf16.msra.mxu1 %v7776_v3  ;;  %v7203_v2 = vld [vmem:[#allocation9 + $0x290] sm:$0xf] }
 0x1ac   :  { %v9847_v3 = vld [vmem:[#allocation9 + $0x2ac] sm:$0xf0] }
 0x1ad   :  { %2547 = vmatmul.bf16.vlgmr.msrb.gmra.mxu2 %v10810_v61  ;;  %2560 = vmatmul.bf16.vlgmr.msrb.gmra.mxu3 %v10812_v62  ;;  %v7204_v9 = vor.u32 %v9847_v3, %v7203_v2  ;;  %v9919_v43 = vld [vmem:[#allocation9 + $0x4ec] sm:$0xf0] }
 0x1ae   :  { %2591 = vmatpush.bf16.msra.mxu2 %v7108_v6  ;;  %2604 = vmatpush.bf16.msra.mxu3 %v7364_v7  ;;  %v7843_v6 = vld [vmem:[#allocation9 + $0x790] sm:$0xf]  ;;  %v7492_v53 = vor.u32 %v9919_v43, %v7491_v42  ;;  %v9939_v42 = vld [vmem:[#allocation9 + $0x594] sm:$0xf] }
 0x1af   :  { %2569 = vmatpush.bf16.msra.mxu0 %v7488_v14  ;;  %2582 = vmatpush.bf16.msra.mxu1 %v7744_v15  ;;  %v10007_v7 = vld [vmem:[#allocation9 + $0x7ac] sm:$0xf0]  ;;  %v7589_v43 = vld [vmem:[#allocation9 + $0x5b0] sm:$0xf0] }
 0x1b0   :  { %v7844_v13 = vor.u32 %v10007_v7, %v7843_v6  ;;  %v7171_v14 = vld [vmem:[#allocation9 + $0x250] sm:$0xf]  ;;  %v7048_v6 = vor.u32 %v9803_v60, %v7045_v63  ;;  %v9763_v60 = vld [vmem:[#allocation9 + $0x14] sm:$0xf] }
 0x1b1   :  { %v9839_v15 = vld [vmem:[#allocation9 + $0x26c] sm:$0xf0]  ;;  %v6885_v63 = vld [vmem:[#allocation9 + $0x30] sm:$0xf0] }
 0x1b2   :  { %2592 = vmatpush.bf16.msra.mxu2 %v7076_v18  ;;  %2605 = vmatpush.bf16.msra.mxu3 %v7332_v21  ;;  %v7811_v18 = vld [vmem:[#allocation9 + $0x750] sm:$0xf]  ;;  %v7172_v23 = vor.u32 %v9839_v15, %v7171_v14 }
 0x1b3   :  { %2570 = vmatpush.bf16.msra.mxu0 %v7456_v20  ;;  %2583 = vmatpush.bf16.msra.mxu1 %v7712_v27  ;;  %v9999_v21 = vld [vmem:[#allocation9 + $0x76c] sm:$0xf0] }
 0x1b4   :  { %v7812_v20 = vor.u32 %v9999_v21, %v7811_v18  ;;  %v9831_v27 = vld [vmem:[#allocation9 + $0x22c] sm:$0xf0]  ;;  %v7016_v21 = vor.u32 %v9795_v10, %v7013_v11  ;;  %v7371_v10 = vld [vmem:[#allocation9 + $0x3d8] sm:$0xf] }
 0x1b5   :  { %v7140_v37 = vor.u32 %v9831_v27, %v7139_v19  ;;  %v9983_v49 = vld [vmem:[#allocation9 + $0x6ec] sm:$0xf0]  ;;  %v9851_v19 = vld [vmem:[#allocation9 + $0x2d4] sm:$0xf]  ;;  %v9888_v11 = vld [vmem:[#allocation9 + $0x3f4] sm:$0xf0] }
 0x1b6   :  { %2593 = vmatpush.bf16.msra.mxu2 %v7044_v30  ;;  %2606 = vmatpush.bf16.msra.mxu3 %v7300_v31  ;;  %v7779_v30 = vld [vmem:[#allocation9 + $0x710] sm:$0xf]  ;;  %v7621_v27 = vld [vmem:[#allocation9 + $0x5f0] sm:$0xf0] }
 0x1b7   :  { %2571 = vmatpush.bf16.msra.mxu0 %v7424_v38  ;;  %2584 = vmatpush.bf16.msra.mxu1 %v7680_v39  ;;  %v9991_v31 = vld [vmem:[#allocation9 + $0x72c] sm:$0xf0]  ;;  %v7524_v38 = vor.u32 %v9927_v29, %v7523_v28  ;;  %v10011_v28 = vld [vmem:[#allocation9 + $0x7d4] sm:$0xf] }
 0x1b8   :  { %v7780_v39 = vor.u32 %v9991_v31, %v7779_v30  ;;  %v7459_v54 = vld [vmem:[#allocation9 + $0x490] sm:$0xf]  ;;  %v7877_v29 = vld [vmem:[#allocation9 + $0x7f0] sm:$0xf0] }
 0x1b9   :  { %v9911_v55 = vld [vmem:[#allocation9 + $0x4ac] sm:$0xf0] }
 0x1ba   :  { %2594 = vmatpush.bf16.msra.mxu2 %v7012_v45  ;;  %2607 = vmatpush.bf16.msra.mxu3 %v7268_v48  ;;  %v7368_v45 = vor.u32 %v9883_v34, %v7365_v35  ;;  %v7747_v48 = vld [vmem:[#allocation9 + $0x6d0] sm:$0xf]  ;;  %v7460_v2 = vor.u32 %v9911_v55, %v7459_v54  ;;  %v9779_v34 = vld [vmem:[#allocation9 + $0x94] sm:$0xf] }
 0x1bb   :  { %2572 = vmatpush.bf16.msra.mxu0 %v7392_v56  ;;  %2585 = vmatpush.bf16.msra.mxu1 %v7648_v57  ;;  %v7748_v41 = vor.u32 %v9983_v49, %v7747_v48  ;;  %v7080_v56 = vor.u32 %v9811_v50, %v7077_v40  ;;  %v7336_v57 = vor.u32 %v9875_v51, %v7333_v52  ;;  %v7427_v4 = vld [vmem:[#allocation9 + $0x450] sm:$0xf]  ;;  %v6949_v35 = vld [vmem:[#allocation9 + $0xb0] sm:$0xf0] }
 0x1bc   :  { %v9903_v5 = vld [vmem:[#allocation9 + $0x46c] sm:$0xf0]  ;;  %v6952_v48 = vor.u32 %v9779_v34, %v6949_v35  ;;  %v9771_v50 = vld [vmem:[#allocation9 + $0x54] sm:$0xf]  ;;  %v7592_v51 = vor.u32 %v9939_v42, %v7589_v43  ;;  %v7051_v34 = vld [vmem:[#allocation9 + $0x158] sm:$0xf] }
 0x1bd   :  { %v7428_v14 = vor.u32 %v9903_v5, %v7427_v4  ;;  %v7395_v16 = vld [vmem:[#allocation9 + $0x410] sm:$0xf]  ;;  %v6917_v40 = vld [vmem:[#allocation9 + $0x70] sm:$0xf0]  ;;  %v9808_v35 = vld [vmem:[#allocation9 + $0x174] sm:$0xf0] }
 0x1be   :  { %2595 = vmatpush.bf16.msra.mxu2 %v6980_v58  ;;  %2608 = vmatpush.bf16.msra.mxu3 %v7236_v59  ;;  %v7715_v58 = vld [vmem:[#allocation9 + $0x690] sm:$0xf]  ;;  %v9931_v54 = vld [vmem:[#allocation9 + $0x554] sm:$0xf] }
 0x1bf   :  { %2617 = vmatpush.bf16.msrb.mxu0 %v7620_v0  ;;  %2630 = vmatpush.bf16.msrb.mxu1 %v7876_v1  ;;  %v9975_v59 = vld [vmem:[#allocation9 + $0x6ac] sm:$0xf0]  ;;  %v9867_v0 = vld [vmem:[#allocation9 + $0x354] sm:$0xf] }
 0x1c0   :  { %2573 = vmatmul.bf16.vlgmr.msra.gmra.mxu0 %v10816_v46  ;;  %2586 = vmatmul.bf16.vlgmr.msra.gmra.mxu1 %v10818_v47  ;;  %v7301_v1 = vld [vmem:[#allocation9 + $0x370] sm:$0xf0]  ;;  %v7716_v3 = vor.u32 %v9975_v59, %v7715_v58  ;;  %v9895_v17 = vld [vmem:[#allocation9 + $0x42c] sm:$0xf0]  ;;  %v6920_v58 = vor.u32 %v9771_v50, %v6917_v40  ;;  %v7019_v50 = vld [vmem:[#allocation9 + $0x118] sm:$0xf] }
 0x1c1   :  { %v7304_v7 = vor.u32 %v9867_v0, %v7301_v1  ;;  %v7651_v18 = vld [vmem:[#allocation9 + $0x610] sm:$0xf]  ;;  %v7396_v30 = vor.u32 %v9895_v17, %v7395_v16  ;;  %v7557_v55 = vld [vmem:[#allocation9 + $0x570] sm:$0xf0]  ;;  %v9800_v40 = vld [vmem:[#allocation9 + $0x134] sm:$0xf0] }
 0x1c2   :  { %2596 = vmatpush.bf16.msra.mxu2 %v6948_v8  ;;  %2609 = vmatpush.bf16.msra.mxu3 %v7204_v9  ;;  %v7683_v8 = vld [vmem:[#allocation9 + $0x650] sm:$0xf]  ;;  %v9827_v0 = vld [vmem:[#allocation9 + $0x214] sm:$0xf]  ;;  %v7560_v1 = vor.u32 %v9931_v54, %v7557_v55 }
 0x1c3   :  { %2618 = vmatpush.bf16.msrb.mxu0 %v7588_v12  ;;  %2631 = vmatpush.bf16.msrb.mxu1 %v7844_v13  ;;  %v9967_v9 = vld [vmem:[#allocation9 + $0x66c] sm:$0xf0]  ;;  %v9859_v12 = vld [vmem:[#allocation9 + $0x314] sm:$0xf] }
 0x1c4   :  { %v7269_v13 = vld [vmem:[#allocation9 + $0x330] sm:$0xf0]  ;;  %v7684_v15 = vor.u32 %v9967_v9, %v7683_v8  ;;  %v7115_v8 = vld [vmem:[#allocation9 + $0x1d8] sm:$0xf] }
 0x1c5   :  { %v9923_v4 = vld [vmem:[#allocation9 + $0x514] sm:$0xf]  ;;  %v9824_v9 = vld [vmem:[#allocation9 + $0x1f4] sm:$0xf0] }
 0x1c6   :  { %2597 = vmatpush.bf16.msra.mxu2 %v6916_v22  ;;  %2610 = vmatpush.bf16.msra.mxu3 %v7172_v23  ;;  %v7272_v22 = vor.u32 %v9859_v12, %v7269_v13  ;;  %v9959_v23 = vld [vmem:[#allocation9 + $0x62c] sm:$0xf0]  ;;  %v7525_v5 = vld [vmem:[#allocation9 + $0x530] sm:$0xf0]  ;;  %v6888_v12 = vor.u32 %v9763_v60, %v6885_v63  ;;  %v6987_v60 = vld [vmem:[#allocation9 + $0xd8] sm:$0xf] }
 0x1c7   :  { %2619 = vmatpush.bf16.msrb.mxu0 %v7556_v26  ;;  %2632 = vmatpush.bf16.msrb.mxu1 %v7812_v20  ;;  %v7237_v26 = vld [vmem:[#allocation9 + $0x2f0] sm:$0xf0]  ;;  %v7652_v31 = vor.u32 %v9959_v23, %v7651_v18  ;;  %v7116_v18 = vor.u32 %v9824_v9, %v7115_v8  ;;  %v9792_v63 = vld [vmem:[#allocation9 + $0xf4] sm:$0xf0] }
 0x1c8   :  { %v9947_v20 = vld [vmem:[#allocation9 + $0x5d4] sm:$0xf]  ;;  %v7240_v33 = vor.u32 %v9851_v19, %v7237_v26  ;;  %v7339_v19 = vld [vmem:[#allocation9 + $0x398] sm:$0xf] }
 0x1c9   :  { %v9915_v16 = vld [vmem:[#allocation9 + $0x4d4] sm:$0xf]  ;;  %v9880_v26 = vld [vmem:[#allocation9 + $0x3b4] sm:$0xf0] }
 0x1ca   :  { %2598 = vmatpush.bf16.msra.mxu2 %v6884_v36  ;;  %2611 = vmatpush.bf16.msra.mxu3 %v7140_v37  ;;  %v7624_v36 = vor.u32 %v9947_v20, %v7621_v27  ;;  %v7880_v37 = vor.u32 %v10011_v28, %v7877_v29  ;;  %v7493_v17 = vld [vmem:[#allocation9 + $0x4f0] sm:$0xf0] }
 0x1cb   :  { %2620 = vmatpush.bf16.msrb.mxu0 %v7524_v38  ;;  %2633 = vmatpush.bf16.msrb.mxu1 %v7780_v39  ;;  %v9843_v38 = vld [vmem:[#allocation9 + $0x294] sm:$0xf]  ;;  %v7496_v20 = vor.u32 %v9915_v16, %v7493_v17  ;;  %v7211_v16 = vld [vmem:[#allocation9 + $0x298] sm:$0xf] }
 0x1cc   :  { %v7205_v39 = vld [vmem:[#allocation9 + $0x2b0] sm:$0xf0]  ;;  %v9848_v17 = vld [vmem:[#allocation9 + $0x2b4] sm:$0xf0] }
 0x1cd   :  { %2599 = vmatmul.bf16.vlgmr.msra.gmra.mxu2 %v10810_v61  ;;  %2612 = vmatmul.bf16.vlgmr.msra.gmra.mxu3 %v10812_v62  ;;  %v7208_v49 = vor.u32 %v9843_v38, %v7205_v39  ;;  %v7749_v23 = vld [vmem:[#allocation9 + $0x6f0] sm:$0xf0] }
 0x1ce   :  { %2643 = vmatpush.bf16.msrb.mxu2 %v7112_v44  ;;  %2656 = vmatpush.bf16.msrb.mxu3 %v7368_v45  ;;  %v10003_v44 = vld [vmem:[#allocation9 + $0x794] sm:$0xf] }
 0x1cf   :  { %2621 = vmatpush.bf16.msrb.mxu0 %v7492_v53  ;;  %2634 = vmatpush.bf16.msrb.mxu1 %v7748_v41  ;;  %v7845_v45 = vld [vmem:[#allocation9 + $0x7b0] sm:$0xf0] }
 0x1d0   :  { %v7848_v52 = vor.u32 %v10003_v44, %v7845_v45  ;;  %v9835_v53 = vld [vmem:[#allocation9 + $0x254] sm:$0xf]  ;;  %v7052_v44 = vor.u32 %v9808_v35, %v7051_v34  ;;  %v7819_v34 = vld [vmem:[#allocation9 + $0x758] sm:$0xf] }
 0x1d1   :  { %v7173_v41 = vld [vmem:[#allocation9 + $0x270] sm:$0xf0]  ;;  %v10000_v35 = vld [vmem:[#allocation9 + $0x774] sm:$0xf0] }
 0x1d2   :  { %2644 = vmatpush.bf16.msrb.mxu2 %v7080_v56  ;;  %2657 = vmatpush.bf16.msrb.mxu3 %v7336_v57  ;;  %v9995_v56 = vld [vmem:[#allocation9 + $0x754] sm:$0xf]  ;;  %v7176_v59 = vor.u32 %v9835_v53, %v7173_v41 }
 0x1d3   :  { %2622 = vmatpush.bf16.msrb.mxu0 %v7460_v2  ;;  %2635 = vmatpush.bf16.msrb.mxu1 %v7716_v3  ;;  %v7813_v57 = vld [vmem:[#allocation9 + $0x770] sm:$0xf0] }
 0x1d4   :  { %v7816_v2 = vor.u32 %v9995_v56, %v7813_v57  ;;  %v7141_v3 = vld [vmem:[#allocation9 + $0x230] sm:$0xf0]  ;;  %v7020_v57 = vor.u32 %v9800_v40, %v7019_v50  ;;  %v7531_v50 = vld [vmem:[#allocation9 + $0x518] sm:$0xf] }
 0x1d5   :  { %v7144_v13 = vor.u32 %v9827_v0, %v7141_v3  ;;  %v9907_v28 = vld [vmem:[#allocation9 + $0x494] sm:$0xf]  ;;  %v9856_v3 = vld [vmem:[#allocation9 + $0x2f4] sm:$0xf0] }
 0x1d6   :  { %2645 = vmatpush.bf16.msrb.mxu2 %v7048_v6  ;;  %2658 = vmatpush.bf16.msrb.mxu3 %v7304_v7  ;;  %v9987_v6 = vld [vmem:[#allocation9 + $0x714] sm:$0xf]  ;;  %v9928_v40 = vld [vmem:[#allocation9 + $0x534] sm:$0xf0] }
 0x1d7   :  { %2623 = vmatpush.bf16.msrb.mxu0 %v7428_v14  ;;  %2636 = vmatpush.bf16.msrb.mxu1 %v7684_v15  ;;  %v7781_v7 = vld [vmem:[#allocation9 + $0x730] sm:$0xf0]  ;;  %v7528_v14 = vor.u32 %v9923_v4, %v7525_v5  ;;  %v7627_v4 = vld [vmem:[#allocation9 + $0x5d8] sm:$0xf] }
 0x1d8   :  { %v7784_v15 = vor.u32 %v9987_v6, %v7781_v7  ;;  %v7461_v29 = vld [vmem:[#allocation9 + $0x4b0] sm:$0xf0]  ;;  %v9952_v5 = vld [vmem:[#allocation9 + $0x5f4] sm:$0xf0] }
 0x1d9   :  { %v7464_v38 = vor.u32 %v9907_v28, %v7461_v29  ;;  %v9899_v42 = vld [vmem:[#allocation9 + $0x454] sm:$0xf]  ;;  %v7883_v6 = vld [vmem:[#allocation9 + $0x7d8] sm:$0xf] }
 0x1da   :  { %2646 = vmatpush.bf16.msrb.mxu2 %v7016_v21  ;;  %2659 = vmatpush.bf16.msrb.mxu3 %v7272_v22  ;;  %v7372_v21 = vor.u32 %v9888_v11, %v7371_v10  ;;  %v9979_v22 = vld [vmem:[#allocation9 + $0x6d4] sm:$0xf]  ;;  %v10016_v7 = vld [vmem:[#allocation9 + $0x7f4] sm:$0xf0]  ;;  %v6988_v10 = vor.u32 %v9792_v63, %v6987_v60 }
 0x1db   :  { %2624 = vmatpush.bf16.msrb.mxu0 %v7396_v30  ;;  %2637 = vmatpush.bf16.msrb.mxu1 %v7652_v31  ;;  %v7752_v27 = vor.u32 %v9979_v22, %v7749_v23  ;;  %v7084_v30 = vor.u32 %v9816_v25, %v7083_v24  ;;  %v7340_v31 = vor.u32 %v9880_v26, %v7339_v19  ;;  %v7429_v43 = vld [vmem:[#allocation9 + $0x470] sm:$0xf0]  ;;  %v7851_v22 = vld [vmem:[#allocation9 + $0x798] sm:$0xf] }
 0x1dc   :  { %v7432_v53 = vor.u32 %v9899_v42, %v7429_v43  ;;  %v9891_v54 = vld [vmem:[#allocation9 + $0x414] sm:$0xf]  ;;  %v10008_v23 = vld [vmem:[#allocation9 + $0x7b4] sm:$0xf0]  ;;  %v7212_v25 = vor.u32 %v9848_v17, %v7211_v16 }
 0x1dd   :  { %v7397_v55 = vld [vmem:[#allocation9 + $0x430] sm:$0xf0]  ;;  %v6923_v19 = vld [vmem:[#allocation9 + $0x58] sm:$0xf] }
 0x1de   :  { %2647 = vmatpush.bf16.msrb.mxu2 %v6984_v32  ;;  %2660 = vmatpush.bf16.msrb.mxu3 %v7240_v33  ;;  %v9971_v32 = vld [vmem:[#allocation9 + $0x694] sm:$0xf]  ;;  %v7400_v8 = vor.u32 %v9891_v54, %v7397_v55  ;;  %v9776_v26 = vld [vmem:[#allocation9 + $0x74] sm:$0xf0]  ;;  %v9884_v54 = vld [vmem:[#allocation9 + $0x3dc] sm:$0xf] }
 0x1df   :  { %2669 = vmatpush.bf16.msra.mxu0 %v7624_v36  ;;  %2682 = vmatpush.bf16.msra.mxu1 %v7880_v37  ;;  %v7717_v33 = vld [vmem:[#allocation9 + $0x6b0] sm:$0xf0]  ;;  %v7307_v36 = vld [vmem:[#allocation9 + $0x358] sm:$0xf]  ;;  %v7373_v55 = vld [vmem:[#allocation9 + $0x3f8] sm:$0xf0] }
 0x1e0   :  { %2625 = vmatmul.bf16.vlgmr.msrb.gmra.mxu0 %v10816_v46  ;;  %2638 = vmatmul.bf16.vlgmr.msrb.gmra.mxu1 %v10818_v47  ;;  %v9872_v37 = vld [vmem:[#allocation9 + $0x374] sm:$0xf0]  ;;  %v7720_v39 = vor.u32 %v9971_v32, %v7717_v33  ;;  %v9955_v56 = vld [vmem:[#allocation9 + $0x614] sm:$0xf] }
 0x1e1   :  { %v7308_v45 = vor.u32 %v9872_v37, %v7307_v36  ;;  %v7563_v32 = vld [vmem:[#allocation9 + $0x558] sm:$0xf] }
 0x1e2   :  { %2648 = vmatpush.bf16.msrb.mxu2 %v6952_v48  ;;  %2661 = vmatpush.bf16.msrb.mxu3 %v7208_v49  ;;  %v9963_v48 = vld [vmem:[#allocation9 + $0x654] sm:$0xf]  ;;  %v9936_v33 = vld [vmem:[#allocation9 + $0x574] sm:$0xf0] }
 0x1e3   :  { %2670 = vmatpush.bf16.msra.mxu0 %v7592_v51  ;;  %2683 = vmatpush.bf16.msra.mxu1 %v7848_v52  ;;  %v7685_v49 = vld [vmem:[#allocation9 + $0x670] sm:$0xf0]  ;;  %v7275_v51 = vld [vmem:[#allocation9 + $0x318] sm:$0xf] }
 0x1e4   :  { %v9864_v52 = vld [vmem:[#allocation9 + $0x334] sm:$0xf0]  ;;  %v7688_v41 = vor.u32 %v9963_v48, %v7685_v49  ;;  %v7820_v48 = vor.u32 %v10000_v35, %v7819_v34 }
 0x1e5   :  { %v6891_v42 = vld [vmem:[#allocation9 + $0x18] sm:$0xf] }
 0x1e6   :  { %2649 = vmatpush.bf16.msrb.mxu2 %v6920_v58  ;;  %2662 = vmatpush.bf16.msrb.mxu3 %v7176_v59  ;;  %v7276_v58 = vor.u32 %v9864_v52, %v7275_v51  ;;  %v7653_v59 = vld [vmem:[#allocation9 + $0x630] sm:$0xf0]  ;;  %v9768_v43 = vld [vmem:[#allocation9 + $0x34] sm:$0xf0] }
 0x1e7   :  { %2671 = vmatpush.bf16.msra.mxu0 %v7560_v1  ;;  %2684 = vmatpush.bf16.msra.mxu1 %v7816_v2  ;;  %v7243_v2 = vld [vmem:[#allocation9 + $0x2d8] sm:$0xf]  ;;  %v7656_v9 = vor.u32 %v9955_v56, %v7653_v59  ;;  %v6892_v56 = vor.u32 %v9768_v43, %v6891_v42  ;;  %v9860_v42 = vld [vmem:[#allocation9 + $0x31c] sm:$0xf] }
 0x1e8   :  { %v7244_v11 = vor.u32 %v9856_v3, %v7243_v2  ;;  %v9832_v49 = vld [vmem:[#allocation9 + $0x234] sm:$0xf0]  ;;  %v7376_v3 = vor.u32 %v9884_v54, %v7373_v55  ;;  %v7277_v43 = vld [vmem:[#allocation9 + $0x338] sm:$0xf0] }
 0x1e9   :  { %v7787_v51 = vld [vmem:[#allocation9 + $0x718] sm:$0xf]  ;;  %v9788_v54 = vld [vmem:[#allocation9 + $0xdc] sm:$0xf] }
 0x1ea   :  { %2650 = vmatpush.bf16.msrb.mxu2 %v6888_v12  ;;  %2663 = vmatpush.bf16.msrb.mxu3 %v7144_v13  ;;  %v6955_v12 = vld [vmem:[#allocation9 + $0x98] sm:$0xf]  ;;  %v6989_v55 = vld [vmem:[#allocation9 + $0xf8] sm:$0xf0] }
 0x1eb   :  { %2672 = vmatpush.bf16.msra.mxu0 %v7528_v14  ;;  %2685 = vmatpush.bf16.msra.mxu1 %v7784_v15  ;;  %v9784_v13 = vld [vmem:[#allocation9 + $0xb4] sm:$0xf0]  ;;  %v7628_v14 = vor.u32 %v9952_v5, %v7627_v4  ;;  %v7884_v15 = vor.u32 %v10016_v7, %v7883_v6 }
 0x1ec   :  { %v6956_v24 = vor.u32 %v9784_v13, %v6955_v12  ;;  %v9992_v52 = vld [vmem:[#allocation9 + $0x734] sm:$0xf0]  ;;  %v9876_v12 = vld [vmem:[#allocation9 + $0x39c] sm:$0xf] }
 0x1ed   :  { %2651 = vmatmul.bf16.vlgmr.msrb.gmra.mxu2 %v10810_v61  ;;  %2664 = vmatmul.bf16.vlgmr.msrb.gmra.mxu3 %v10812_v62  ;;  %v7788_v59 = vor.u32 %v9992_v52, %v7787_v51  ;;  %v7499_v60 = vld [vmem:[#allocation9 + $0x4d8] sm:$0xf]  ;;  %v7341_v13 = vld [vmem:[#allocation9 + $0x3b8] sm:$0xf0] }
 0x1ee   :  { %2695 = vmatpush.bf16.msra.mxu2 %v7116_v18  ;;  %2708 = vmatpush.bf16.msra.mxu3 %v7372_v21  ;;  %v7595_v18 = vld [vmem:[#allocation9 + $0x598] sm:$0xf] }
 0x1ef   :  { %2673 = vmatpush.bf16.msra.mxu0 %v7496_v20  ;;  %2686 = vmatpush.bf16.msra.mxu1 %v7752_v27  ;;  %v10840_v0 = vpop.f32.mrf.mxu2  ;;  %v10842_v1 = vpop.f32.mrf.mxu3  ;;  %v9944_v21 = vld [vmem:[#allocation9 + $0x5b4] sm:$0xf0]  ;;  %v7852_v27 = vor.u32 %v10008_v23, %v7851_v22 }
 0x1f0   :  { %v7596_v20 = vor.u32 %v9944_v21, %v7595_v18  ;;  %v9920_v63 = vld [vmem:[#allocation9 + $0x4f4] sm:$0xf0]  ;;  %v7344_v21 = vor.u32 %v9876_v12, %v7341_v13 }
 0x1f1   :  { %v7755_v6 = vld [vmem:[#allocation9 + $0x6d8] sm:$0xf] }
 0x1f2   :  { %2696 = vmatpush.bf16.msra.mxu2 %v7084_v30  ;;  %2709 = vmatpush.bf16.msra.mxu3 %v7340_v31  ;;  %v7179_v30 = vld [vmem:[#allocation9 + $0x258] sm:$0xf] }
 0x1f3   :  { %2674 = vmatpush.bf16.msra.mxu0 %v7464_v38  ;;  %2687 = vmatpush.bf16.msra.mxu1 %v7720_v39  ;;  %v9840_v31 = vld [vmem:[#allocation9 + $0x274] sm:$0xf0]  ;;  %v6924_v38 = vor.u32 %v9776_v26, %v6923_v19  ;;  %v9868_v19 = vld [vmem:[#allocation9 + $0x35c] sm:$0xf] }
 0x1f4   :  { %v7180_v39 = vor.u32 %v9840_v31, %v7179_v30  ;;  %v9984_v7 = vld [vmem:[#allocation9 + $0x6f4] sm:$0xf0]  ;;  %v7309_v26 = vld [vmem:[#allocation9 + $0x378] sm:$0xf0] }
 0x1f5   :  { %v7467_v16 = vld [vmem:[#allocation9 + $0x498] sm:$0xf]  ;;  %v7312_v31 = vor.u32 %v9868_v19, %v7309_v26  ;;  %v9772_v19 = vld [vmem:[#allocation9 + $0x5c] sm:$0xf] }
 0x1f6   :  { %2697 = vmatpush.bf16.msra.mxu2 %v7052_v44  ;;  %2710 = vmatpush.bf16.msra.mxu3 %v7308_v45  ;;  %v7147_v44 = vld [vmem:[#allocation9 + $0x218] sm:$0xf]  ;;  %v7564_v45 = vor.u32 %v9936_v33, %v7563_v32  ;;  %v6925_v26 = vld [vmem:[#allocation9 + $0x78] sm:$0xf0] }
 0x1f7   :  { %2675 = vmatpush.bf16.msra.mxu0 %v7432_v53  ;;  %2688 = vmatpush.bf16.msra.mxu1 %v7688_v41  ;;  %v2394_v28 = vpop.f32.mrf.mxu2  ;;  %v2407_v29 = vpop.f32.mrf.mxu3  ;;  %v9820_v53 = vld [vmem:[#allocation9 + $0x1dc] sm:$0xf]  ;;  %v9912_v17 = vld [vmem:[#allocation9 + $0x4b4] sm:$0xf0] }
 0x1f8   :  { %v7117_v41 = vld [vmem:[#allocation9 + $0x1f8] sm:$0xf0]  ;;  %v7723_v22 = vld [vmem:[#allocation9 + $0x698] sm:$0xf] }
 0x1f9   :  { %v10846_v36 = vpop.f32.mrf.mxu0  ;;  %v10848_v37 = vpop.f32.mrf.mxu1  ;;  %v7120_v2 = vor.u32 %v9820_v53, %v7117_v41  ;;  %v9976_v23 = vld [vmem:[#allocation9 + $0x6b4] sm:$0xf0]  ;;  %v7280_v53 = vor.u32 %v9860_v42, %v7277_v43  ;;  %v6928_v42 = vor.u32 %v9772_v19, %v6925_v26 }
 0x1fa   :  { %2698 = vmatpush.bf16.msra.mxu2 %v7020_v57  ;;  %2711 = vmatpush.bf16.msra.mxu3 %v7276_v58  ;;  %v7148_v57 = vor.u32 %v9832_v49, %v7147_v44  ;;  %v7532_v58 = vor.u32 %v9928_v40, %v7531_v50  ;;  %v7435_v28 = vld [vmem:[#allocation9 + $0x458] sm:$0xf] }
 0x1fb   :  { %2676 = vmatpush.bf16.msra.mxu0 %v7400_v8  ;;  %2689 = vmatpush.bf16.msra.mxu1 %v7656_v9  ;;  %v9812_v8 = vld [vmem:[#allocation9 + $0x19c] sm:$0xf]  ;;  %v9904_v29 = vld [vmem:[#allocation9 + $0x474] sm:$0xf0] }
 0x1fc   :  { %v7691_v34 = vld [vmem:[#allocation9 + $0x658] sm:$0xf] }
 0x1fd   :  { %v9968_v35 = vld [vmem:[#allocation9 + $0x674] sm:$0xf0] }
 0x1fe   :  { %2699 = vmatpush.bf16.msra.mxu2 %v6988_v10  ;;  %2712 = vmatpush.bf16.msra.mxu3 %v7244_v11  ;;  %v7085_v11 = vld [vmem:[#allocation9 + $0x1b8] sm:$0xf0]  ;;  %v7692_v49 = vor.u32 %v9968_v35, %v7691_v34  ;;  %v7403_v50 = vld [vmem:[#allocation9 + $0x418] sm:$0xf] }
 0x1ff   :  { %2721 = vmatpush.bf16.msrb.mxu0 %v7628_v14  ;;  %2734 = vmatpush.bf16.msrb.mxu1 %v7884_v15  ;;  %v7500_v14 = vor.u32 %v9920_v63, %v7499_v60  ;;  %v7756_v15 = vor.u32 %v9984_v7, %v7755_v6  ;;  %v7088_v18 = vor.u32 %v9812_v8, %v7085_v11  ;;  %v9896_v40 = vld [vmem:[#allocation9 + $0x434] sm:$0xf0]  ;;  %v10012_v60 = vld [vmem:[#allocation9 + $0x7dc] sm:$0xf] }
 0x200   :  { %2677 = vmatmul.bf16.vlgmr.msra.gmra.mxu0 %v10816_v46  ;;  %2690 = vmatmul.bf16.vlgmr.msra.gmra.mxu1 %v10818_v47  ;;  %v10850_v4 = vpop.f32.mrf.mxu2  ;;  %v10852_v5 = vpop.f32.mrf.mxu3  ;;  %v7659_v51 = vld [vmem:[#allocation9 + $0x618] sm:$0xf]  ;;  %v7885_v63 = vld [vmem:[#allocation9 + $0x7f8] sm:$0xf0]  ;;  %v6992_v6 = vor.u32 %v9788_v54, %v6989_v55 }
 0x201   :  { %v2420_v9 = vpop.f32.mrf.mxu0  ;;  %v2433_v10 = vpop.f32.mrf.mxu1  ;;  %v9960_v41 = vld [vmem:[#allocation9 + $0x634] sm:$0xf0]  ;;  %v9780_v8 = vld [vmem:[#allocation9 + $0x9c] sm:$0xf]  ;;  %v7888_v11 = vor.u32 %v10012_v60, %v7885_v63  ;;  %v2458_v34 = vadd.f32 %v10852_v5, %v10850_v4  ;;  %v8311_v60 = vld [vmem:[#allocation12 + $0x348] sm:$0xf] }
 0x202   :  { %2700 = vmatpush.bf16.msra.mxu2 %v6956_v24  ;;  %2713 = vmatpush.bf16.msra.mxu3 %v7212_v25  ;;  %v9804_v24 = vld [vmem:[#allocation9 + $0x15c] sm:$0xf]  ;;  %v2806_v35 = vld [vmem:[#allocation1] sm:$0xff]  ;;  %v10125_v63 = vld [vmem:[#allocation12 + $0x360] sm:$0xf0] }
 0x203   :  { %2722 = vmatpush.bf16.msrb.mxu0 %v7596_v20  ;;  %2735 = vmatpush.bf16.msrb.mxu1 %v7852_v27  ;;  %v7053_v25 = vld [vmem:[#allocation9 + $0x178] sm:$0xf0]  ;;  %v7468_v20 = vor.u32 %v9912_v17, %v7467_v16  ;;  %v7724_v27 = vor.u32 %v9976_v23, %v7723_v22 }
 0x204   :  { %v7056_v30 = vor.u32 %v9804_v24, %v7053_v25  ;;  %v6957_v9 = vld [vmem:[#allocation9 + $0xb8] sm:$0xf0] }
 0x205   :  { %v9940_v16 = vld [vmem:[#allocation9 + $0x59c] sm:$0xf]  ;;  %v6960_v24 = vor.u32 %v9780_v8, %v6957_v9 }
 0x206   :  { %2701 = vmatpush.bf16.msra.mxu2 %v6924_v38  ;;  %2714 = vmatpush.bf16.msra.mxu3 %v7180_v39  ;;  %v9796_v38 = vld [vmem:[#allocation9 + $0x11c] sm:$0xf] }
 0x207   :  { %2723 = vmatpush.bf16.msrb.mxu0 %v7564_v45  ;;  %2736 = vmatpush.bf16.msrb.mxu1 %v7820_v48  ;;  %v7021_v39 = vld [vmem:[#allocation9 + $0x138] sm:$0xf0]  ;;  %v7436_v48 = vor.u32 %v9904_v29, %v7435_v28 }
 0x208   :  { %v2446_v32 = vpop.f32.mrf.mxu2  ;;  %v2459_v33 = vpop.f32.mrf.mxu3  ;;  %v7024_v52 = vor.u32 %v9796_v38, %v7021_v39  ;;  %v10004_v22 = vld [vmem:[#allocation9 + $0x79c] sm:$0xf]  ;;  %v2406_v39 = vadd.f32 %v10842_v1, %v10840_v0  ;;  %v8087_v1 = vld [vmem:[#allocation12 + $0x188] sm:$0xf] }
 0x209   :  { %v10856_v44 = vpop.f32.mrf.mxu0  ;;  %v10858_v45 = vpop.f32.mrf.mxu1  ;;  %v7853_v23 = vld [vmem:[#allocation9 + $0x7b8] sm:$0xf0] }
 0x20a   :  { %2702 = vmatpush.bf16.msra.mxu2 %v6892_v56  ;;  %2715 = vmatpush.bf16.msra.mxu3 %v7148_v57  ;;  %v9852_v56 = vld [vmem:[#allocation9 + $0x2dc] sm:$0xf] }
 0x20b   :  { %2724 = vmatpush.bf16.msrb.mxu0 %v7532_v58  ;;  %2737 = vmatpush.bf16.msrb.mxu1 %v7788_v59  ;;  %v7245_v57 = vld [vmem:[#allocation9 + $0x2f8] sm:$0xf0] }
 0x20c   :  { %v9948_v58 = vld [vmem:[#allocation9 + $0x5dc] sm:$0xf]  ;;  %v7248_v7 = vor.u32 %v9852_v56, %v7245_v57  ;;  %v2419_v56 = vadd.f32 %v10846_v36, %v2406_v39  ;;  %v2814_v57 = vpack.i.b16 %v2806_v35, %v2806_v35  ;;  %v8255_v35 = vld [vmem:[#allocation12 + $0x2d8] sm:$0xf] }
 0x20d   :  { %2703 = vmatmul.bf16.vlgmr.msra.gmra.mxu2 %v10810_v61  ;;  %2716 = vmatmul.bf16.vlgmr.msra.gmra.mxu3 %v10812_v62  ;;  %v7629_v59 = vld [vmem:[#allocation9 + $0x5f8] sm:$0xf0] }
 0x20e   :  { %2747 = vmatpush.bf16.msrb.mxu2 %v7120_v2  ;;  %2760 = vmatpush.bf16.msrb.mxu3 %v7376_v3  ;;  %v7404_v2 = vor.u32 %v9896_v40, %v7403_v50  ;;  %v7660_v3 = vor.u32 %v9960_v41, %v7659_v51  ;;  %v7632_v10 = vor.u32 %v9948_v58, %v7629_v59  ;;  %v9836_v28 = vld [vmem:[#allocation9 + $0x25c] sm:$0xf] }
 0x20f   :  { %2725 = vmatpush.bf16.msrb.mxu0 %v7500_v14  ;;  %2738 = vmatpush.bf16.msrb.mxu1 %v7756_v15  ;;  %v9844_v14 = vld [vmem:[#allocation9 + $0x29c] sm:$0xf]  ;;  %v2471_v40 = vadd.f32 %v10856_v44, %v2458_v34  ;;  %v10069_v44 = vld [vmem:[#allocation12 + $0x1a0] sm:$0xf0] }
 0x210   :  { %v10860_v12 = vpop.f32.mrf.mxu2  ;;  %v10862_v13 = vpop.f32.mrf.mxu3  ;;  %v7213_v15 = vld [vmem:[#allocation9 + $0x2b8] sm:$0xf0] }
 0x211   :  { %v2472_v17 = vpop.f32.mrf.mxu0  ;;  %v7216_v25 = vor.u32 %v9844_v14, %v7213_v15  ;;  %v7181_v29 = vld [vmem:[#allocation9 + $0x278] sm:$0xf0]  ;;  %v8312_v14 = vor.u32 %v10125_v63, %v8311_v60 }
 0x212   :  { %2748 = vmatpush.bf16.msrb.mxu2 %v7088_v18  ;;  %2761 = vmatpush.bf16.msrb.mxu3 %v7344_v21  ;;  %v2485_v18 = vpop.f32.mrf.mxu1  ;;  %v7597_v21 = vld [vmem:[#allocation9 + $0x5b8] sm:$0xf0]  ;;  %v7184_v43 = vor.u32 %v9836_v28, %v7181_v29  ;;  %v8059_v17 = vld [vmem:[#allocation12 + $0x150] sm:$0xf] }
 0x213   :  { %2726 = vmatpush.bf16.msrb.mxu0 %v7468_v20  ;;  %2739 = vmatpush.bf16.msrb.mxu1 %v7724_v27  ;;  %v7600_v20 = vor.u32 %v9940_v16, %v7597_v21  ;;  %v7856_v27 = vor.u32 %v10004_v22, %v7853_v23  ;;  %v9996_v32 = vld [vmem:[#allocation9 + $0x75c] sm:$0xf]  ;;  %v2432_v18 = vadd.f32 %v10848_v37, %v2419_v56  ;;  %v10062_v21 = vld [vmem:[#allocation12 + $0x168] sm:$0xf0]  ;;  %v8283_v22 = vld [vmem:[#allocation12 + $0x310] sm:$0xf] }
 0x214   :  { %v7821_v33 = vld [vmem:[#allocation9 + $0x778] sm:$0xf0]  ;;  %v10118_v23 = vld [vmem:[#allocation12 + $0x328] sm:$0xf0]  ;;  %v8060_v28 = vor.u32 %v10062_v21, %v8059_v17 }
 0x215   :  { %v2807_v38 = vld [vmem:[#allocation1 + $0x9] sm:$0xff]  ;;  %v8284_v29 = vor.u32 %v10118_v23, %v8283_v22 }
 0x216   :  { %2749 = vmatpush.bf16.msrb.mxu2 %v7056_v30  ;;  %2762 = vmatpush.bf16.msrb.mxu3 %v7312_v31  ;;  %v9932_v30 = vld [vmem:[#allocation9 + $0x55c] sm:$0xf] }
 0x217   :  { %2727 = vmatpush.bf16.msrb.mxu0 %v7436_v48  ;;  %2740 = vmatpush.bf16.msrb.mxu1 %v7692_v49  ;;  %v7565_v31 = vld [vmem:[#allocation9 + $0x578] sm:$0xf0] }
 0x218   :  { %v9764_v48 = vld [vmem:[#allocation9 + $0x1c] sm:$0xf]  ;;  %v7568_v51 = vor.u32 %v9932_v30, %v7565_v31  ;;  %v2511_v4 = vpop.f32.mrf.mxu3  ;;  %v8031_v31 = vld [vmem:[#allocation12 + $0x118] sm:$0xf] }
 0x219   :  { %v6893_v49 = vld [vmem:[#allocation9 + $0x38] sm:$0xf0]  ;;  %v8003_v4 = vld [vmem:[#allocation12 + $0xe0] sm:$0xf] }
 0x21a   :  { %2750 = vmatpush.bf16.msrb.mxu2 %v7024_v52  ;;  %2763 = vmatpush.bf16.msrb.mxu3 %v7280_v53  ;;  %v9828_v50 = vld [vmem:[#allocation9 + $0x21c] sm:$0xf]  ;;  %v7824_v52 = vor.u32 %v9996_v32, %v7821_v33  ;;  %v2498_v53 = vpop.f32.mrf.mxu2 }
 0x21b   :  { %2728 = vmatpush.bf16.msrb.mxu0 %v7404_v2  ;;  %2741 = vmatpush.bf16.msrb.mxu1 %v7660_v3  ;;  %v7149_v5 = vld [vmem:[#allocation9 + $0x238] sm:$0xf0]  ;;  %v2817_v2 = vpack.i.b16 %v2807_v38, %v2807_v38  ;;  %v6896_v3 = vor.u32 %v9764_v48, %v6893_v49 }
 0x21c   :  { %v9924_v41 = vld [vmem:[#allocation9 + $0x51c] sm:$0xf] }
 0x21d   :  { %v7533_v54 = vld [vmem:[#allocation9 + $0x538] sm:$0xf0]  ;;  %v10872_v58 = vpop.f32.mrf.mxu0  ;;  %v10874_v59 = vpop.f32.mrf.mxu1 }
 0x21e   :  { %2751 = vmatpush.bf16.msrb.mxu2 %v6992_v6  ;;  %2764 = vmatpush.bf16.msrb.mxu3 %v7248_v7  ;;  %v9988_v55 = vld [vmem:[#allocation9 + $0x71c] sm:$0xf]  ;;  %v7152_v6 = vor.u32 %v9828_v50, %v7149_v5  ;;  %v2484_v7 = vadd.f32 %v10858_v45, %v2471_v40  ;;  %v7536_v8 = vor.u32 %v9924_v41, %v7533_v54  ;;  %v10048_v5 = vld [vmem:[#allocation12 + $0xf8] sm:$0xf0]  ;;  %v8227_v41 = vld [vmem:[#allocation12 + $0x2a0] sm:$0xf] }
 0x21f   :  { %2773 = vmatpush.bf16.msra.mxu0 %v7632_v10  ;;  %2786 = vmatpush.bf16.msra.mxu1 %v7888_v11  ;;  %v7789_v0 = vld [vmem:[#allocation9 + $0x738] sm:$0xf0]  ;;  %v8088_v11 = vor.u32 %v10069_v44, %v8087_v1  ;;  %v10104_v54 = vld [vmem:[#allocation12 + $0x2b8] sm:$0xf0]  ;;  %v8004_v63 = vor.u32 %v10048_v5, %v8003_v4 }
 0x220   :  { %2729 = vmatmul.bf16.vlgmr.msrb.gmra.mxu0 %v10816_v46  ;;  %2742 = vmatmul.bf16.vlgmr.msrb.gmra.mxu1 %v10818_v47  ;;  %v7792_v9 = vor.u32 %v9988_v55, %v7789_v0  ;;  %v9916_v36 = vld [vmem:[#allocation9 + $0x4dc] sm:$0xf]  ;;  %v2799_v45 = vpack.c.bf16 %v2484_v7, %v2432_v18  ;;  %v10041_v7 = vld [vmem:[#allocation12 + $0xc0] sm:$0xf0] }
 0x221   :  { %v7501_v10 = vld [vmem:[#allocation9 + $0x4f8] sm:$0xf0] }
 0x222   :  { %2752 = vmatpush.bf16.msrb.mxu2 %v6960_v24  ;;  %2765 = vmatpush.bf16.msrb.mxu3 %v7216_v25  ;;  %v9980_v15 = vld [vmem:[#allocation9 + $0x6dc] sm:$0xf]  ;;  %v2816_v24 = vperm.slane %v2814_v57, 0  ;;  %v2819_v25 = vperm.slane %v2817_v2, 0  ;;  %v7504_v19 = vor.u32 %v9916_v36, %v7501_v10  ;;  %v2839_v48 = vunpack.c.h.bf16 %v2799_v45  ;;  %v8535_v36 = vld [vmem:[#allocation12 + $0x508] sm:$0xf] }
 0x223   :  { %2774 = vmatpush.bf16.msra.mxu0 %v7600_v20  ;;  %2787 = vmatpush.bf16.msra.mxu1 %v7856_v27  ;;  %v7757_v16 = vld [vmem:[#allocation9 + $0x6f8] sm:$0xf0]  ;;  %v8228_v2 = vor.u32 %v10104_v54, %v8227_v41  ;;  %v10181_v10 = vld [vmem:[#allocation12 + $0x520] sm:$0xf0] }
 0x224   :  { %v7760_v26 = vor.u32 %v9980_v15, %v7757_v16  ;;  %v9908_v20 = vld [vmem:[#allocation9 + $0x49c] sm:$0xf]  ;;  %v2846_v39 = vunpack.c.l.bf16 %v2816_v24  ;;  %v7947_v24 = vld [vmem:[#allocation12 + $0x70] sm:$0xf] }
 0x225   :  { %v7469_v27 = vld [vmem:[#allocation9 + $0x4b8] sm:$0xf0]  ;;  %v2524_v32 = vpop.f32.mrf.mxu0  ;;  %v2537_v33 = vpop.f32.mrf.mxu1 }
 0x226   :  { %2753 = vmatpush.bf16.msrb.mxu2 %v6928_v42  ;;  %2766 = vmatpush.bf16.msrb.mxu3 %v7184_v43  ;;  %v9972_v30 = vld [vmem:[#allocation9 + $0x69c] sm:$0xf]  ;;  %v2847_v42 = vunpack.c.l.bf16 %v2819_v25  ;;  %v2838_v43 = vunpack.c.l.bf16 %v2799_v45  ;;  %v7472_v49 = vor.u32 %v9908_v20, %v7469_v27  ;;  %v10034_v25 = vld [vmem:[#allocation12 + $0x88] sm:$0xf0]  ;;  %v8536_v45 = vor.u32 %v10181_v10, %v8535_v36  ;;  %v8507_v27 = vld [vmem:[#allocation12 + $0x4d0] sm:$0xf] }
 0x227   :  { %2775 = vmatpush.bf16.msra.mxu0 %v7568_v51  ;;  %2788 = vmatpush.bf16.msra.mxu1 %v7824_v52  ;;  %v7725_v37 = vld [vmem:[#allocation9 + $0x6b8] sm:$0xf0]  ;;  %v10090_v20 = vld [vmem:[#allocation12 + $0x248] sm:$0xf0]  ;;  %v7919_v32 = vld [vmem:[#allocation12 + $0x38] sm:$0xf]  ;;  %v7948_v33 = vor.u32 %v10034_v25, %v7947_v24 }
 0x228   :  { %v10055_v34 = vld [vmem:[#allocation12 + $0x130] sm:$0xf0]  ;;  %v7728_v50 = vor.u32 %v9972_v30, %v7725_v37  ;;  %v2854_v0 = vadd.f32 %v2846_v39, %v2838_v43  ;;  %v2855_v1 = vadd.f32 %v2847_v42, %v2839_v48  ;;  %v10230_v30 = vld [vmem:[#allocation12 + $0x6a8] sm:$0xf0]  ;;  %v8479_v48 = vld [vmem:[#allocation12 + $0x498] sm:$0xf] }
 0x229   :  { %v10111_v38 = vld [vmem:[#allocation12 + $0x2f0] sm:$0xf0]  ;;  %v10293_v10 = vld [vmem:[#allocation12 + $0x8a0] sm:$0xf0] }
 0x22a   :  { %2754 = vmatpush.bf16.msrb.mxu2 %v6896_v3  ;;  %2767 = vmatpush.bf16.msrb.mxu3 %v7152_v6  ;;  %v9900_v40 = vld [vmem:[#allocation9 + $0x45c] sm:$0xf]  ;;  %v8256_v52 = vor.u32 %v10111_v38, %v8255_v35  ;;  %v7975_v6 = vld [vmem:[#allocation12 + $0xa8] sm:$0xf]  ;;  %v10880_v15 = vpack.c.bf16 %v2855_v1, %v2854_v0  ;;  %v8143_v38 = vld [vmem:[#allocation12 + $0x1f8] sm:$0xf] }
 0x22b   :  { %2776 = vmatpush.bf16.msra.mxu0 %v7536_v8  ;;  %2789 = vmatpush.bf16.msra.mxu1 %v7792_v9  ;;  %v7437_v51 = vld [vmem:[#allocation9 + $0x478] sm:$0xf0]  ;;  %v8199_v8 = vld [vmem:[#allocation12 + $0x268] sm:$0xf]  ;;  %v10097_v9 = vld [vmem:[#allocation12 + $0x280] sm:$0xf0]  ;;  %v7976_v18 = vor.u32 %v10041_v7, %v7975_v6 }
 0x22c   :  { %v7693_v53 = vld [vmem:[#allocation9 + $0x678] sm:$0xf0]  ;;  %v7440_v55 = vor.u32 %v9900_v40, %v7437_v51  ;;  %v8200_v21 = vor.u32 %v10097_v9, %v8199_v8  ;;  %v2866_v37 = vunpack.c.l.bf16 %v10880_v15  ;;  %v8703_v51 = vld [vmem:[#allocation12 + $0x658] sm:$0xf]  ;;  %v7891_v1 = vld [vmem:[#allocation12] sm:$0xf] }
 0x22d   :  { %2755 = vmatmul.bf16.vlgmr.msrb.gmra.mxu2 %v10810_v61  ;;  %2768 = vmatmul.bf16.vlgmr.msrb.gmra.mxu3 %v10812_v62  ;;  %v8032_v61 = vor.u32 %v10055_v34, %v8031_v31  ;;  %v9964_v62 = vld [vmem:[#allocation9 + $0x65c] sm:$0xf]  ;;  %v2867_v31 = vunpack.c.h.bf16 %v10880_v15  ;;  %v8983_v6 = vld [vmem:[#allocation12 + $0x888] sm:$0xf]  ;;  %v10153_v24 = vld [vmem:[#allocation12 + $0x440] sm:$0xf0] }
 0x22e   :  { %5726 = vmatpush.bf16.msra.mxu2 %v8088_v11  ;;  %5739 = vmatpush.bf16.msra.mxu3 %v8312_v14  ;;  %v7696_v56 = vor.u32 %v9964_v62, %v7693_v53  ;;  %v9892_v57 = vld [vmem:[#allocation9 + $0x41c] sm:$0xf]  ;;  %v8759_v11 = vld [vmem:[#allocation12 + $0x6c8] sm:$0xf]  ;;  %v10237_v14 = vld [vmem:[#allocation12 + $0x6e0] sm:$0xf0]  ;;  %v2510_v53 = vadd.f32 %v10862_v13, %v10860_v12 }
 0x22f   :  { %2777 = vmatpush.bf16.msra.mxu0 %v7504_v19  ;;  %2790 = vmatpush.bf16.msra.mxu1 %v7760_v26  ;;  %v7405_v44 = vld [vmem:[#allocation9 + $0x438] sm:$0xf0]  ;;  %v8760_v19 = vor.u32 %v10237_v14, %v8759_v11  ;;  %v8171_v26 = vld [vmem:[#allocation12 + $0x230] sm:$0xf]  ;;  %v2875_v62 = vmul.f32 0.20019531, %v2867_v31 }
 0x230   :  { %v9956_v60 = vld [vmem:[#allocation9 + $0x61c] sm:$0xf]  ;;  %v7408_v16 = vor.u32 %v9892_v57, %v7405_v44  ;;  %v2548_v22 = vpop.f32.mrf.mxu2  ;;  %v2561_v23 = vpop.f32.mrf.mxu3  ;;  %v8172_v34 = vor.u32 %v10090_v20, %v8171_v26  ;;  %v10076_v44 = vld [vmem:[#allocation12 + $0x1d8] sm:$0xf0]  ;;  %v2523_v12 = vadd.f32 %v10872_v58, %v2510_v53  ;;  %v9207_v11 = vld [vmem:[#allocation12 + $0xa48] sm:$0xf]  ;;  %v8984_v20 = vor.u32 %v10293_v10, %v8983_v6 }
 0x231   :  { %v7661_v3 = vld [vmem:[#allocation9 + $0x638] sm:$0xf0]  ;;  %v2562_v13 = vadd.f32 %v2561_v23, %v2548_v22  ;;  %v10349_v14 = vld [vmem:[#allocation12 + $0xa60] sm:$0xf0]  ;;  %v8423_v23 = vld [vmem:[#allocation12 + $0x428] sm:$0xf] }
 0x232   :  { %5727 = vmatpush.bf16.msra.mxu2 %v8060_v28  ;;  %5740 = vmatpush.bf16.msra.mxu3 %v8284_v29  ;;  %v7664_v17 = vor.u32 %v9956_v60, %v7661_v3  ;;  %v10174_v28 = vld [vmem:[#allocation12 + $0x4e8] sm:$0xf0]  ;;  %v8731_v29 = vld [vmem:[#allocation12 + $0x690] sm:$0xf]  ;;  %v10027_v35 = vld [vmem:[#allocation12 + $0x50] sm:$0xf0]  ;;  %v2536_v25 = vadd.f32 %v10874_v59, %v2523_v12  ;;  %v8424_v59 = vor.u32 %v10153_v24, %v8423_v23 }
 0x233   :  { %2778 = vmatpush.bf16.msra.mxu0 %v7472_v49  ;;  %2791 = vmatpush.bf16.msra.mxu1 %v7728_v50  ;;  %v10083_v39 = vld [vmem:[#allocation12 + $0x210] sm:$0xf0]  ;;  %v8508_v42 = vor.u32 %v10174_v28, %v8507_v27  ;;  %v8732_v43 = vor.u32 %v10230_v30, %v8731_v29  ;;  %v2808_v49 = vld [vmem:[#allocation1 + $0x12] sm:$0xff]  ;;  %v2809_v50 = vld [vmem:[#allocation1 + $0x1b] sm:$0xff]  ;;  %v7920_v4 = vor.u32 %v10027_v35, %v7919_v32 }
 0x234   :  { %v10167_v40 = vld [vmem:[#allocation12 + $0x4b0] sm:$0xf0]  ;;  %v8144_v5 = vor.u32 %v10083_v39, %v8143_v38  ;;  %v2823_v0 = vpack.i.b16 %v2809_v50, %v2809_v50  ;;  %v8451_v60 = vld [vmem:[#allocation12 + $0x460] sm:$0xf]  ;;  %v10216_v3 = vld [vmem:[#allocation12 + $0x638] sm:$0xf0]  ;;  %v9208_v27 = vor.u32 %v10349_v14, %v9207_v11 }
 0x235   :  { %v10209_v26 = vld [vmem:[#allocation12 + $0x600] sm:$0xf0]  ;;  %v8955_v28 = vld [vmem:[#allocation12 + $0x850] sm:$0xf]  ;;  %v10286_v29 = vld [vmem:[#allocation12 + $0x868] sm:$0xf0] }
 0x236   :  { %5728 = vmatpush.bf16.msra.mxu2 %v8032_v61  ;;  %5741 = vmatpush.bf16.msra.mxu3 %v8256_v52  ;;  %v10223_v61 = vld [vmem:[#allocation12 + $0x670] sm:$0xf0]  ;;  %v2874_v52 = vmul.f32 0.20019531, %v2866_v37  ;;  %v9179_v30 = vld [vmem:[#allocation12 + $0xa10] sm:$0xf] }
 0x237   :  { %2779 = vmatpush.bf16.msra.mxu0 %v7440_v55  ;;  %2792 = vmatpush.bf16.msra.mxu1 %v7696_v56  ;;  %v2820_v55 = vpack.i.b16 %v2808_v49, %v2808_v49  ;;  %v8115_v56 = vld [vmem:[#allocation12 + $0x1c0] sm:$0xf]  ;;  %v8704_v57 = vor.u32 %v10223_v61, %v8703_v51  ;;  %v8395_v39 = vld [vmem:[#allocation12 + $0x3f0] sm:$0xf]  ;;  %v10202_v50 = vld [vmem:[#allocation12 + $0x5c8] sm:$0xf0] }
 0x238   :  { %v2550_v41 = vpop.f32.mrf.mxu2  ;;  %v2563_v54 = vpop.f32.mrf.mxu3  ;;  %v2894_v7 = vmax.f32 %v2866_v37, %v2874_v52  ;;  %v10342_v37 = vld [vmem:[#allocation12 + $0xa28] sm:$0xf0]  ;;  %v8619_v49 = vld [vmem:[#allocation12 + $0x5b0] sm:$0xf]  ;;  %v8927_v61 = vld [vmem:[#allocation12 + $0x818] sm:$0xf] }
 0x239   :  { %v9180_v51 = vor.u32 %v10342_v37, %v9179_v30  ;;  %v10279_v53 = vld [vmem:[#allocation12 + $0x830] sm:$0xf0]  ;;  %v10272_v12 = vld [vmem:[#allocation12 + $0x7f8] sm:$0xf0]  ;;  %v8563_v10 = vld [vmem:[#allocation12 + $0x540] sm:$0xf] }
 0x23a   :  { %5729 = vmatpush.bf16.msra.mxu2 %v8004_v63  ;;  %5742 = vmatpush.bf16.msra.mxu3 %v8228_v2  ;;  %v10160_v63 = vld [vmem:[#allocation12 + $0x478] sm:$0xf0]  ;;  %v8675_v2 = vld [vmem:[#allocation12 + $0x620] sm:$0xf]  ;;  %v10890_v32 = vpack.c.bf16 %v2894_v7, %v2894_v7  ;;  %v9067_v30 = vld [vmem:[#allocation12 + $0x930] sm:$0xf] }
 0x23b   :  { %2780 = vmatpush.bf16.msra.mxu0 %v7408_v16  ;;  %2793 = vmatpush.bf16.msra.mxu1 %v7664_v17  ;;  %v2822_v16 = vperm.slane %v2820_v55, 0  ;;  %v2825_v17 = vperm.slane %v2823_v0, 0  ;;  %v8452_v58 = vor.u32 %v10160_v63, %v8451_v60  ;;  %v8676_v22 = vor.u32 %v10216_v3, %v8675_v2  ;;  %v8899_v63 = vld [vmem:[#allocation12 + $0x7e0] sm:$0xf]  ;;  %v10328_v2 = vld [vmem:[#allocation12 + $0x9b8] sm:$0xf0] }
 0x23c   :  { %v8620_v0 = vor.u32 %v10202_v50, %v8619_v49  ;;  %v10314_v37 = vld [vmem:[#allocation12 + $0x948] sm:$0xf0] }
 0x23d   :  { %v2574_v8 = vpop.f32.mrf.mxu0  ;;  %v2587_v9 = vpop.f32.mrf.mxu1 }
 0x23e   :  { %5730 = vmatpush.bf16.msra.mxu2 %v7976_v18  ;;  %5743 = vmatpush.bf16.msra.mxu3 %v8200_v21  ;;  %v2575_v15 = vadd.f32 %v2574_v8, %v2562_v13  ;;  %v8116_v18 = vor.u32 %v10076_v44, %v8115_v56  ;;  %v2895_v21 = vmax.f32 %v2867_v31, %v2875_v62  ;;  %v9123_v13 = vld [vmem:[#allocation12 + $0x9a0] sm:$0xf] }
 0x23f   :  { %5752 = vmatpush.bf16.msrb.mxu0 %v8536_v45  ;;  %5765 = vmatpush.bf16.msrb.mxu1 %v8760_v19  ;;  %v8647_v19 = vld [vmem:[#allocation12 + $0x5e8] sm:$0xf]  ;;  %v8928_v44 = vor.u32 %v10279_v53, %v8927_v61  ;;  %v10244_v61 = vld [vmem:[#allocation12 + $0x718] sm:$0xf0]  ;;  %v10066_v53 = vld [vmem:[#allocation12 + $0x18c] sm:$0xf] }
 0x240   :  { %2781 = vmatmul.bf16.vlgmr.msra.gmra.mxu0 %v10816_v46  ;;  %2794 = vmatmul.bf16.vlgmr.msra.gmra.mxu1 %v10818_v47  ;;  %v10020_v46 = vld [vmem:[#allocation12 + $0x18] sm:$0xf0]  ;;  %v8480_v47 = vor.u32 %v10167_v40, %v8479_v48  ;;  %v2588_v45 = vadd.f32 %v2587_v9, %v2575_v15  ;;  %v10892_v35 = vpack.c.bf16 %v2895_v21, %v2895_v21  ;;  %v8339_v9 = vld [vmem:[#allocation12 + $0x380] sm:$0xf]  ;;  %v10265_v21 = vld [vmem:[#allocation12 + $0x7c0] sm:$0xf0] }
 0x241   :  { %v7892_v36 = vor.u32 %v10020_v46, %v7891_v1  ;;  %v8648_v38 = vor.u32 %v10209_v26, %v8647_v19  ;;  %v8956_v40 = vor.u32 %v10286_v29, %v8955_v28  ;;  %v8367_v1 = vld [vmem:[#allocation12 + $0x3b8] sm:$0xf]  ;;  %v10139_v46 = vld [vmem:[#allocation12 + $0x3d0] sm:$0xf0]  ;;  %v10188_v15 = vld [vmem:[#allocation12 + $0x558] sm:$0xf0] }
 0x242   :  { %5731 = vmatpush.bf16.msra.mxu2 %v7948_v33  ;;  %5744 = vmatpush.bf16.msra.mxu3 %v8172_v34  ;;  %v2800_v31 = vpack.c.bf16 %v2588_v45, %v2536_v25  ;;  %v2848_v33 = vunpack.c.l.bf16 %v2822_v16  ;;  %v2849_v34 = vunpack.c.l.bf16 %v2825_v17  ;;  %v8368_v7 = vor.u32 %v10139_v46, %v8367_v1  ;;  %v8843_v28 = vld [vmem:[#allocation12 + $0x770] sm:$0xf]  ;;  %v10258_v29 = vld [vmem:[#allocation12 + $0x788] sm:$0xf0] }
 0x243   :  { %5753 = vmatpush.bf16.msrb.mxu0 %v8508_v42  ;;  %5766 = vmatpush.bf16.msrb.mxu1 %v8732_v43  ;;  %v10146_v42 = vld [vmem:[#allocation12 + $0x408] sm:$0xf0]  ;;  %v8900_v16 = vor.u32 %v10272_v12, %v8899_v63  ;;  %v9124_v17 = vor.u32 %v10328_v2, %v9123_v13  ;;  %v8564_v45 = vor.u32 %v10188_v15, %v8563_v10  ;;  %v10052_v13 = vld [vmem:[#allocation12 + $0x11c] sm:$0xf]  ;;  %v8033_v2 = vld [vmem:[#allocation12 + $0x134] sm:$0xf0] }
 0x244   :  { %v2840_v43 = vunpack.c.l.bf16 %v2800_v31  ;;  %v2841_v48 = vunpack.c.h.bf16 %v2800_v31  ;;  %v8396_v55 = vor.u32 %v10146_v42, %v8395_v39  ;;  %v10251_v39 = vld [vmem:[#allocation12 + $0x750] sm:$0xf0]  ;;  %v9039_v42 = vld [vmem:[#allocation12 + $0x8f8] sm:$0xf]  ;;  %v10045_v10 = vld [vmem:[#allocation12 + $0xe4] sm:$0xf] }
 0x245   :  { %v2576_v52 = vpop.f32.mrf.mxu0  ;;  %v2589_v62 = vpop.f32.mrf.mxu1  ;;  %v8229_v15 = vld [vmem:[#allocation12 + $0x2bc] sm:$0xf0] }
 0x246   :  { %5732 = vmatpush.bf16.msra.mxu2 %v7920_v4  ;;  %5745 = vmatpush.bf16.msra.mxu3 %v8144_v5  ;;  %v9151_v4 = vld [vmem:[#allocation12 + $0x9d8] sm:$0xf]  ;;  %v10335_v5 = vld [vmem:[#allocation12 + $0x9f0] sm:$0xf0]  ;;  %v2856_v41 = vadd.f32 %v2848_v33, %v2840_v43  ;;  %v2857_v54 = vadd.f32 %v2849_v34, %v2841_v48  ;;  %v8844_v34 = vor.u32 %v10258_v29, %v8843_v28  ;;  %v9011_v52 = vld [vmem:[#allocation12 + $0x8c0] sm:$0xf] }
 0x247   :  { %5754 = vmatpush.bf16.msrb.mxu0 %v8480_v47  ;;  %5767 = vmatpush.bf16.msrb.mxu1 %v8704_v57  ;;  %v8591_v47 = vld [vmem:[#allocation12 + $0x578] sm:$0xf]  ;;  %v10195_v57 = vld [vmem:[#allocation12 + $0x590] sm:$0xf0]  ;;  %v9152_v60 = vor.u32 %v10335_v5, %v9151_v4  ;;  %v10300_v62 = vld [vmem:[#allocation12 + $0x8d8] sm:$0xf0] }
 0x248   :  { %v2863_v56 = vpack.c.bf16 %v2857_v54, %v2856_v41  ;;  %v8592_v8 = vor.u32 %v10195_v57, %v8591_v47  ;;  %v10307_v43 = vld [vmem:[#allocation12 + $0x910] sm:$0xf0]  ;;  %v8089_v4 = vld [vmem:[#allocation12 + $0x1a4] sm:$0xf0]  ;;  %v10122_v5 = vld [vmem:[#allocation12 + $0x34c] sm:$0xf]  ;;  %v9012_v1 = vor.u32 %v10300_v62, %v9011_v52 }
 0x249   :  { %v8313_v41 = vld [vmem:[#allocation12 + $0x364] sm:$0xf0]  ;;  %v8092_v46 = vor.u32 %v10066_v53, %v8089_v4  ;;  %v10059_v47 = vld [vmem:[#allocation12 + $0x154] sm:$0xf]  ;;  %v8061_v57 = vld [vmem:[#allocation12 + $0x16c] sm:$0xf0] }
 0x24a   :  { %5733 = vmatpush.bf16.msra.mxu2 %v7892_v36  ;;  %5746 = vmatpush.bf16.msra.mxu3 %v8116_v18  ;;  %v2868_v3 = vunpack.c.l.bf16 %v2863_v56  ;;  %v2869_v6 = vunpack.c.h.bf16 %v2863_v56  ;;  %v10132_v36 = vld [vmem:[#allocation12 + $0x398] sm:$0xf0]  ;;  %v8871_v18 = vld [vmem:[#allocation12 + $0x7a8] sm:$0xf]  ;;  %v8316_v56 = vor.u32 %v10122_v5, %v8313_v41  ;;  %v8064_v63 = vor.u32 %v10059_v47, %v8061_v57  ;;  %v10405_v28 = vld [vmem:[#allocation12 + $0xc20] sm:$0xf0] }
 0x24b   :  { %5755 = vmatpush.bf16.msrb.mxu0 %v8452_v58  ;;  %5768 = vmatpush.bf16.msrb.mxu1 %v8676_v22  ;;  %v9095_v58 = vld [vmem:[#allocation12 + $0x968] sm:$0xf]  ;;  %v10321_v22 = vld [vmem:[#allocation12 + $0x980] sm:$0xf0]  ;;  %v8340_v25 = vor.u32 %v10132_v36, %v8339_v9  ;;  %v8036_v9 = vor.u32 %v10052_v13, %v8033_v2  ;;  %v7921_v52 = vld [vmem:[#allocation12 + $0x54] sm:$0xf0] }
 0x24c   :  { %v2876_v11 = vmul.f32 0.20019531, %v2868_v3  ;;  %v2877_v14 = vmul.f32 0.20019531, %v2869_v6  ;;  %v10080_v62 = vld [vmem:[#allocation12 + $0x1fc] sm:$0xf]  ;;  %v8145_v53 = vld [vmem:[#allocation12 + $0x214] sm:$0xf0] }
 0x24d   :  { %5734 = vmatmul.bf16.vlgmr.msra.gmra.mxu2 %v10890_v32  ;;  %5747 = vmatmul.bf16.vlgmr.msra.gmra.mxu3 %v10892_v35  ;;  %v2810_v5 = vld [vmem:[#allocation1 + $0x24] sm:$0xff]  ;;  %v2811_v41 = vld [vmem:[#allocation1 + $0x2d] sm:$0xff] }
 0x24e   :  { %5778 = vmatpush.bf16.msrb.mxu2 %v8984_v20  ;;  %5791 = vmatpush.bf16.msrb.mxu3 %v9208_v27  ;;  %v2896_v23 = vmax.f32 %v2868_v3, %v2876_v11  ;;  %v2897_v24 = vmax.f32 %v2869_v6, %v2877_v14  ;;  %v8872_v20 = vor.u32 %v10265_v21, %v8871_v18  ;;  %v10108_v3 = vld [vmem:[#allocation12 + $0x2dc] sm:$0xf]  ;;  %v8257_v6 = vld [vmem:[#allocation12 + $0x2f4] sm:$0xf0]  ;;  %v8005_v11 = vld [vmem:[#allocation12 + $0xfc] sm:$0xf0] }
 0x24f   :  { %5756 = vmatpush.bf16.msrb.mxu0 %v8424_v59  ;;  %5769 = vmatpush.bf16.msrb.mxu1 %v8648_v38  ;;  %v9096_v27 = vor.u32 %v10321_v22, %v9095_v58  ;;  %v9068_v59 = vor.u32 %v10314_v37, %v9067_v30  ;;  %v8815_v38 = vld [vmem:[#allocation12 + $0x738] sm:$0xf]  ;;  %v8260_v36 = vor.u32 %v10108_v3, %v8257_v6  ;;  %v10101_v14 = vld [vmem:[#allocation12 + $0x2a4] sm:$0xf]  ;;  %v10038_v18 = vld [vmem:[#allocation12 + $0xac] sm:$0xf] }
 0x250   :  { %v10896_v19 = vpop.f32.mrf.mxu2  ;;  %v10898_v26 = vpop.f32.mrf.mxu3  ;;  %v10900_v31 = vpack.c.bf16 %v2896_v23, %v2896_v23  ;;  %v10902_v33 = vpack.c.bf16 %v2897_v24, %v2897_v24  ;;  %v8816_v50 = vor.u32 %v10251_v39, %v8815_v38  ;;  %v7977_v21 = vld [vmem:[#allocation12 + $0xc4] sm:$0xf0]  ;;  %v10094_v58 = vld [vmem:[#allocation12 + $0x26c] sm:$0xf]  ;;  %v10031_v23 = vld [vmem:[#allocation12 + $0x74] sm:$0xf]  ;;  %v2826_v13 = vpack.i.b16 %v2810_v5, %v2810_v5 }
 0x251   :  { %v8201_v22 = vld [vmem:[#allocation12 + $0x284] sm:$0xf0]  ;;  %v7949_v24 = vld [vmem:[#allocation12 + $0x8c] sm:$0xf0]  ;;  %v10461_v38 = vld [vmem:[#allocation12 + $0xde0] sm:$0xf0]  ;;  %v2829_v2 = vpack.i.b16 %v2811_v41, %v2811_v41 }
 0x252   :  { %5779 = vmatpush.bf16.msrb.mxu2 %v8956_v40  ;;  %5792 = vmatpush.bf16.msrb.mxu3 %v9180_v51  ;;  %v9040_v40 = vor.u32 %v10307_v43, %v9039_v42  ;;  %v8787_v51 = vld [vmem:[#allocation12 + $0x700] sm:$0xf]  ;;  %v8173_v37 = vld [vmem:[#allocation12 + $0x24c] sm:$0xf0]  ;;  %v10398_v43 = vld [vmem:[#allocation12 + $0xbe8] sm:$0xf0] }
 0x253   :  { %5757 = vmatpush.bf16.msrb.mxu0 %v8396_v55  ;;  %5770 = vmatpush.bf16.msrb.mxu1 %v8620_v0  ;;  %v8788_v0 = vor.u32 %v10244_v61, %v8787_v51  ;;  %v9403_v42 = vld [vmem:[#allocation12 + $0xbd0] sm:$0xf]  ;;  %v10454_v61 = vld [vmem:[#allocation12 + $0xda8] sm:$0xf0]  ;;  %v9375_v47 = vld [vmem:[#allocation12 + $0xb98] sm:$0xf] }
 0x254   :  { %v9404_v51 = vor.u32 %v10398_v43, %v9403_v42  ;;  %v10391_v57 = vld [vmem:[#allocation12 + $0xbb0] sm:$0xf0]  ;;  %v10073_v3 = vld [vmem:[#allocation12 + $0x1c4] sm:$0xf]  ;;  %v8117_v6 = vld [vmem:[#allocation12 + $0x1dc] sm:$0xf0] }
 0x255   :  { %v10370_v43 = vld [vmem:[#allocation12 + $0xb08] sm:$0xf0] }
 0x256   :  { %5780 = vmatpush.bf16.msrb.mxu2 %v8928_v44  ;;  %5793 = vmatpush.bf16.msrb.mxu3 %v9152_v60  ;;  %v10115_v44 = vld [vmem:[#allocation12 + $0x314] sm:$0xf]  ;;  %v8285_v60 = vld [vmem:[#allocation12 + $0x32c] sm:$0xf0] }
 0x257   :  { %5758 = vmatpush.bf16.msrb.mxu0 %v8368_v7  ;;  %5771 = vmatpush.bf16.msrb.mxu1 %v8592_v8  ;;  %v8288_v12 = vor.u32 %v10115_v44, %v8285_v60  ;;  %v9599_v44 = vld [vmem:[#allocation12 + $0xd58] sm:$0xf]  ;;  %v2614_v60 = vadd.f32 %v10898_v26, %v10896_v19  ;;  %v8120_v19 = vor.u32 %v10073_v3, %v8117_v6  ;;  %v9347_v26 = vld [vmem:[#allocation12 + $0xb60] sm:$0xf] }
 0x258   :  { %v2602_v48 = vpop.f32.mrf.mxu2  ;;  %v2615_v49 = vpop.f32.mrf.mxu3  ;;  %v9459_v3 = vld [vmem:[#allocation12 + $0xc40] sm:$0xf] }
 0x259   :  { %v9627_v48 = vld [vmem:[#allocation12 + $0xd90] sm:$0xf]  ;;  %v7952_v49 = vor.u32 %v10031_v23, %v7949_v24  ;;  %v10440_v23 = vld [vmem:[#allocation12 + $0xd38] sm:$0xf0] }
 0x25a   :  { %5781 = vmatpush.bf16.msrb.mxu2 %v8900_v16  ;;  %5794 = vmatpush.bf16.msrb.mxu3 %v9124_v17  ;;  %v8008_v16 = vor.u32 %v10045_v10, %v8005_v11  ;;  %v8232_v17 = vor.u32 %v10101_v14, %v8229_v15  ;;  %v9628_v4 = vor.u32 %v10454_v61, %v9627_v48  ;;  %v10426_v48 = vld [vmem:[#allocation12 + $0xcc8] sm:$0xf0] }
 0x25b   :  { %5759 = vmatpush.bf16.msrb.mxu0 %v8340_v25  ;;  %5772 = vmatpush.bf16.msrb.mxu1 %v8564_v45  ;;  %v7980_v25 = vor.u32 %v10038_v18, %v7977_v21  ;;  %v8204_v45 = vor.u32 %v10094_v58, %v8201_v22  ;;  %v2828_v21 = vperm.slane %v2826_v13, 0  ;;  %v2831_v58 = vperm.slane %v2829_v2, 0  ;;  %v9235_v13 = vld [vmem:[#allocation12 + $0xa80] sm:$0xf]  ;;  %v10356_v2 = vld [vmem:[#allocation12 + $0xa98] sm:$0xf0] }
 0x25d   :  { %v10906_v54 = vpop.f32.mrf.mxu0  ;;  %v10908_v55 = vpop.f32.mrf.mxu1 }
 0x25e   :  { %5782 = vmatpush.bf16.msrb.mxu2 %v8872_v20  ;;  %5795 = vmatpush.bf16.msrb.mxu3 %v9096_v27  ;;  %v10087_v20 = vld [vmem:[#allocation12 + $0x234] sm:$0xf]  ;;  %v9431_v27 = vld [vmem:[#allocation12 + $0xc08] sm:$0xf] }
 0x25f   :  { %5760 = vmatmul.bf16.vlgmr.msrb.gmra.mxu0 %v10900_v31  ;;  %5773 = vmatmul.bf16.vlgmr.msrb.gmra.mxu1 %v10902_v33 }
 0x262   :  { %5783 = vmatpush.bf16.msrb.mxu2 %v8844_v34  ;;  %5796 = vmatpush.bf16.msrb.mxu3 %v9068_v59  ;;  %v9432_v34 = vor.u32 %v10405_v28, %v9431_v27  ;;  %v9655_v59 = vld [vmem:[#allocation12 + $0xdc8] sm:$0xf] }
 0x263   :  { %v9656_v39 = vor.u32 %v10461_v38, %v9655_v59  ;;  %v9543_v27 = vld [vmem:[#allocation12 + $0xce8] sm:$0xf]  ;;  %v9291_v38 = vld [vmem:[#allocation12 + $0xaf0] sm:$0xf] }
 0x264   :  { %5804 = vmatpush.bf16.msra.mxu0 %v9432_v34  ;;  %v10433_v34 = vld [vmem:[#allocation12 + $0xd00] sm:$0xf0] }
 0x265   :  { %v2628_v7 = vpop.f32.mrf.mxu0  ;;  %v2641_v8 = vpop.f32.mrf.mxu1  ;;  %5817 = vmatpush.bf16.msra.mxu1 %v9656_v39  ;;  %v9544_v59 = vor.u32 %v10433_v34, %v9543_v27  ;;  %v8929_v34 = vld [vmem:[#allocation12 + $0x834] sm:$0xf0] }
 0x266   :  { %5784 = vmatpush.bf16.msrb.mxu2 %v8816_v50  ;;  %5797 = vmatpush.bf16.msrb.mxu3 %v9040_v40  ;;  %v8176_v50 = vor.u32 %v10087_v20, %v8173_v37  ;;  %v10024_v40 = vld [vmem:[#allocation12 + $0x3c] sm:$0xf]  ;;  %v9376_v7 = vor.u32 %v10391_v57, %v9375_v47  ;;  %v10447_v8 = vld [vmem:[#allocation12 + $0xd70] sm:$0xf0]  ;;  %v10377_v20 = vld [vmem:[#allocation12 + $0xb40] sm:$0xf0] }
 0x267   :  { %v10290_v47 = vld [vmem:[#allocation12 + $0x88c] sm:$0xf]  ;;  %v8985_v57 = vld [vmem:[#allocation12 + $0x8a4] sm:$0xf0] }
 0x268   :  { %5805 = vmatpush.bf16.msra.mxu0 %v9404_v51 }
 0x269   :  { %5818 = vmatpush.bf16.msra.mxu1 %v9628_v4  ;;  %v9487_v4 = vld [vmem:[#allocation12 + $0xc78] sm:$0xf] }
 0x26a   :  { %5785 = vmatpush.bf16.msrb.mxu2 %v8788_v0  ;;  %5798 = vmatpush.bf16.msrb.mxu3 %v9012_v1  ;;  %v10017_v0 = vld [vmem:[#allocation12 + $0x4] sm:$0xf]  ;;  %v7893_v1 = vld [vmem:[#allocation12 + $0x1c] sm:$0xf0] }
 0x26b   :  { %v7896_v15 = vor.u32 %v10017_v0, %v7893_v1  ;;  %v10419_v0 = vld [vmem:[#allocation12 + $0xc90] sm:$0xf0] }
 0x26c   :  { %5806 = vmatpush.bf16.msra.mxu0 %v9376_v7 }
 0x26e   :  { %5830 = vmatpush.bf16.msra.mxu2 %v8092_v46  ;;  %5843 = vmatpush.bf16.msra.mxu3 %v8316_v56  ;;  %v7924_v46 = vor.u32 %v10024_v40, %v7921_v52  ;;  %v8148_v56 = vor.u32 %v10080_v62, %v8145_v53  ;;  %v9292_v40 = vor.u32 %v10370_v43, %v9291_v38  ;;  %v9263_v62 = vld [vmem:[#allocation12 + $0xab8] sm:$0xf]  ;;  %v10363_v53 = vld [vmem:[#allocation12 + $0xad0] sm:$0xf0]  ;;  %v10164_v43 = vld [vmem:[#allocation12 + $0x49c] sm:$0xf] }
 0x26f   :  { %v9264_v41 = vor.u32 %v10363_v53, %v9263_v62  ;;  %v9153_v38 = vld [vmem:[#allocation12 + $0x9f4] sm:$0xf0]  ;;  %v8901_v62 = vld [vmem:[#allocation12 + $0x7fc] sm:$0xf0]  ;;  %v10325_v53 = vld [vmem:[#allocation12 + $0x9a4] sm:$0xf] }
 0x270   :  { %v2652_v29 = vpop.f32.mrf.mxu2  ;;  %v2665_v30 = vpop.f32.mrf.mxu3 }
 0x271   :  { %v2666_v10 = vadd.f32 %v2665_v30, %v2652_v29  ;;  %v2850_v29 = vunpack.c.l.bf16 %v2828_v21  ;;  %v2851_v30 = vunpack.c.l.bf16 %v2831_v58 }
 0x272   :  { %5831 = vmatpush.bf16.msra.mxu2 %v8064_v63  ;;  %5844 = vmatpush.bf16.msra.mxu3 %v8288_v12 }
 0x276   :  { %5832 = vmatpush.bf16.msra.mxu2 %v8036_v9  ;;  %5845 = vmatpush.bf16.msra.mxu3 %v8260_v36  ;;  %v9600_v9 = vor.u32 %v10447_v8, %v9599_v44  ;;  %v2627_v36 = vadd.f32 %v10906_v54, %v2614_v60  ;;  %v10283_v8 = vld [vmem:[#allocation12 + $0x854] sm:$0xf] }
 0x278   :  { %v2654_v63 = vpop.f32.mrf.mxu2  ;;  %v2667_v12 = vpop.f32.mrf.mxu3  ;;  %5819 = vmatpush.bf16.msra.mxu1 %v9600_v9  ;;  %v2640_v54 = vadd.f32 %v10908_v55, %v2627_v36  ;;  %v9515_v55 = vld [vmem:[#allocation12 + $0xcb0] sm:$0xf]  ;;  %v9236_v36 = vor.u32 %v10356_v2, %v9235_v13  ;;  %v10318_v13 = vld [vmem:[#allocation12 + $0x96c] sm:$0xf]  ;;  %v9097_v2 = vld [vmem:[#allocation12 + $0x984] sm:$0xf0] }
 0x279   :  { %v9516_v52 = vor.u32 %v10426_v48, %v9515_v55  ;;  %v10346_v63 = vld [vmem:[#allocation12 + $0xa4c] sm:$0xf]  ;;  %v9209_v12 = vld [vmem:[#allocation12 + $0xa64] sm:$0xf0]  ;;  %v8957_v9 = vld [vmem:[#allocation12 + $0x86c] sm:$0xf0] }
 0x27a   :  { %5833 = vmatpush.bf16.msra.mxu2 %v8008_v16  ;;  %5846 = vmatpush.bf16.msra.mxu3 %v8232_v17  ;;  %v10384_v16 = vld [vmem:[#allocation12 + $0xb78] sm:$0xf0]  ;;  %v9571_v17 = vld [vmem:[#allocation12 + $0xd20] sm:$0xf]  ;;  %v8960_v27 = vor.u32 %v10283_v8, %v8957_v9  ;;  %v8481_v55 = vld [vmem:[#allocation12 + $0x4b4] sm:$0xf0] }
 0x27b   :  { %v9348_v22 = vor.u32 %v10384_v16, %v9347_v26  ;;  %v9572_v24 = vor.u32 %v10440_v23, %v9571_v17  ;;  %v10178_v26 = vld [vmem:[#allocation12 + $0x50c] sm:$0xf]  ;;  %v10220_v48 = vld [vmem:[#allocation12 + $0x65c] sm:$0xf]  ;;  %v8425_v8 = vld [vmem:[#allocation12 + $0x444] sm:$0xf0] }
 0x27c   :  { %v10234_v23 = vld [vmem:[#allocation12 + $0x6cc] sm:$0xf] }
 0x27d   :  { %v2678_v11 = vpop.f32.mrf.mxu0  ;;  %v2691_v14 = vpop.f32.mrf.mxu1  ;;  %5807 = vmatpush.bf16.msra.mxu0 %v9348_v22  ;;  %5820 = vmatpush.bf16.msra.mxu1 %v9572_v24  ;;  %v8537_v22 = vld [vmem:[#allocation12 + $0x524] sm:$0xf0] }
 0x27e   :  { %5834 = vmatpush.bf16.msra.mxu2 %v7980_v25  ;;  %5847 = vmatpush.bf16.msra.mxu3 %v8204_v45  ;;  %v2679_v18 = vadd.f32 %v2678_v11, %v2666_v10  ;;  %v9319_v45 = vld [vmem:[#allocation12 + $0xb28] sm:$0xf]  ;;  %v10412_v10 = vld [vmem:[#allocation12 + $0xc58] sm:$0xf0]  ;;  %v8988_v11 = vor.u32 %v10290_v47, %v8985_v57 }
 0x27f   :  { %v9320_v37 = vor.u32 %v10377_v20, %v9319_v45  ;;  %v9460_v58 = vor.u32 %v10412_v10, %v9459_v3  ;;  %v8761_v24 = vld [vmem:[#allocation12 + $0x6e4] sm:$0xf0]  ;;  %v10171_v45 = vld [vmem:[#allocation12 + $0x4d4] sm:$0xf]  ;;  %v8509_v20 = vld [vmem:[#allocation12 + $0x4ec] sm:$0xf0] }
 0x280   :  { %v2692_v25 = vadd.f32 %v2691_v14, %v2679_v18  ;;  %v9212_v14 = vor.u32 %v10346_v63, %v9209_v12  ;;  %v8677_v63 = vld [vmem:[#allocation12 + $0x63c] sm:$0xf0]  ;;  %v8873_v12 = vld [vmem:[#allocation12 + $0x7c4] sm:$0xf0]  ;;  %v10255_v10 = vld [vmem:[#allocation12 + $0x774] sm:$0xf] }
 0x281   :  { %5808 = vmatpush.bf16.msra.mxu0 %v9320_v37  ;;  %5821 = vmatpush.bf16.msra.mxu1 %v9544_v59  ;;  %v8733_v37 = vld [vmem:[#allocation12 + $0x6ac] sm:$0xf0]  ;;  %v10332_v59 = vld [vmem:[#allocation12 + $0x9dc] sm:$0xf] }
 0x282   :  { %5835 = vmatpush.bf16.msra.mxu2 %v7952_v49  ;;  %5848 = vmatpush.bf16.msra.mxu3 %v8176_v50  ;;  %v2801_v28 = vpack.c.bf16 %v2692_v25, %v2640_v54  ;;  %v8540_v54 = vor.u32 %v10178_v26, %v8537_v22  ;;  %v8764_v25 = vor.u32 %v10234_v23, %v8761_v24  ;;  %v9069_v26 = vld [vmem:[#allocation12 + $0x94c] sm:$0xf0]  ;;  %v10143_v23 = vld [vmem:[#allocation12 + $0x3f4] sm:$0xf] }
 0x283   :  { %v8397_v24 = vld [vmem:[#allocation12 + $0x40c] sm:$0xf0] }
 0x284   :  { %v2842_v39 = vunpack.c.l.bf16 %v2801_v28  ;;  %v2843_v42 = vunpack.c.h.bf16 %v2801_v28 }
 0x285   :  { %v2680_v49 = vpop.f32.mrf.mxu0  ;;  %v2693_v50 = vpop.f32.mrf.mxu1  ;;  %5809 = vmatpush.bf16.msra.mxu0 %v9292_v40  ;;  %5822 = vmatpush.bf16.msra.mxu1 %v9516_v52  ;;  %v10269_v40 = vld [vmem:[#allocation12 + $0x7e4] sm:$0xf] }
 0x286   :  { %5836 = vmatpush.bf16.msra.mxu2 %v7924_v46  ;;  %5849 = vmatpush.bf16.msra.mxu3 %v8148_v56  ;;  %v2858_v51 = vadd.f32 %v2850_v29, %v2842_v39  ;;  %v2859_v61 = vadd.f32 %v2851_v30, %v2843_v42  ;;  %v9488_v56 = vor.u32 %v10419_v0, %v9487_v4  ;;  %v10276_v29 = vld [vmem:[#allocation12 + $0x81c] sm:$0xf]  ;;  %v10227_v30 = vld [vmem:[#allocation12 + $0x694] sm:$0xf]  ;;  %v9125_v4 = vld [vmem:[#allocation12 + $0x9bc] sm:$0xf0] }
 0x287   :  { %v8512_v39 = vor.u32 %v10171_v45, %v8509_v20  ;;  %v8736_v42 = vor.u32 %v10227_v30, %v8733_v37  ;;  %v8932_v49 = vor.u32 %v10276_v29, %v8929_v34  ;;  %v9156_v50 = vor.u32 %v10332_v59, %v9153_v38  ;;  %v10157_v0 = vld [vmem:[#allocation12 + $0x464] sm:$0xf]  ;;  %v8621_v29 = vld [vmem:[#allocation12 + $0x5cc] sm:$0xf0]  ;;  %v8817_v30 = vld [vmem:[#allocation12 + $0x754] sm:$0xf0] }
 0x288   :  { %v2864_v5 = vpack.c.bf16 %v2859_v61, %v2858_v51  ;;  %v8705_v51 = vld [vmem:[#allocation12 + $0x674] sm:$0xf0]  ;;  %v8904_v57 = vor.u32 %v10269_v40, %v8901_v62  ;;  %v10304_v37 = vld [vmem:[#allocation12 + $0x8fc] sm:$0xf]  ;;  %v8400_v59 = vor.u32 %v10143_v23, %v8397_v24 }
 0x289   :  { %5810 = vmatpush.bf16.msra.mxu0 %v9264_v41  ;;  %5823 = vmatpush.bf16.msra.mxu1 %v9488_v56  ;;  %v8708_v41 = vor.u32 %v10220_v48, %v8705_v51  ;;  %v9041_v34 = vld [vmem:[#allocation12 + $0x914] sm:$0xf0]  ;;  %v10297_v51 = vld [vmem:[#allocation12 + $0x8c4] sm:$0xf] }
 0x28a   :  { %5837 = vmatpush.bf16.msra.mxu2 %v7896_v15  ;;  %5850 = vmatpush.bf16.msra.mxu3 %v8120_v19  ;;  %v2870_v1 = vunpack.c.l.bf16 %v2864_v5  ;;  %v2871_v46 = vunpack.c.h.bf16 %v2864_v5  ;;  %v10339_v15 = vld [vmem:[#allocation12 + $0xa14] sm:$0xf]  ;;  %v9181_v19 = vld [vmem:[#allocation12 + $0xa2c] sm:$0xf0]  ;;  %v8484_v5 = vor.u32 %v10164_v43, %v8481_v55  ;;  %v10192_v43 = vld [vmem:[#allocation12 + $0x57c] sm:$0xf]  ;;  %v9044_v48 = vor.u32 %v10304_v37, %v9041_v34 }
 0x28b   :  { %v9184_v28 = vor.u32 %v10339_v15, %v9181_v19  ;;  %v8845_v15 = vld [vmem:[#allocation12 + $0x78c] sm:$0xf0]  ;;  %v10311_v19 = vld [vmem:[#allocation12 + $0x934] sm:$0xf]  ;;  %v8593_v40 = vld [vmem:[#allocation12 + $0x594] sm:$0xf0] }
 0x28c   :  { %v2878_v44 = vmul.f32 0.20019531, %v2870_v1  ;;  %v2879_v60 = vmul.f32 0.20019531, %v2871_v46  ;;  %v8848_v20 = vor.u32 %v10255_v10, %v8845_v15  ;;  %v10056_v15 = vld [vmem:[#allocation12 + $0x138] sm:$0xf0] }
 0x28d   :  { %5811 = vmatpush.bf16.msra.mxu0 %v9236_v36  ;;  %5824 = vmatpush.bf16.msra.mxu1 %v9460_v58  ;;  %v9100_v36 = vor.u32 %v10318_v13, %v9097_v2  ;;  %v8067_v13 = vld [vmem:[#allocation12 + $0x158] sm:$0xf]  ;;  %v10063_v2 = vld [vmem:[#allocation12 + $0x170] sm:$0xf0] }
 0x28e   :  { %v2898_v6 = vmax.f32 %v2870_v1, %v2878_v44  ;;  %v2899_v7 = vmax.f32 %v2871_v46, %v2879_v60  ;;  %v8453_v1 = vld [vmem:[#allocation12 + $0x47c] sm:$0xf0]  ;;  %v10213_v46 = vld [vmem:[#allocation12 + $0x624] sm:$0xf]  ;;  %v9128_v44 = vor.u32 %v10325_v53, %v9125_v4  ;;  %v10262_v60 = vld [vmem:[#allocation12 + $0x7ac] sm:$0xf]  ;;  %v8068_v10 = vor.u32 %v10063_v2, %v8067_v13 }
 0x28f   :  { %v8456_v3 = vor.u32 %v10157_v0, %v8453_v1  ;;  %v8876_v9 = vor.u32 %v10262_v60, %v8873_v12  ;;  %v10070_v53 = vld [vmem:[#allocation12 + $0x1a8] sm:$0xf0]  ;;  %v8319_v4 = vld [vmem:[#allocation12 + $0x350] sm:$0xf]  ;;  %v10129_v0 = vld [vmem:[#allocation12 + $0x384] sm:$0xf] }
 0x290   :  { %v10914_v16 = vpack.c.bf16 %v2898_v6, %v2898_v6  ;;  %v10916_v17 = vpack.c.bf16 %v2899_v7, %v2899_v7  ;;  %v10918_v18 = vpop.f32.mrf.mxu2  ;;  %v10920_v21 = vpop.f32.mrf.mxu3  ;;  %v8680_v6 = vor.u32 %v10213_v46, %v8677_v63  ;;  %v10150_v7 = vld [vmem:[#allocation12 + $0x42c] sm:$0xf]  ;;  %v8341_v1 = vld [vmem:[#allocation12 + $0x39c] sm:$0xf0]  ;;  %v10185_v46 = vld [vmem:[#allocation12 + $0x544] sm:$0xf] }
 0x291   :  { %5856 = vmatpush.bf16.msrb.mxu0 %v8540_v54  ;;  %5869 = vmatpush.bf16.msrb.mxu1 %v8764_v25  ;;  %v8428_v58 = vor.u32 %v10150_v7, %v8425_v8  ;;  %v10199_v54 = vld [vmem:[#allocation12 + $0x5b4] sm:$0xf]  ;;  %v8565_v60 = vld [vmem:[#allocation12 + $0x55c] sm:$0xf0]  ;;  %v8344_v7 = vor.u32 %v10129_v0, %v8341_v1  ;;  %v10028_v13 = vld [vmem:[#allocation12 + $0x58] sm:$0xf0] }
 0x292   :  { %5786 = vmatmul.bf16.vlgmr.msrb.gmra.mxu2 %v10914_v16  ;;  %5799 = vmatmul.bf16.vlgmr.msrb.gmra.mxu3 %v10916_v17  ;;  %v8624_v38 = vor.u32 %v10199_v54, %v8621_v29  ;;  %v8568_v8 = vor.u32 %v10185_v46, %v8565_v60  ;;  %v8011_v54 = vld [vmem:[#allocation12 + $0xe8] sm:$0xf]  ;;  %v8151_v2 = vld [vmem:[#allocation12 + $0x200] sm:$0xf] }
 0x293   :  { %5882 = vmatpush.bf16.msrb.mxu2 %v8988_v11  ;;  %5895 = vmatpush.bf16.msrb.mxu3 %v9212_v14  ;;  %v10206_v11 = vld [vmem:[#allocation12 + $0x5ec] sm:$0xf]  ;;  %v8649_v14 = vld [vmem:[#allocation12 + $0x604] sm:$0xf0] }
 0x294   :  { %v8652_v22 = vor.u32 %v10206_v11, %v8649_v14  ;;  %v8039_v14 = vld [vmem:[#allocation12 + $0x120] sm:$0xf] }
 0x295   :  { %5857 = vmatpush.bf16.msrb.mxu0 %v8512_v39  ;;  %5870 = vmatpush.bf16.msrb.mxu1 %v8736_v42  ;;  %v10136_v39 = vld [vmem:[#allocation12 + $0x3bc] sm:$0xf]  ;;  %v8369_v42 = vld [vmem:[#allocation12 + $0x3d4] sm:$0xf0]  ;;  %v8040_v23 = vor.u32 %v10056_v15, %v8039_v14  ;;  %v8123_v14 = vld [vmem:[#allocation12 + $0x1c8] sm:$0xf] }
 0x296   :  { %v8372_v62 = vor.u32 %v10136_v39, %v8369_v42  ;;  %v7983_v42 = vld [vmem:[#allocation12 + $0xb0] sm:$0xf]  ;;  %v10077_v15 = vld [vmem:[#allocation12 + $0x1e0] sm:$0xf0] }
 0x297   :  { %5883 = vmatpush.bf16.msrb.mxu2 %v8960_v27  ;;  %5896 = vmatpush.bf16.msrb.mxu3 %v9184_v28  ;;  %v9072_v27 = vor.u32 %v10311_v19, %v9069_v26  ;;  %v10248_v28 = vld [vmem:[#allocation12 + $0x73c] sm:$0xf]  ;;  %v8263_v19 = vld [vmem:[#allocation12 + $0x2e0] sm:$0xf] }
 0x298   :  { %v2706_v61 = vpop.f32.mrf.mxu2  ;;  %v2719_v52 = vpop.f32.mrf.mxu3  ;;  %v8820_v55 = vor.u32 %v10248_v28, %v8817_v30  ;;  %v10112_v26 = vld [vmem:[#allocation12 + $0x2f8] sm:$0xf0] }
 0x299   :  { %5858 = vmatpush.bf16.msrb.mxu0 %v8484_v5  ;;  %5871 = vmatpush.bf16.msrb.mxu1 %v8708_v41  ;;  %v9013_v61 = vld [vmem:[#allocation12 + $0x8dc] sm:$0xf0]  ;;  %v8095_v52 = vld [vmem:[#allocation12 + $0x190] sm:$0xf]  ;;  %v10126_v5 = vld [vmem:[#allocation12 + $0x368] sm:$0xf0]  ;;  %v8596_v41 = vor.u32 %v10192_v43, %v8593_v40  ;;  %v8264_v24 = vor.u32 %v10112_v26, %v8263_v19 }
 0x29a   :  { %v8096_v63 = vor.u32 %v10070_v53, %v8095_v52  ;;  %v8320_v12 = vor.u32 %v10126_v5, %v8319_v4  ;;  %v10035_v53 = vld [vmem:[#allocation12 + $0x90] sm:$0xf0]  ;;  %v8179_v4 = vld [vmem:[#allocation12 + $0x238] sm:$0xf]  ;;  %v8991_v19 = vld [vmem:[#allocation12 + $0x890] sm:$0xf] }
 0x29b   :  { %5884 = vmatpush.bf16.msrb.mxu2 %v8932_v49  ;;  %5897 = vmatpush.bf16.msrb.mxu3 %v9156_v50  ;;  %v10241_v49 = vld [vmem:[#allocation12 + $0x704] sm:$0xf]  ;;  %v8789_v50 = vld [vmem:[#allocation12 + $0x71c] sm:$0xf0]  ;;  %v10091_v5 = vld [vmem:[#allocation12 + $0x250] sm:$0xf0] }
 0x29c   :  { %v8180_v60 = vor.u32 %v10091_v5, %v8179_v4  ;;  %v8935_v5 = vld [vmem:[#allocation12 + $0x820] sm:$0xf] }
 0x29d   :  { %v10924_v56 = vpop.f32.mrf.mxu0  ;;  %v10926_v47 = vpop.f32.mrf.mxu1  ;;  %5859 = vmatpush.bf16.msrb.mxu0 %v8456_v3  ;;  %5872 = vmatpush.bf16.msrb.mxu1 %v8680_v6  ;;  %v8291_v3 = vld [vmem:[#allocation12 + $0x318] sm:$0xf]  ;;  %v10119_v6 = vld [vmem:[#allocation12 + $0x330] sm:$0xf0] }
 0x29e   :  { %v8292_v11 = vor.u32 %v10119_v6, %v8291_v3  ;;  %v10084_v3 = vld [vmem:[#allocation12 + $0x218] sm:$0xf0] }
 0x29f   :  { %5885 = vmatpush.bf16.msrb.mxu2 %v8904_v57  ;;  %5898 = vmatpush.bf16.msrb.mxu3 %v9128_v44  ;;  %v8792_v57 = vor.u32 %v10241_v49, %v8789_v50  ;;  %v9016_v44 = vor.u32 %v10297_v51, %v9013_v61  ;;  %v8207_v49 = vld [vmem:[#allocation12 + $0x270] sm:$0xf] }
 0x2a1   :  { %5860 = vmatpush.bf16.msrb.mxu0 %v8428_v58  ;;  %5873 = vmatpush.bf16.msrb.mxu1 %v8652_v22  ;;  %v2812_v58 = vld [vmem:[#allocation1 + $0x36] sm:$0xff]  ;;  %v2813_v22 = vld [vmem:[#allocation1 + $0x3f] sm:$0xff] }
 0x2a2   :  { %5838 = vmatmul.bf16.vlgmr.msra.gmra.mxu2 %v10890_v32  ;;  %5851 = vmatmul.bf16.vlgmr.msra.gmra.mxu3 %v10892_v35  ;;  %v2832_v30 = vpack.i.b16 %v2812_v58, %v2812_v58  ;;  %v2835_v37 = vpack.i.b16 %v2813_v22, %v2813_v22  ;;  %v10294_v22 = vld [vmem:[#allocation12 + $0x8a8] sm:$0xf0] }
 0x2a3   :  { %5886 = vmatpush.bf16.msrb.mxu2 %v8876_v9  ;;  %5899 = vmatpush.bf16.msrb.mxu3 %v9100_v36 }
 0x2a4   :  { %v2834_v50 = vperm.slane %v2832_v30, 0  ;;  %v2837_v40 = vperm.slane %v2835_v37, 0  ;;  %v9657_v30 = vld [vmem:[#allocation12 + $0xde4] sm:$0xf0]  ;;  %v8992_v37 = vor.u32 %v10294_v22, %v8991_v19  ;;  %v9573_v19 = vld [vmem:[#allocation12 + $0xd3c] sm:$0xf0] }
 0x2a5   :  { %v2732_v25 = vpop.f32.mrf.mxu0  ;;  %v2745_v45 = vpop.f32.mrf.mxu1  ;;  %5861 = vmatpush.bf16.msrb.mxu0 %v8400_v59  ;;  %5874 = vmatpush.bf16.msrb.mxu1 %v8624_v38  ;;  %v8879_v22 = vld [vmem:[#allocation12 + $0x7b0] sm:$0xf] }
 0x2a6   :  { %v2718_v25 = vadd.f32 %v10920_v21, %v10918_v18  ;;  %v10049_v45 = vld [vmem:[#allocation12 + $0x100] sm:$0xf0]  ;;  %v10098_v18 = vld [vmem:[#allocation12 + $0x288] sm:$0xf0]  ;;  %v2852_v0 = vunpack.c.l.bf16 %v2834_v50  ;;  %v2853_v1 = vunpack.c.l.bf16 %v2837_v40 }
 0x2a7   :  { %5887 = vmatpush.bf16.msrb.mxu2 %v8848_v20  ;;  %5900 = vmatpush.bf16.msrb.mxu3 %v9072_v27  ;;  %v8235_v20 = vld [vmem:[#allocation12 + $0x2a8] sm:$0xf]  ;;  %v10105_v27 = vld [vmem:[#allocation12 + $0x2c0] sm:$0xf0]  ;;  %v8012_v38 = vor.u32 %v10049_v45, %v8011_v54  ;;  %v8208_v52 = vor.u32 %v10098_v18, %v8207_v49  ;;  %v10402_v54 = vld [vmem:[#allocation12 + $0xc0c] sm:$0xf] }
 0x2a8   :  { %v2731_v34 = vadd.f32 %v10924_v56, %v2718_v25  ;;  %v8236_v39 = vor.u32 %v10105_v27, %v8235_v20  ;;  %v9433_v25 = vld [vmem:[#allocation12 + $0xc24] sm:$0xf0]  ;;  %v10395_v18 = vld [vmem:[#allocation12 + $0xbd4] sm:$0xf] }
 0x2a9   :  { %5862 = vmatpush.bf16.msrb.mxu0 %v8372_v62  ;;  %5875 = vmatpush.bf16.msrb.mxu1 %v8596_v41  ;;  %v7955_v62 = vld [vmem:[#allocation12 + $0x78] sm:$0xf] }
 0x2aa   :  { %v2744_v51 = vadd.f32 %v10926_v47, %v2731_v34 }
 0x2ab   :  { %5888 = vmatpush.bf16.msrb.mxu2 %v8820_v55  ;;  %5901 = vmatpush.bf16.msrb.mxu3 %v9044_v48  ;;  %v10042_v48 = vld [vmem:[#allocation12 + $0xc8] sm:$0xf0] }
 0x2ac   :  { %v7984_v56 = vor.u32 %v10042_v48, %v7983_v42  ;;  %v10287_v42 = vld [vmem:[#allocation12 + $0x870] sm:$0xf0]  ;;  %v9436_v48 = vor.u32 %v10402_v54, %v9433_v25  ;;  %v10322_v54 = vld [vmem:[#allocation12 + $0x988] sm:$0xf0] }
 0x2ad   :  { %5863 = vmatpush.bf16.msrb.mxu0 %v8344_v7  ;;  %5876 = vmatpush.bf16.msrb.mxu1 %v8568_v8 }
 0x2af   :  { %5889 = vmatpush.bf16.msrb.mxu2 %v8792_v57  ;;  %5902 = vmatpush.bf16.msrb.mxu3 %v9016_v44  ;;  %v7956_v44 = vor.u32 %v10035_v53, %v7955_v62 }
 0x2b0   :  { %v2756_v9 = vpop.f32.mrf.mxu2  ;;  %v2769_v36 = vpop.f32.mrf.mxu3 }
 0x2b1   :  { %v2770_v59 = vadd.f32 %v2769_v36, %v2756_v9  ;;  %v8152_v36 = vor.u32 %v10084_v3, %v8151_v2  ;;  %v8907_v2 = vld [vmem:[#allocation12 + $0x7e8] sm:$0xf]  ;;  %v10273_v3 = vld [vmem:[#allocation12 + $0x800] sm:$0xf0] }
 0x2b2   :  { %5890 = vmatmul.bf16.vlgmr.msrb.gmra.mxu2 %v10914_v16  ;;  %5903 = vmatmul.bf16.vlgmr.msrb.gmra.mxu3 %v10916_v17 }
 0x2b3   :  { %5934 = vmatpush.bf16.msra.mxu2 %v8096_v63  ;;  %5947 = vmatpush.bf16.msra.mxu3 %v8320_v12  ;;  %v7927_v63 = vld [vmem:[#allocation12 + $0x40] sm:$0xf] }
 0x2b4   :  { %v7928_v9 = vor.u32 %v10028_v13, %v7927_v63  ;;  %v10444_v63 = vld [vmem:[#allocation12 + $0xd5c] sm:$0xf] }
 0x2b7   :  { %5935 = vmatpush.bf16.msra.mxu2 %v8068_v10  ;;  %5948 = vmatpush.bf16.msra.mxu3 %v8292_v11  ;;  %v7899_v10 = vld [vmem:[#allocation12 + $0x8] sm:$0xf]  ;;  %v10021_v11 = vld [vmem:[#allocation12 + $0x20] sm:$0xf0] }
 0x2b8   :  { %v2758_v28 = vpop.f32.mrf.mxu2  ;;  %v2771_v29 = vpop.f32.mrf.mxu3  ;;  %v7900_v27 = vor.u32 %v10021_v11, %v7899_v10 }
 0x2b9   :  { %v8124_v28 = vor.u32 %v10077_v15, %v8123_v14  ;;  %v10458_v29 = vld [vmem:[#allocation12 + $0xdcc] sm:$0xf]  ;;  %v9349_v14 = vld [vmem:[#allocation12 + $0xb7c] sm:$0xf0]  ;;  %v10437_v15 = vld [vmem:[#allocation12 + $0xd24] sm:$0xf] }
 0x2ba   :  { %v9660_v49 = vor.u32 %v10458_v29, %v9657_v30  ;;  %v9321_v30 = vld [vmem:[#allocation12 + $0xb44] sm:$0xf0] }
 0x2bb   :  { %5936 = vmatpush.bf16.msra.mxu2 %v8040_v23  ;;  %5949 = vmatpush.bf16.msra.mxu3 %v8264_v24  ;;  %v9215_v23 = vld [vmem:[#allocation12 + $0xa50] sm:$0xf]  ;;  %v10350_v24 = vld [vmem:[#allocation12 + $0xa68] sm:$0xf0] }
 0x2bc   :  { %v9216_v34 = vor.u32 %v10350_v24, %v9215_v23  ;;  %v10266_v23 = vld [vmem:[#allocation12 + $0x7c8] sm:$0xf0]  ;;  %v9103_v24 = vld [vmem:[#allocation12 + $0x970] sm:$0xf] }
 0x2bd   :  { %v2782_v43 = vpop.f32.mrf.mxu0  ;;  %v2795_v55 = vpop.f32.mrf.mxu1 }
 0x2be   :  { %v2783_v21 = vadd.f32 %v2782_v43, %v2770_v59  ;;  %v8963_v59 = vld [vmem:[#allocation12 + $0x858] sm:$0xf] }
 0x2bf   :  { %5937 = vmatpush.bf16.msra.mxu2 %v8012_v38  ;;  %5950 = vmatpush.bf16.msra.mxu3 %v8236_v39  ;;  %v9187_v43 = vld [vmem:[#allocation12 + $0xa18] sm:$0xf]  ;;  %v8964_v53 = vor.u32 %v10287_v42, %v8963_v59  ;;  %v8880_v59 = vor.u32 %v10266_v23, %v8879_v22  ;;  %v8543_v22 = vld [vmem:[#allocation12 + $0x510] sm:$0xf] }
 0x2c0   :  { %v2796_v61 = vadd.f32 %v2795_v55, %v2783_v21  ;;  %v10343_v55 = vld [vmem:[#allocation12 + $0xa30] sm:$0xf0] }
 0x2c1   :  { %v9188_v4 = vor.u32 %v10343_v55, %v9187_v43  ;;  %v10259_v43 = vld [vmem:[#allocation12 + $0x790] sm:$0xf0]  ;;  %v9075_v55 = vld [vmem:[#allocation12 + $0x938] sm:$0xf] }
 0x2c2   :  { %v2802_v41 = vpack.c.bf16 %v2796_v61, %v2744_v51  ;;  %v9405_v61 = vld [vmem:[#allocation12 + $0xbec] sm:$0xf0] }
 0x2c3   :  { %5938 = vmatpush.bf16.msra.mxu2 %v7984_v56  ;;  %5951 = vmatpush.bf16.msra.mxu3 %v8208_v52  ;;  %v10451_v56 = vld [vmem:[#allocation12 + $0xd94] sm:$0xf]  ;;  %v9629_v52 = vld [vmem:[#allocation12 + $0xdac] sm:$0xf0] }
 0x2c4   :  { %v2844_v46 = vunpack.c.l.bf16 %v2802_v41  ;;  %v2845_v57 = vunpack.c.h.bf16 %v2802_v41  ;;  %v10280_v41 = vld [vmem:[#allocation12 + $0x838] sm:$0xf0] }
 0x2c5   :  { %v2784_v47 = vpop.f32.mrf.mxu0  ;;  %v2797_v12 = vpop.f32.mrf.mxu1 }
 0x2c6   :  { %v2860_v6 = vadd.f32 %v2852_v0, %v2844_v46  ;;  %v2861_v7 = vadd.f32 %v2853_v1, %v2845_v57  ;;  %v9159_v0 = vld [vmem:[#allocation12 + $0x9e0] sm:$0xf]  ;;  %v10336_v1 = vld [vmem:[#allocation12 + $0x9f8] sm:$0xf0]  ;;  %v9408_v46 = vor.u32 %v10395_v18, %v9405_v61  ;;  %v9632_v57 = vor.u32 %v10451_v56, %v9629_v52  ;;  %v9601_v47 = vld [vmem:[#allocation12 + $0xd74] sm:$0xf0] }
 0x2c7   :  { %5939 = vmatpush.bf16.msra.mxu2 %v7956_v44  ;;  %5952 = vmatpush.bf16.msra.mxu3 %v8180_v60  ;;  %v10388_v44 = vld [vmem:[#allocation12 + $0xb9c] sm:$0xf]  ;;  %v9377_v60 = vld [vmem:[#allocation12 + $0xbb4] sm:$0xf0]  ;;  %v8936_v12 = vor.u32 %v10280_v41, %v8935_v5  ;;  %v9160_v13 = vor.u32 %v10336_v1, %v9159_v0  ;;  %v10423_v61 = vld [vmem:[#allocation12 + $0xcb4] sm:$0xf] }
 0x2c8   :  { %v2865_v8 = vpack.c.bf16 %v2861_v7, %v2860_v6  ;;  %v9131_v6 = vld [vmem:[#allocation12 + $0x9a8] sm:$0xf]  ;;  %v10329_v7 = vld [vmem:[#allocation12 + $0x9c0] sm:$0xf0]  ;;  %v9517_v56 = vld [vmem:[#allocation12 + $0xccc] sm:$0xf0] }
 0x2c9   :  { %v9047_v5 = vld [vmem:[#allocation12 + $0x900] sm:$0xf]  ;;  %v10308_v41 = vld [vmem:[#allocation12 + $0x918] sm:$0xf0] }
 0x2ca   :  { %v2872_v26 = vunpack.c.l.bf16 %v2865_v8  ;;  %v2873_v58 = vunpack.c.h.bf16 %v2865_v8  ;;  %v9380_v8 = vor.u32 %v10388_v44, %v9377_v60  ;;  %v10360_v44 = vld [vmem:[#allocation12 + $0xabc] sm:$0xf]  ;;  %v9265_v60 = vld [vmem:[#allocation12 + $0xad4] sm:$0xf0] }
 0x2cb   :  { %5940 = vmatpush.bf16.msra.mxu2 %v7928_v9  ;;  %5953 = vmatpush.bf16.msra.mxu3 %v8152_v36  ;;  %v9604_v9 = vor.u32 %v10444_v63, %v9601_v47  ;;  %v10381_v36 = vld [vmem:[#allocation12 + $0xb64] sm:$0xf]  ;;  %v10416_v63 = vld [vmem:[#allocation12 + $0xc7c] sm:$0xf]  ;;  %v9489_v47 = vld [vmem:[#allocation12 + $0xc94] sm:$0xf0] }
 0x2cc   :  { %v2880_v45 = vmul.f32 0.20019531, %v2872_v26  ;;  %v2881_v20 = vmul.f32 0.20019531, %v2873_v58 }
 0x2ce   :  { %v2900_v38 = vmax.f32 %v2872_v26, %v2880_v45  ;;  %v2901_v39 = vmax.f32 %v2873_v58, %v2881_v20  ;;  %v8908_v26 = vor.u32 %v10273_v3, %v8907_v2  ;;  %v9132_v58 = vor.u32 %v10329_v7, %v9131_v6  ;;  %v8795_v2 = vld [vmem:[#allocation12 + $0x708] sm:$0xf]  ;;  %v10245_v3 = vld [vmem:[#allocation12 + $0x720] sm:$0xf0]  ;;  %v9237_v7 = vld [vmem:[#allocation12 + $0xa9c] sm:$0xf0] }
 0x2cf   :  { %5941 = vmatpush.bf16.msra.mxu2 %v7900_v27  ;;  %5954 = vmatpush.bf16.msra.mxu3 %v8124_v28  ;;  %v9352_v20 = vor.u32 %v10381_v36, %v9349_v14  ;;  %v9576_v27 = vor.u32 %v10437_v15, %v9573_v19  ;;  %v10374_v28 = vld [vmem:[#allocation12 + $0xb2c] sm:$0xf]  ;;  %v10353_v6 = vld [vmem:[#allocation12 + $0xa84] sm:$0xf]  ;;  %v10067_v36 = vld [vmem:[#allocation12 + $0x194] sm:$0xf]  ;;  %v8796_v23 = vor.u32 %v10245_v3, %v8795_v2 }
 0x2d0   :  { %v10936_v21 = vpack.c.bf16 %v2900_v38, %v2900_v38  ;;  %v10938_v50 = vpack.c.bf16 %v2901_v39, %v2901_v39  ;;  %v5735_v40 = vpop.f32.mrf.mxu2  ;;  %v5748_v51 = vpop.f32.mrf.mxu3  ;;  %v9104_v38 = vor.u32 %v10322_v54, %v9103_v24  ;;  %v8851_v39 = vld [vmem:[#allocation12 + $0x778] sm:$0xf]  ;;  %v8097_v14 = vld [vmem:[#allocation12 + $0x1ac] sm:$0xf0]  ;;  %v10123_v15 = vld [vmem:[#allocation12 + $0x354] sm:$0xf] }
 0x2d1   :  { %v5749_v62 = vadd.f32 %v5748_v51, %v5735_v40  ;;  %v10367_v40 = vld [vmem:[#allocation12 + $0xaf4] sm:$0xf]  ;;  %v9293_v51 = vld [vmem:[#allocation12 + $0xb0c] sm:$0xf0]  ;;  %v8852_v52 = vor.u32 %v10259_v43, %v8851_v39  ;;  %v10182_v54 = vld [vmem:[#allocation12 + $0x528] sm:$0xf0] }
 0x2d2   :  { %5812 = vmatmul.bf16.vlgmr.msra.gmra.mxu0 %v10936_v21  ;;  %5825 = vmatmul.bf16.vlgmr.msra.gmra.mxu1 %v10938_v50  ;;  %v8321_v19 = vld [vmem:[#allocation12 + $0x36c] sm:$0xf0]  ;;  %v10116_v39 = vld [vmem:[#allocation12 + $0x31c] sm:$0xf]  ;;  %v8293_v43 = vld [vmem:[#allocation12 + $0x334] sm:$0xf0] }
 0x2d3   :  { %5986 = vmatpush.bf16.msrb.mxu2 %v8992_v37  ;;  %5999 = vmatpush.bf16.msrb.mxu3 %v9216_v34  ;;  %v10430_v37 = vld [vmem:[#allocation12 + $0xcec] sm:$0xf]  ;;  %v9545_v34 = vld [vmem:[#allocation12 + $0xd04] sm:$0xf0]  ;;  %v10161_v2 = vld [vmem:[#allocation12 + $0x480] sm:$0xf0] }
 0x2d4   :  { %5908 = vmatpush.bf16.msra.mxu0 %v9436_v48  ;;  %5921 = vmatpush.bf16.msra.mxu1 %v9660_v49  ;;  %v10315_v48 = vld [vmem:[#allocation12 + $0x950] sm:$0xf0]  ;;  %v9324_v49 = vor.u32 %v10374_v28, %v9321_v30  ;;  %v9548_v18 = vor.u32 %v10430_v37, %v9545_v34  ;;  %v9240_v28 = vor.u32 %v10353_v6, %v9237_v7  ;;  %v8515_v30 = vld [vmem:[#allocation12 + $0x4d8] sm:$0xf]  ;;  %v10060_v37 = vld [vmem:[#allocation12 + $0x15c] sm:$0xf] }
 0x2d5   :  { %5942 = vmatmul.bf16.vlgmr.msra.gmra.mxu2 %v10890_v32  ;;  %5955 = vmatmul.bf16.vlgmr.msra.gmra.mxu3 %v10892_v35  ;;  %v8544_v34 = vor.u32 %v10182_v54, %v8543_v22  ;;  %v8683_v3 = vld [vmem:[#allocation12 + $0x628] sm:$0xf]  ;;  %v10217_v6 = vld [vmem:[#allocation12 + $0x640] sm:$0xf0]  ;;  %v10210_v22 = vld [vmem:[#allocation12 + $0x608] sm:$0xf0] }
 0x2d6   :  { %v8403_v54 = vld [vmem:[#allocation12 + $0x3f8] sm:$0xf] }
 0x2d7   :  { %5987 = vmatpush.bf16.msrb.mxu2 %v8964_v53  ;;  %6000 = vmatpush.bf16.msrb.mxu3 %v9188_v4  ;;  %v8823_v53 = vld [vmem:[#allocation12 + $0x740] sm:$0xf]  ;;  %v10252_v4 = vld [vmem:[#allocation12 + $0x758] sm:$0xf0] }
 0x2d8   :  { %5909 = vmatpush.bf16.msra.mxu0 %v9408_v46  ;;  %5922 = vmatpush.bf16.msra.mxu1 %v9632_v57  ;;  %v5737_v10 = vpop.f32.mrf.mxu2  ;;  %v5750_v11 = vpop.f32.mrf.mxu3  ;;  %v9296_v46 = vor.u32 %v10367_v40, %v9293_v51  ;;  %v9520_v57 = vor.u32 %v10423_v61, %v9517_v56  ;;  %v8296_v40 = vor.u32 %v10116_v39, %v8293_v43  ;;  %v8487_v51 = vld [vmem:[#allocation12 + $0x4a0] sm:$0xf]  ;;  %v10053_v61 = vld [vmem:[#allocation12 + $0x124] sm:$0xf] }
 0x2d9   :  { %v9268_v10 = vor.u32 %v10360_v44, %v9265_v60  ;;  %v9492_v11 = vor.u32 %v10416_v63, %v9489_v47  ;;  %v10046_v44 = vld [vmem:[#allocation12 + $0xec] sm:$0xf]  ;;  %v8013_v47 = vld [vmem:[#allocation12 + $0x104] sm:$0xf0]  ;;  %v8375_v39 = vld [vmem:[#allocation12 + $0x3c0] sm:$0xf] }
 0x2da   :  { %v8016_v7 = vor.u32 %v10046_v44, %v8013_v47  ;;  %v10025_v43 = vld [vmem:[#allocation12 + $0x44] sm:$0xf]  ;;  %v8125_v44 = vld [vmem:[#allocation12 + $0x1e4] sm:$0xf0]  ;;  %v10406_v47 = vld [vmem:[#allocation12 + $0xc28] sm:$0xf0] }
 0x2db   :  { %5988 = vmatpush.bf16.msrb.mxu2 %v8936_v12  ;;  %6001 = vmatpush.bf16.msrb.mxu3 %v9160_v13  ;;  %v8824_v12 = vor.u32 %v10252_v4, %v8823_v53  ;;  %v9048_v13 = vor.u32 %v10308_v41, %v9047_v5  ;;  %v10109_v53 = vld [vmem:[#allocation12 + $0x2e4] sm:$0xf]  ;;  %v8265_v4 = vld [vmem:[#allocation12 + $0x2fc] sm:$0xf0]  ;;  %v10168_v5 = vld [vmem:[#allocation12 + $0x4b8] sm:$0xf0] }
 0x2dc   :  { %5910 = vmatpush.bf16.msra.mxu0 %v9380_v8  ;;  %5923 = vmatpush.bf16.msra.mxu1 %v9604_v9  ;;  %v5761_v25 = vpop.f32.mrf.mxu0  ;;  %v5774_v45 = vpop.f32.mrf.mxu1  ;;  %v9019_v8 = vld [vmem:[#allocation12 + $0x8c8] sm:$0xf]  ;;  %v10301_v9 = vld [vmem:[#allocation12 + $0x8e0] sm:$0xf0]  ;;  %v8711_v41 = vld [vmem:[#allocation12 + $0x660] sm:$0xf]  ;;  %v8488_v60 = vor.u32 %v10168_v5, %v8487_v51 }
 0x2dd   :  { %v5762_v29 = vadd.f32 %v5761_v25, %v5749_v62  ;;  %v9076_v62 = vor.u32 %v10315_v48, %v9075_v55  ;;  %v9020_v24 = vor.u32 %v10301_v9, %v9019_v8  ;;  %v8767_v25 = vld [vmem:[#allocation12 + $0x6d0] sm:$0xf]  ;;  %v10175_v55 = vld [vmem:[#allocation12 + $0x4f0] sm:$0xf0]  ;;  %v8739_v48 = vld [vmem:[#allocation12 + $0x698] sm:$0xf] }
 0x2de   :  { %v8516_v56 = vor.u32 %v10175_v55, %v8515_v30  ;;  %v8431_v9 = vld [vmem:[#allocation12 + $0x430] sm:$0xf]  ;;  %v10147_v30 = vld [vmem:[#allocation12 + $0x410] sm:$0xf0]  ;;  %v10140_v51 = vld [vmem:[#allocation12 + $0x3d8] sm:$0xf0] }
 0x2df   :  { %5989 = vmatpush.bf16.msrb.mxu2 %v8908_v26  ;;  %6002 = vmatpush.bf16.msrb.mxu3 %v9132_v58  ;;  %v10944_v42 = vadd.f32 %v5774_v45, %v5762_v29  ;;  %v10409_v26 = vld [vmem:[#allocation12 + $0xc44] sm:$0xf]  ;;  %v9461_v58 = vld [vmem:[#allocation12 + $0xc5c] sm:$0xf0]  ;;  %v10238_v45 = vld [vmem:[#allocation12 + $0x6e8] sm:$0xf0]  ;;  %v8404_v55 = vor.u32 %v10147_v30, %v8403_v54 }
 0x2e0   :  { %5911 = vmatpush.bf16.msra.mxu0 %v9352_v20  ;;  %5924 = vmatpush.bf16.msra.mxu1 %v9576_v27  ;;  %v8100_v20 = vor.u32 %v10067_v36, %v8097_v14  ;;  %v8324_v27 = vor.u32 %v10123_v15, %v8321_v19  ;;  %v9464_v29 = vor.u32 %v10409_v26, %v9461_v58  ;;  %v10039_v36 = vld [vmem:[#allocation12 + $0xb4] sm:$0xf]  ;;  %v7985_v14 = vld [vmem:[#allocation12 + $0xcc] sm:$0xf0]  ;;  %v10154_v26 = vld [vmem:[#allocation12 + $0x448] sm:$0xf0] }
 0x2e1   :  { %v10095_v15 = vld [vmem:[#allocation12 + $0x274] sm:$0xf]  ;;  %v8209_v19 = vld [vmem:[#allocation12 + $0x28c] sm:$0xf0]  ;;  %v8571_v5 = vld [vmem:[#allocation12 + $0x548] sm:$0xf] }
 0x2e2   :  { %5864 = vmatmul.bf16.vlgmr.msrb.gmra.mxu0 %v10900_v31  ;;  %5877 = vmatmul.bf16.vlgmr.msrb.gmra.mxu1 %v10902_v33  ;;  %v8655_v58 = vld [vmem:[#allocation12 + $0x5f0] sm:$0xf]  ;;  %v8965_v54 = vld [vmem:[#allocation12 + $0x874] sm:$0xf0] }
 0x2e3   :  { %5990 = vmatpush.bf16.msrb.mxu2 %v8880_v59  ;;  %6003 = vmatpush.bf16.msrb.mxu3 %v9104_v38  ;;  %v8768_v59 = vor.u32 %v10238_v45, %v8767_v25  ;;  %v8069_v38 = vld [vmem:[#allocation12 + $0x174] sm:$0xf0]  ;;  %v10032_v25 = vld [vmem:[#allocation12 + $0x7c] sm:$0xf]  ;;  %v8432_v45 = vor.u32 %v10154_v26, %v8431_v9  ;;  %v9217_v9 = vld [vmem:[#allocation12 + $0xa6c] sm:$0xf0] }
 0x2e4   :  { %5912 = vmatpush.bf16.msra.mxu0 %v9324_v49  ;;  %5925 = vmatpush.bf16.msra.mxu1 %v9548_v18  ;;  %v5763_v0 = vpop.f32.mrf.mxu0  ;;  %v5776_v1 = vpop.f32.mrf.mxu1  ;;  %v10231_v49 = vld [vmem:[#allocation12 + $0x6b0] sm:$0xf0]  ;;  %v8072_v18 = vor.u32 %v10060_v37, %v8069_v38  ;;  %v8627_v37 = vld [vmem:[#allocation12 + $0x5b8] sm:$0xf] }
 0x2e5   :  { %v10224_v0 = vld [vmem:[#allocation12 + $0x678] sm:$0xf0] }
 0x2e6   :  { %v8712_v63 = vor.u32 %v10224_v0, %v8711_v41  ;;  %v10018_v41 = vld [vmem:[#allocation12 + $0xc] sm:$0xf]  ;;  %v8376_v0 = vor.u32 %v10140_v51, %v8375_v39  ;;  %v8937_v39 = vld [vmem:[#allocation12 + $0x83c] sm:$0xf0] }
 0x2e7   :  { %5991 = vmatpush.bf16.msrb.mxu2 %v8852_v52  ;;  %6004 = vmatpush.bf16.msrb.mxu3 %v9076_v62  ;;  %v8740_v52 = vor.u32 %v10231_v49, %v8739_v48  ;;  %v8041_v62 = vld [vmem:[#allocation12 + $0x13c] sm:$0xf0] }
 0x2e8   :  { %5913 = vmatpush.bf16.msra.mxu0 %v9296_v46  ;;  %5926 = vmatpush.bf16.msra.mxu1 %v9520_v57  ;;  %v8044_v1 = vor.u32 %v10053_v61, %v8041_v62  ;;  %v8268_v46 = vor.u32 %v10109_v53, %v8265_v4  ;;  %v8459_v57 = vld [vmem:[#allocation12 + $0x468] sm:$0xf]  ;;  %v7929_v49 = vld [vmem:[#allocation12 + $0x5c] sm:$0xf0]  ;;  %v10133_v4 = vld [vmem:[#allocation12 + $0x3a0] sm:$0xf0] }
 0x2e9   :  { %v8599_v61 = vld [vmem:[#allocation12 + $0x580] sm:$0xf]  ;;  %v8347_v53 = vld [vmem:[#allocation12 + $0x388] sm:$0xf] }
 0x2eb   :  { %5992 = vmatpush.bf16.msrb.mxu2 %v8824_v12  ;;  %6005 = vmatpush.bf16.msrb.mxu3 %v9048_v13  ;;  %v10102_v12 = vld [vmem:[#allocation12 + $0x2ac] sm:$0xf]  ;;  %v8237_v13 = vld [vmem:[#allocation12 + $0x2c4] sm:$0xf0] }
 0x2ec   :  { %5914 = vmatpush.bf16.msra.mxu0 %v9268_v10  ;;  %5927 = vmatpush.bf16.msra.mxu1 %v9492_v11  ;;  %v8240_v8 = vor.u32 %v10102_v12, %v8237_v13  ;;  %v8460_v10 = vor.u32 %v10161_v2, %v8459_v57  ;;  %v8684_v11 = vor.u32 %v10217_v6, %v8683_v3  ;;  %v10074_v57 = vld [vmem:[#allocation12 + $0x1cc] sm:$0xf]  ;;  %v9663_v12 = vld [vmem:[#allocation12 + $0xdd0] sm:$0xf]  ;;  %v10291_v2 = vld [vmem:[#allocation12 + $0x894] sm:$0xf] }
 0x2ed   :  { %v10462_v13 = vld [vmem:[#allocation12 + $0xde8] sm:$0xf0]  ;;  %v8128_v6 = vor.u32 %v10074_v57, %v8125_v44 }
 0x2ef   :  { %5993 = vmatpush.bf16.msrb.mxu2 %v8796_v23  ;;  %6006 = vmatpush.bf16.msrb.mxu3 %v9020_v24  ;;  %v7988_v23 = vor.u32 %v10039_v36, %v7985_v14  ;;  %v8212_v24 = vor.u32 %v10095_v15, %v8209_v19  ;;  %v8348_v36 = vor.u32 %v10133_v4, %v8347_v53  ;;  %v9411_v15 = vld [vmem:[#allocation12 + $0xbd8] sm:$0xf]  ;;  %v10399_v19 = vld [vmem:[#allocation12 + $0xbf0] sm:$0xf0]  ;;  %v8909_v53 = vld [vmem:[#allocation12 + $0x804] sm:$0xf0] }
 0x2f0   :  { %5915 = vmatpush.bf16.msra.mxu0 %v9240_v28  ;;  %5928 = vmatpush.bf16.msra.mxu1 %v9464_v29  ;;  %v10088_v28 = vld [vmem:[#allocation12 + $0x23c] sm:$0xf]  ;;  %v8181_v29 = vld [vmem:[#allocation12 + $0x254] sm:$0xf0]  ;;  %v9664_v14 = vor.u32 %v10462_v13, %v9663_v12  ;;  %v10326_v4 = vld [vmem:[#allocation12 + $0x9ac] sm:$0xf] }
 0x2f1   :  { %v8184_v38 = vor.u32 %v10088_v28, %v8181_v29  ;;  %v9383_v28 = vld [vmem:[#allocation12 + $0xba0] sm:$0xf]  ;;  %v10392_v29 = vld [vmem:[#allocation12 + $0xbb8] sm:$0xf0]  ;;  %v8881_v12 = vld [vmem:[#allocation12 + $0x7cc] sm:$0xf0] }
 0x2f2   :  { %5994 = vmatmul.bf16.vlgmr.msrb.gmra.mxu2 %v10914_v16  ;;  %6007 = vmatmul.bf16.vlgmr.msrb.gmra.mxu3 %v10916_v17  ;;  %v10319_v13 = vld [vmem:[#allocation12 + $0x974] sm:$0xf] }
 0x2f3   :  { %6038 = vmatpush.bf16.msra.mxu2 %v8100_v20  ;;  %6051 = vmatpush.bf16.msra.mxu3 %v8324_v27  ;;  %v8656_v20 = vor.u32 %v10210_v22, %v8655_v58  ;;  %v7957_v27 = vld [vmem:[#allocation12 + $0x94] sm:$0xf0] }
 0x2f4   :  { %5960 = vmatpush.bf16.msrb.mxu0 %v8544_v34  ;;  %5973 = vmatpush.bf16.msrb.mxu1 %v8768_v59  ;;  %v10203_v34 = vld [vmem:[#allocation12 + $0x5d0] sm:$0xf0]  ;;  %v7960_v59 = vor.u32 %v10032_v25, %v7957_v27  ;;  %v9635_v22 = vld [vmem:[#allocation12 + $0xd98] sm:$0xf]  ;;  %v10340_v25 = vld [vmem:[#allocation12 + $0xa1c] sm:$0xf] }
 0x2f5   :  { %5916 = vmatmul.bf16.vlgmr.msra.gmra.mxu0 %v10936_v21  ;;  %5929 = vmatmul.bf16.vlgmr.msra.gmra.mxu1 %v10938_v50  ;;  %v8628_v48 = vor.u32 %v10203_v34, %v8627_v37  ;;  %v9607_v34 = vld [vmem:[#allocation12 + $0xd60] sm:$0xf] }
 0x2f7   :  { %6039 = vmatpush.bf16.msra.mxu2 %v8072_v18  ;;  %6052 = vmatpush.bf16.msra.mxu3 %v8296_v40  ;;  %v10081_v18 = vld [vmem:[#allocation12 + $0x204] sm:$0xf]  ;;  %v8153_v40 = vld [vmem:[#allocation12 + $0x21c] sm:$0xf0] }
 0x2f8   :  { %5961 = vmatpush.bf16.msrb.mxu0 %v8516_v56  ;;  %5974 = vmatpush.bf16.msrb.mxu1 %v8740_v52  ;;  %v10196_v56 = vld [vmem:[#allocation12 + $0x598] sm:$0xf0]  ;;  %v7932_v52 = vor.u32 %v10025_v43, %v7929_v49  ;;  %v8156_v62 = vor.u32 %v10081_v18, %v8153_v40  ;;  %v10333_v43 = vld [vmem:[#allocation12 + $0x9e4] sm:$0xf]  ;;  %v9355_v18 = vld [vmem:[#allocation12 + $0xb68] sm:$0xf] }
 0x2f9   :  { %v10385_v40 = vld [vmem:[#allocation12 + $0xb80] sm:$0xf0] }
 0x2fb   :  { %6040 = vmatpush.bf16.msra.mxu2 %v8044_v1  ;;  %6053 = vmatpush.bf16.msra.mxu3 %v8268_v46  ;;  %v8600_v1 = vor.u32 %v10196_v56, %v8599_v61  ;;  %v7901_v46 = vld [vmem:[#allocation12 + $0x24] sm:$0xf0] }
 0x2fc   :  { %5962 = vmatpush.bf16.msrb.mxu0 %v8488_v60  ;;  %5975 = vmatpush.bf16.msrb.mxu1 %v8712_v63  ;;  %v10189_v60 = vld [vmem:[#allocation12 + $0x560] sm:$0xf0]  ;;  %v9439_v63 = vld [vmem:[#allocation12 + $0xc10] sm:$0xf]  ;;  %v7904_v3 = vor.u32 %v10018_v41, %v7901_v46  ;;  %v9579_v56 = vld [vmem:[#allocation12 + $0xd28] sm:$0xf]  ;;  %v9356_v41 = vor.u32 %v10385_v40, %v9355_v18 }
 0x2fd   :  { %v10378_v46 = vld [vmem:[#allocation12 + $0xb48] sm:$0xf0]  ;;  %v9467_v18 = vld [vmem:[#allocation12 + $0xc48] sm:$0xf]  ;;  %v10413_v40 = vld [vmem:[#allocation12 + $0xc60] sm:$0xf0] }
 0x2ff   :  { %6041 = vmatpush.bf16.msra.mxu2 %v8016_v7  ;;  %6054 = vmatpush.bf16.msra.mxu3 %v8240_v8  ;;  %v8993_v7 = vld [vmem:[#allocation12 + $0x8ac] sm:$0xf0]  ;;  %v10347_v8 = vld [vmem:[#allocation12 + $0xa54] sm:$0xf] }
 0x300   :  { %5963 = vmatpush.bf16.msrb.mxu0 %v8460_v10  ;;  %5976 = vmatpush.bf16.msrb.mxu1 %v8684_v11  ;;  %v8572_v10 = vor.u32 %v10189_v60, %v8571_v5  ;;  %v9440_v11 = vor.u32 %v10406_v47, %v9439_v63  ;;  %v8996_v26 = vor.u32 %v10291_v2, %v8993_v7  ;;  %v9133_v5 = vld [vmem:[#allocation12 + $0x9c4] sm:$0xf0]  ;;  %v9551_v60 = vld [vmem:[#allocation12 + $0xcf0] sm:$0xf]  ;;  %v10434_v63 = vld [vmem:[#allocation12 + $0xd08] sm:$0xf0] }
 0x301   :  { %v9220_v58 = vor.u32 %v10347_v8, %v9217_v9  ;;  %v9136_v44 = vor.u32 %v10326_v4, %v9133_v5  ;;  %v10263_v47 = vld [vmem:[#allocation12 + $0x7b4] sm:$0xf]  ;;  %v9105_v2 = vld [vmem:[#allocation12 + $0x98c] sm:$0xf0]  ;;  %v9552_v8 = vor.u32 %v10434_v63, %v9551_v60  ;;  %v9299_v9 = vld [vmem:[#allocation12 + $0xaf8] sm:$0xf] }
 0x302   :  { %v10179_v4 = vld [vmem:[#allocation12 + $0x514] sm:$0xf]  ;;  %v8545_v5 = vld [vmem:[#allocation12 + $0x52c] sm:$0xf0]  ;;  %v8327_v60 = vld [vmem:[#allocation12 + $0x358] sm:$0xf] }
 0x303   :  { %6042 = vmatpush.bf16.msra.mxu2 %v7988_v23  ;;  %6055 = vmatpush.bf16.msra.mxu3 %v8212_v24  ;;  %v10455_v23 = vld [vmem:[#allocation12 + $0xdb0] sm:$0xf0]  ;;  %v10284_v24 = vld [vmem:[#allocation12 + $0x85c] sm:$0xf] }
 0x304   :  { %5964 = vmatpush.bf16.msrb.mxu0 %v8432_v45  ;;  %5977 = vmatpush.bf16.msrb.mxu1 %v8656_v20  ;;  %v9189_v45 = vld [vmem:[#allocation12 + $0xa34] sm:$0xf0]  ;;  %v9412_v20 = vor.u32 %v10399_v19, %v9411_v15  ;;  %v9636_v27 = vor.u32 %v10455_v23, %v9635_v22  ;;  %v8968_v30 = vor.u32 %v10284_v24, %v8965_v54  ;;  %v10427_v19 = vld [vmem:[#allocation12 + $0xcd0] sm:$0xf0]  ;;  %v10312_v22 = vld [vmem:[#allocation12 + $0x93c] sm:$0xf] }
 0x305   :  { %v9192_v37 = vor.u32 %v10340_v25, %v9189_v45  ;;  %v9523_v15 = vld [vmem:[#allocation12 + $0xcb8] sm:$0xf]  ;;  %v9271_v45 = vld [vmem:[#allocation12 + $0xac0] sm:$0xf]  ;;  %v10127_v63 = vld [vmem:[#allocation12 + $0x370] sm:$0xf0] }
 0x306   :  { %v9077_v23 = vld [vmem:[#allocation12 + $0x954] sm:$0xf0]  ;;  %v9524_v25 = vor.u32 %v10427_v19, %v9523_v15  ;;  %v10064_v15 = vld [vmem:[#allocation12 + $0x178] sm:$0xf0]  ;;  %v8299_v19 = vld [vmem:[#allocation12 + $0x320] sm:$0xf] }
 0x307   :  { %6043 = vmatpush.bf16.msra.mxu2 %v7960_v59  ;;  %6056 = vmatpush.bf16.msra.mxu3 %v8184_v38  ;;  %v10448_v59 = vld [vmem:[#allocation12 + $0xd78] sm:$0xf0]  ;;  %v10277_v38 = vld [vmem:[#allocation12 + $0x824] sm:$0xf] }
 0x308   :  { %5965 = vmatpush.bf16.msrb.mxu0 %v8404_v55  ;;  %5978 = vmatpush.bf16.msrb.mxu1 %v8628_v48  ;;  %v9161_v55 = vld [vmem:[#allocation12 + $0x9fc] sm:$0xf0]  ;;  %v9384_v48 = vor.u32 %v10392_v29, %v9383_v28  ;;  %v9608_v49 = vor.u32 %v10448_v59, %v9607_v34  ;;  %v8940_v51 = vor.u32 %v10277_v38, %v8937_v39  ;;  %v10420_v29 = vld [vmem:[#allocation12 + $0xc98] sm:$0xf0]  ;;  %v10305_v34 = vld [vmem:[#allocation12 + $0x904] sm:$0xf] }
 0x309   :  { %v9164_v61 = vor.u32 %v10333_v43, %v9161_v55  ;;  %v9495_v28 = vld [vmem:[#allocation12 + $0xc80] sm:$0xf]  ;;  %v9243_v38 = vld [vmem:[#allocation12 + $0xa88] sm:$0xf] }
 0x30a   :  { %v9049_v59 = vld [vmem:[#allocation12 + $0x91c] sm:$0xf0] }
 0x30b   :  { %6044 = vmatpush.bf16.msra.mxu2 %v7932_v52  ;;  %6057 = vmatpush.bf16.msra.mxu3 %v8156_v62  ;;  %v10441_v52 = vld [vmem:[#allocation12 + $0xd40] sm:$0xf0]  ;;  %v10270_v62 = vld [vmem:[#allocation12 + $0x7ec] sm:$0xf] }
 0x30c   :  { %5966 = vmatpush.bf16.msrb.mxu0 %v8376_v0  ;;  %5979 = vmatpush.bf16.msrb.mxu1 %v8600_v1  ;;  %v9580_v0 = vor.u32 %v10441_v52, %v9579_v56  ;;  %v9327_v1 = vld [vmem:[#allocation12 + $0xb30] sm:$0xf]  ;;  %v8912_v57 = vor.u32 %v10270_v62, %v8909_v53  ;;  %v10242_v56 = vld [vmem:[#allocation12 + $0x70c] sm:$0xf]  ;;  %v8797_v52 = vld [vmem:[#allocation12 + $0x724] sm:$0xf0] }
 0x30d   :  { %v9328_v7 = vor.u32 %v10378_v46, %v9327_v1  ;;  %v10298_v62 = vld [vmem:[#allocation12 + $0x8cc] sm:$0xf]  ;;  %v9021_v53 = vld [vmem:[#allocation12 + $0x8e4] sm:$0xf0]  ;;  %v8103_v1 = vld [vmem:[#allocation12 + $0x198] sm:$0xf] }
 0x30f   :  { %6045 = vmatpush.bf16.msra.mxu2 %v7904_v3  ;;  %6058 = vmatpush.bf16.msra.mxu3 %v8128_v6 }
 0x310   :  { %5967 = vmatpush.bf16.msrb.mxu0 %v8348_v36  ;;  %5980 = vmatpush.bf16.msrb.mxu1 %v8572_v10  ;;  %v10371_v36 = vld [vmem:[#allocation12 + $0xb10] sm:$0xf0] }
 0x311   :  { %v9300_v54 = vor.u32 %v10371_v36, %v9299_v9  ;;  %v10228_v9 = vld [vmem:[#allocation12 + $0x69c] sm:$0xf]  ;;  %v8741_v36 = vld [vmem:[#allocation12 + $0x6b4] sm:$0xf0] }
 0x312   :  { %6046 = vmatmul.bf16.vlgmr.msra.gmra.mxu2 %v10890_v32  ;;  %6059 = vmatmul.bf16.vlgmr.msra.gmra.mxu3 %v10892_v35 }
 0x313   :  { %6090 = vmatpush.bf16.msrb.mxu2 %v8996_v26  ;;  %6103 = vmatpush.bf16.msrb.mxu3 %v9220_v58  ;;  %v10256_v26 = vld [vmem:[#allocation12 + $0x77c] sm:$0xf]  ;;  %v8853_v58 = vld [vmem:[#allocation12 + $0x794] sm:$0xf0] }
 0x314   :  { %6012 = vmatpush.bf16.msra.mxu0 %v9440_v11  ;;  %6025 = vmatpush.bf16.msra.mxu1 %v9664_v14  ;;  %v8884_v11 = vor.u32 %v10263_v47, %v8881_v12  ;;  %v9108_v14 = vor.u32 %v10319_v13, %v9105_v2  ;;  %v8800_v47 = vor.u32 %v10242_v56, %v8797_v52  ;;  %v10106_v56 = vld [vmem:[#allocation12 + $0x2c8] sm:$0xf0] }
 0x315   :  { %5968 = vmatmul.bf16.vlgmr.msrb.gmra.mxu0 %v10900_v31  ;;  %5981 = vmatmul.bf16.vlgmr.msrb.gmra.mxu1 %v10902_v33  ;;  %v5787_v3 = vpop.f32.mrf.mxu2  ;;  %v5800_v6 = vpop.f32.mrf.mxu3  ;;  %v9024_v12 = vor.u32 %v10298_v62, %v9021_v53  ;;  %v8548_v13 = vor.u32 %v10179_v4, %v8545_v5  ;;  %v10151_v53 = vld [vmem:[#allocation12 + $0x434] sm:$0xf]  ;;  %v8433_v4 = vld [vmem:[#allocation12 + $0x44c] sm:$0xf0] }
 0x316   :  { %v5788_v10 = vadd.f32 %v5787_v3, %v10944_v42  ;;  %v9080_v42 = vor.u32 %v10312_v22, %v9077_v23  ;;  %v10172_v3 = vld [vmem:[#allocation12 + $0x4dc] sm:$0xf]  ;;  %v8744_v22 = vor.u32 %v10228_v9, %v8741_v36  ;;  %v10165_v23 = vld [vmem:[#allocation12 + $0x4a4] sm:$0xf] }
 0x317   :  { %6091 = vmatpush.bf16.msrb.mxu2 %v8968_v30  ;;  %6104 = vmatpush.bf16.msrb.mxu3 %v9192_v37  ;;  %v10249_v30 = vld [vmem:[#allocation12 + $0x744] sm:$0xf]  ;;  %v8825_v37 = vld [vmem:[#allocation12 + $0x75c] sm:$0xf0] }
 0x318   :  { %6013 = vmatpush.bf16.msra.mxu0 %v9412_v20  ;;  %6026 = vmatpush.bf16.msra.mxu1 %v9636_v27  ;;  %v10957_v24 = vadd.f32 %v5800_v6, %v5788_v10  ;;  %v10364_v20 = vld [vmem:[#allocation12 + $0xad8] sm:$0xf0]  ;;  %v8856_v27 = vor.u32 %v10256_v26, %v8853_v58  ;;  %v8517_v6 = vld [vmem:[#allocation12 + $0x4f4] sm:$0xf0]  ;;  %v8075_v10 = vld [vmem:[#allocation12 + $0x160] sm:$0xf] }
 0x319   :  { %v9272_v55 = vor.u32 %v10364_v20, %v9271_v45  ;;  %v10120_v26 = vld [vmem:[#allocation12 + $0x338] sm:$0xf0]  ;;  %v8520_v58 = vor.u32 %v10172_v3, %v8517_v6  ;;  %v10221_v20 = vld [vmem:[#allocation12 + $0x664] sm:$0xf] }
 0x31a   :  { %v8300_v45 = vor.u32 %v10120_v26, %v8299_v19  ;;  %v10200_v6 = vld [vmem:[#allocation12 + $0x5bc] sm:$0xf] }
 0x31b   :  { %6092 = vmatpush.bf16.msrb.mxu2 %v8940_v51  ;;  %6105 = vmatpush.bf16.msrb.mxu3 %v9164_v61  ;;  %v8828_v51 = vor.u32 %v10249_v30, %v8825_v37  ;;  %v9052_v61 = vor.u32 %v10305_v34, %v9049_v59  ;;  %v10113_v30 = vld [vmem:[#allocation12 + $0x300] sm:$0xf0]  ;;  %v10158_v59 = vld [vmem:[#allocation12 + $0x46c] sm:$0xf]  ;;  %v10092_v19 = vld [vmem:[#allocation12 + $0x258] sm:$0xf0] }
 0x31c   :  { %6014 = vmatpush.bf16.msra.mxu0 %v9384_v48  ;;  %6027 = vmatpush.bf16.msra.mxu1 %v9608_v49  ;;  %v9496_v48 = vor.u32 %v10420_v29, %v9495_v28  ;;  %v10357_v49 = vld [vmem:[#allocation12 + $0xaa0] sm:$0xf0]  ;;  %v8271_v29 = vld [vmem:[#allocation12 + $0x2e8] sm:$0xf] }
 0x31d   :  { %v5789_v39 = vpop.f32.mrf.mxu2  ;;  %v5802_v43 = vpop.f32.mrf.mxu3  ;;  %v9244_v46 = vor.u32 %v10357_v49, %v9243_v38  ;;  %v10057_v28 = vld [vmem:[#allocation12 + $0x140] sm:$0xf0]  ;;  %v8461_v38 = vld [vmem:[#allocation12 + $0x484] sm:$0xf0]  ;;  %v8019_v49 = vld [vmem:[#allocation12 + $0xf0] sm:$0xf] }
 0x31e   :  { %v8272_v43 = vor.u32 %v10113_v30, %v8271_v29  ;;  %v8464_v52 = vor.u32 %v10158_v59, %v8461_v38  ;;  %v10085_v29 = vld [vmem:[#allocation12 + $0x220] sm:$0xf0]  ;;  %v10130_v30 = vld [vmem:[#allocation12 + $0x38c] sm:$0xf]  ;;  %v8349_v59 = vld [vmem:[#allocation12 + $0x3a4] sm:$0xf0] }
 0x31f   :  { %6093 = vmatpush.bf16.msrb.mxu2 %v8912_v57  ;;  %6106 = vmatpush.bf16.msrb.mxu3 %v9136_v44  ;;  %v9468_v57 = vor.u32 %v10413_v40, %v9467_v18  ;;  %v10071_v44 = vld [vmem:[#allocation12 + $0x1b0] sm:$0xf0]  ;;  %v10186_v38 = vld [vmem:[#allocation12 + $0x54c] sm:$0xf] }
 0x320   :  { %6015 = vmatpush.bf16.msra.mxu0 %v9356_v41  ;;  %6028 = vmatpush.bf16.msra.mxu1 %v9580_v0  ;;  %v10235_v41 = vld [vmem:[#allocation12 + $0x6d4] sm:$0xf]  ;;  %v8769_v0 = vld [vmem:[#allocation12 + $0x6ec] sm:$0xf0] }
 0x321   :  { %v8772_v2 = vor.u32 %v10235_v41, %v8769_v0  ;;  %v10207_v0 = vld [vmem:[#allocation12 + $0x5f4] sm:$0xf] }
 0x323   :  { %6094 = vmatpush.bf16.msrb.mxu2 %v8884_v11  ;;  %6107 = vmatpush.bf16.msrb.mxu3 %v9108_v14 }
 0x324   :  { %6016 = vmatpush.bf16.msra.mxu0 %v9328_v7  ;;  %6029 = vmatpush.bf16.msra.mxu1 %v9552_v8  ;;  %v8104_v7 = vor.u32 %v10071_v44, %v8103_v1  ;;  %v8328_v8 = vor.u32 %v10127_v63, %v8327_v60  ;;  %v8657_v1 = vld [vmem:[#allocation12 + $0x60c] sm:$0xf0]  ;;  %v8215_v44 = vld [vmem:[#allocation12 + $0x278] sm:$0xf]  ;;  %v10099_v60 = vld [vmem:[#allocation12 + $0x290] sm:$0xf0]  ;;  %v8436_v63 = vor.u32 %v10151_v53, %v8433_v4 }
 0x325   :  { %v10959_v11 = vpop.f32.mrf.mxu2  ;;  %v10961_v14 = vpop.f32.mrf.mxu3  ;;  %v8216_v3 = vor.u32 %v10099_v60, %v8215_v44  ;;  %v9665_v53 = vld [vmem:[#allocation12 + $0xdec] sm:$0xf0]  ;;  %v8999_v4 = vld [vmem:[#allocation12 + $0x898] sm:$0xf] }
 0x327   :  { %6095 = vmatpush.bf16.msrb.mxu2 %v8856_v27  ;;  %6108 = vmatpush.bf16.msrb.mxu3 %v9080_v42  ;;  %v8713_v27 = vld [vmem:[#allocation12 + $0x67c] sm:$0xf0]  ;;  %v8047_v42 = vld [vmem:[#allocation12 + $0x128] sm:$0xf] }
 0x328   :  { %6017 = vmatpush.bf16.msra.mxu0 %v9300_v54  ;;  %6030 = vmatpush.bf16.msra.mxu1 %v9524_v25  ;;  %v8489_v54 = vld [vmem:[#allocation12 + $0x4bc] sm:$0xf0]  ;;  %v8076_v25 = vor.u32 %v10064_v15, %v8075_v10  ;;  %v8716_v34 = vor.u32 %v10221_v20, %v8713_v27  ;;  %v8048_v39 = vor.u32 %v10057_v28, %v8047_v42  ;;  %v10036_v10 = vld [vmem:[#allocation12 + $0x98] sm:$0xf0]  ;;  %v7935_v27 = vld [vmem:[#allocation12 + $0x48] sm:$0xf] }
 0x329   :  { %v8492_v37 = vor.u32 %v10165_v23, %v8489_v54  ;;  %v8187_v15 = vld [vmem:[#allocation12 + $0x240] sm:$0xf]  ;;  %v10029_v42 = vld [vmem:[#allocation12 + $0x60] sm:$0xf0]  ;;  %v8159_v28 = vld [vmem:[#allocation12 + $0x208] sm:$0xf] }
 0x32a   :  { %v8377_v23 = vld [vmem:[#allocation12 + $0x3dc] sm:$0xf0] }
 0x32b   :  { %6096 = vmatpush.bf16.msrb.mxu2 %v8828_v51  ;;  %6109 = vmatpush.bf16.msrb.mxu3 %v9052_v61  ;;  %v10050_v51 = vld [vmem:[#allocation12 + $0x108] sm:$0xf0]  ;;  %v8243_v61 = vld [vmem:[#allocation12 + $0x2b0] sm:$0xf]  ;;  %v8601_v20 = vld [vmem:[#allocation12 + $0x59c] sm:$0xf0] }
 0x32c   :  { %6018 = vmatpush.bf16.msra.mxu0 %v9272_v55  ;;  %6031 = vmatpush.bf16.msra.mxu1 %v9496_v48  ;;  %v10214_v55 = vld [vmem:[#allocation12 + $0x62c] sm:$0xf]  ;;  %v8685_v48 = vld [vmem:[#allocation12 + $0x644] sm:$0xf0]  ;;  %v8020_v5 = vor.u32 %v10050_v51, %v8019_v49  ;;  %v8244_v41 = vor.u32 %v10106_v56, %v8243_v61  ;;  %v10403_v56 = vld [vmem:[#allocation12 + $0xc14] sm:$0xf] }
 0x32d   :  { %v5841_v18 = vpop.f32.mrf.mxu2  ;;  %v5854_v40 = vpop.f32.mrf.mxu3  ;;  %v8688_v62 = vor.u32 %v10214_v55, %v8685_v48  ;;  %v8160_v55 = vor.u32 %v10085_v29, %v8159_v28  ;;  %v7907_v48 = vld [vmem:[#allocation12 + $0x10] sm:$0xf]  ;;  %v10022_v49 = vld [vmem:[#allocation12 + $0x28] sm:$0xf0]  ;;  %v10337_v28 = vld [vmem:[#allocation12 + $0xa00] sm:$0xf0] }
 0x32e   :  { %v8131_v18 = vld [vmem:[#allocation12 + $0x1d0] sm:$0xf]  ;;  %v10078_v61 = vld [vmem:[#allocation12 + $0x1e8] sm:$0xf0] }
 0x32f   :  { %6097 = vmatpush.bf16.msrb.mxu2 %v8800_v47  ;;  %6110 = vmatpush.bf16.msrb.mxu3 %v9024_v12  ;;  %v8660_v47 = vor.u32 %v10207_v0, %v8657_v1  ;;  %v10144_v12 = vld [vmem:[#allocation12 + $0x3fc] sm:$0xf]  ;;  %v10295_v0 = vld [vmem:[#allocation12 + $0x8b0] sm:$0xf0]  ;;  %v9223_v1 = vld [vmem:[#allocation12 + $0xa58] sm:$0xf]  ;;  %v8132_v44 = vor.u32 %v10078_v61, %v8131_v18 }
 0x330   :  { %6019 = vmatpush.bf16.msra.mxu0 %v9244_v46  ;;  %6032 = vmatpush.bf16.msra.mxu1 %v9468_v57  ;;  %v7991_v46 = vld [vmem:[#allocation12 + $0xb8] sm:$0xf]  ;;  %v10043_v57 = vld [vmem:[#allocation12 + $0xd0] sm:$0xf0]  ;;  %v6458_v61 = vld [vmem:[#allocation13] sm:$0x7f] }
 0x331   :  { %6460 = vst [vmem:[#allocation1] ss:$9 sm:$0xff] %v6458_v61 }
 0x332   :  { %6098 = vmatmul.bf16.vlgmr.msrb.gmra.mxu2 %v10914_v16  ;;  %6111 = vmatmul.bf16.vlgmr.msrb.gmra.mxu3 %v10916_v17 }
 0x333   :  { %6142 = vmatpush.bf16.msra.mxu2 %v8104_v7  ;;  %6155 = vmatpush.bf16.msra.mxu3 %v8328_v8  ;;  %v8629_v7 = vld [vmem:[#allocation12 + $0x5d4] sm:$0xf0]  ;;  %v7963_v8 = vld [vmem:[#allocation12 + $0x80] sm:$0xf] }
 0x334   :  { %6064 = vmatpush.bf16.msrb.mxu0 %v8548_v13  ;;  %6077 = vmatpush.bf16.msrb.mxu1 %v8772_v2  ;;  %v8405_v13 = vld [vmem:[#allocation12 + $0x414] sm:$0xf0]  ;;  %v7992_v2 = vor.u32 %v10043_v57, %v7991_v46  ;;  %v7964_v54 = vor.u32 %v10036_v10, %v7963_v8  ;;  %v10351_v46 = vld [vmem:[#allocation12 + $0xa70] sm:$0xf0]  ;;  %v7908_v57 = vor.u32 %v10022_v49, %v7907_v48  ;;  %v10288_v8 = vld [vmem:[#allocation12 + $0x878] sm:$0xf0] }
 0x335   :  { %6020 = vmatmul.bf16.vlgmr.msra.gmra.mxu0 %v10936_v21  ;;  %6033 = vmatmul.bf16.vlgmr.msra.gmra.mxu1 %v10938_v50  ;;  %v10967_v9 = vpop.f32.mrf.mxu2  ;;  %v10969_v36 = vpop.f32.mrf.mxu3  ;;  %v8408_v26 = vor.u32 %v10144_v12, %v8405_v13  ;;  %v9413_v12 = vld [vmem:[#allocation12 + $0xbf4] sm:$0xf0]  ;;  %v9000_v13 = vor.u32 %v10295_v0, %v8999_v4  ;;  %v9195_v10 = vld [vmem:[#allocation12 + $0xa20] sm:$0xf]  ;;  %v10274_v48 = vld [vmem:[#allocation12 + $0x808] sm:$0xf0] }
 0x336   :  { %v9553_v0 = vld [vmem:[#allocation12 + $0xd0c] sm:$0xf0] }
 0x337   :  { %6143 = vmatpush.bf16.msra.mxu2 %v8076_v25  ;;  %6156 = vmatpush.bf16.msra.mxu3 %v8300_v45  ;;  %v8188_v25 = vor.u32 %v10092_v19, %v8187_v15  ;;  %v10193_v45 = vld [vmem:[#allocation12 + $0x584] sm:$0xf]  ;;  %v10344_v15 = vld [vmem:[#allocation12 + $0xa38] sm:$0xf0] }
 0x338   :  { %6065 = vmatpush.bf16.msrb.mxu0 %v8520_v58  ;;  %6078 = vmatpush.bf16.msrb.mxu1 %v8744_v22  ;;  %v8632_v58 = vor.u32 %v10200_v6, %v8629_v7  ;;  %v10137_v22 = vld [vmem:[#allocation12 + $0x3c4] sm:$0xf]  ;;  %v9637_v6 = vld [vmem:[#allocation12 + $0xdb4] sm:$0xf0]  ;;  %v8971_v7 = vld [vmem:[#allocation12 + $0x860] sm:$0xf] }
 0x33b   :  { %6144 = vmatpush.bf16.msra.mxu2 %v8048_v39  ;;  %6157 = vmatpush.bf16.msra.mxu3 %v8272_v43  ;;  %v8573_v39 = vld [vmem:[#allocation12 + $0x564] sm:$0xf0]  ;;  %v7936_v43 = vor.u32 %v10029_v42, %v7935_v27  ;;  %v10281_v27 = vld [vmem:[#allocation12 + $0x840] sm:$0xf0] }
 0x33c   :  { %6066 = vmatpush.bf16.msrb.mxu0 %v8492_v37  ;;  %6079 = vmatpush.bf16.msrb.mxu1 %v8716_v34  ;;  %v8380_v37 = vor.u32 %v10137_v22, %v8377_v23  ;;  %v8604_v34 = vor.u32 %v10193_v45, %v8601_v20  ;;  %v9385_v22 = vld [vmem:[#allocation12 + $0xbbc] sm:$0xf0]  ;;  %v8972_v23 = vor.u32 %v10288_v8, %v8971_v7  ;;  %v8943_v20 = vld [vmem:[#allocation12 + $0x828] sm:$0xf] }
 0x33d   :  { %v5893_v40 = vpop.f32.mrf.mxu2  ;;  %v5906_v51 = vpop.f32.mrf.mxu3  ;;  %v9609_v45 = vld [vmem:[#allocation12 + $0xd7c] sm:$0xf0]  ;;  %v9167_v42 = vld [vmem:[#allocation12 + $0x9e8] sm:$0xf] }
 0x33e   :  { %v9139_v40 = vld [vmem:[#allocation12 + $0x9b0] sm:$0xf]  ;;  %v10330_v51 = vld [vmem:[#allocation12 + $0x9c8] sm:$0xf0]  ;;  %v8859_v7 = vld [vmem:[#allocation12 + $0x780] sm:$0xf] }
 0x33f   :  { %6145 = vmatpush.bf16.msra.mxu2 %v8020_v5  ;;  %6158 = vmatpush.bf16.msra.mxu3 %v8244_v41  ;;  %v8352_v5 = vor.u32 %v10130_v30, %v8349_v59  ;;  %v8576_v41 = vor.u32 %v10186_v38, %v8573_v39  ;;  %v10438_v59 = vld [vmem:[#allocation12 + $0xd2c] sm:$0xf]  ;;  %v8944_v38 = vor.u32 %v10281_v27, %v8943_v20  ;;  %v9273_v20 = vld [vmem:[#allocation12 + $0xadc] sm:$0xf0] }
 0x340   :  { %6067 = vmatpush.bf16.msrb.mxu0 %v8464_v52  ;;  %6080 = vmatpush.bf16.msrb.mxu1 %v8688_v62  ;;  %v9441_v52 = vld [vmem:[#allocation12 + $0xc2c] sm:$0xf0]  ;;  %v10459_v62 = vld [vmem:[#allocation12 + $0xdd4] sm:$0xf]  ;;  %v9168_v39 = vor.u32 %v10337_v28, %v9167_v42  ;;  %v10417_v28 = vld [vmem:[#allocation12 + $0xc84] sm:$0xf] }
 0x341   :  { %v9444_v60 = vor.u32 %v10403_v56, %v9441_v52 }
 0x343   :  { %6146 = vmatpush.bf16.msra.mxu2 %v7992_v2  ;;  %6159 = vmatpush.bf16.msra.mxu3 %v8216_v3  ;;  %v9224_v2 = vor.u32 %v10351_v46, %v9223_v1  ;;  %v10452_v3 = vld [vmem:[#allocation12 + $0xd9c] sm:$0xf]  ;;  %v8887_v1 = vld [vmem:[#allocation12 + $0x7b8] sm:$0xf]  ;;  %v10267_v46 = vld [vmem:[#allocation12 + $0x7d0] sm:$0xf0] }
 0x344   :  { %6068 = vmatpush.bf16.msrb.mxu0 %v8436_v63  ;;  %6081 = vmatpush.bf16.msrb.mxu1 %v8660_v47  ;;  %v9668_v63 = vor.u32 %v10459_v62, %v9665_v53  ;;  %v10396_v47 = vld [vmem:[#allocation12 + $0xbdc] sm:$0xf]  ;;  %v10375_v62 = vld [vmem:[#allocation12 + $0xb34] sm:$0xf]  ;;  %v9329_v53 = vld [vmem:[#allocation12 + $0xb4c] sm:$0xf0] }
 0x345   :  { %v9416_v19 = vor.u32 %v10396_v47, %v9413_v12  ;;  %v10368_v47 = vld [vmem:[#allocation12 + $0xafc] sm:$0xf]  ;;  %v9301_v12 = vld [vmem:[#allocation12 + $0xb14] sm:$0xf0] }
 0x347   :  { %6147 = vmatpush.bf16.msra.mxu2 %v7964_v54  ;;  %6160 = vmatpush.bf16.msra.mxu3 %v8188_v25  ;;  %v9196_v54 = vor.u32 %v10344_v15, %v9195_v10  ;;  %v10445_v25 = vld [vmem:[#allocation12 + $0xd64] sm:$0xf]  ;;  %v10260_v15 = vld [vmem:[#allocation12 + $0x798] sm:$0xf0] }
 0x348   :  { %6069 = vmatpush.bf16.msrb.mxu0 %v8408_v26  ;;  %6082 = vmatpush.bf16.msrb.mxu1 %v8632_v58  ;;  %v9640_v26 = vor.u32 %v10452_v3, %v9637_v6  ;;  %v10389_v58 = vld [vmem:[#allocation12 + $0xba4] sm:$0xf]  ;;  %v9612_v30 = vor.u32 %v10445_v25, %v9609_v45  ;;  %v10424_v3 = vld [vmem:[#allocation12 + $0xcbc] sm:$0xf]  ;;  %v9525_v6 = vld [vmem:[#allocation12 + $0xcd4] sm:$0xf0]  ;;  %v8860_v27 = vor.u32 %v10260_v15, %v8859_v7 }
 0x349   :  { %v9388_v29 = vor.u32 %v10389_v58, %v9385_v22  ;;  %v9528_v25 = vor.u32 %v10424_v3, %v9525_v6  ;;  %v10361_v45 = vld [vmem:[#allocation12 + $0xac4] sm:$0xf]  ;;  %v8329_v3 = vld [vmem:[#allocation12 + $0x374] sm:$0xf0] }
 0x34b   :  { %6148 = vmatpush.bf16.msra.mxu2 %v7936_v43  ;;  %6161 = vmatpush.bf16.msra.mxu3 %v8160_v55  ;;  %v9581_v43 = vld [vmem:[#allocation12 + $0xd44] sm:$0xf0]  ;;  %v8915_v55 = vld [vmem:[#allocation12 + $0x7f0] sm:$0xf] }
 0x34c   :  { %6070 = vmatpush.bf16.msrb.mxu0 %v8380_v37  ;;  %6083 = vmatpush.bf16.msrb.mxu1 %v8604_v34  ;;  %v10382_v37 = vld [vmem:[#allocation12 + $0xb6c] sm:$0xf]  ;;  %v9357_v34 = vld [vmem:[#allocation12 + $0xb84] sm:$0xf0]  ;;  %v9584_v52 = vor.u32 %v10438_v59, %v9581_v43  ;;  %v8916_v4 = vor.u32 %v10274_v48, %v8915_v55  ;;  %v10309_v59 = vld [vmem:[#allocation12 + $0x920] sm:$0xf0] }
 0x34d   :  { %v9360_v56 = vor.u32 %v10382_v37, %v9357_v34  ;;  %v10253_v37 = vld [vmem:[#allocation12 + $0x760] sm:$0xf0]  ;;  %v9055_v34 = vld [vmem:[#allocation12 + $0x908] sm:$0xf]  ;;  %v10410_v48 = vld [vmem:[#allocation12 + $0xc4c] sm:$0xf] }
 0x34e   :  { %v9245_v55 = vld [vmem:[#allocation12 + $0xaa4] sm:$0xf0]  ;;  %v9056_v61 = vor.u32 %v10309_v59, %v9055_v34  ;;  %v10169_v34 = vld [vmem:[#allocation12 + $0x4c0] sm:$0xf0] }
 0x34f   :  { %6149 = vmatpush.bf16.msra.mxu2 %v7908_v57  ;;  %6162 = vmatpush.bf16.msra.mxu3 %v8132_v44  ;;  %v10975_v49 = vpop.f32.mrf.mxu0  ;;  %v10977_v18 = vpop.f32.mrf.mxu1  ;;  %v9111_v57 = vld [vmem:[#allocation12 + $0x978] sm:$0xf]  ;;  %v10323_v44 = vld [vmem:[#allocation12 + $0x990] sm:$0xf0]  ;;  %v8719_v59 = vld [vmem:[#allocation12 + $0x668] sm:$0xf] }
 0x350   :  { %6071 = vmatpush.bf16.msrb.mxu0 %v8352_v5  ;;  %6084 = vmatpush.bf16.msrb.mxu1 %v8576_v41  ;;  %v9140_v5 = vor.u32 %v10330_v51, %v9139_v40  ;;  %v10431_v41 = vld [vmem:[#allocation12 + $0xcf4] sm:$0xf]  ;;  %v9469_v40 = vld [vmem:[#allocation12 + $0xc64] sm:$0xf0] }
 0x352   :  { %6150 = vmatmul.bf16.vlgmr.msra.gmra.mxu2 %v10890_v32  ;;  %6163 = vmatmul.bf16.vlgmr.msra.gmra.mxu3 %v10892_v35 }
 0x353   :  { %6194 = vmatpush.bf16.msrb.mxu2 %v9000_v13  ;;  %6207 = vmatpush.bf16.msrb.mxu3 %v9224_v2  ;;  %v8888_v13 = vor.u32 %v10267_v46, %v8887_v1  ;;  %v9112_v2 = vor.u32 %v10323_v44, %v9111_v57  ;;  %v5853_v1 = vadd.f32 %v10961_v14, %v10959_v11  ;;  %v8775_v44 = vld [vmem:[#allocation12 + $0x6d8] sm:$0xf]  ;;  %v8523_v11 = vld [vmem:[#allocation12 + $0x4e0] sm:$0xf]  ;;  %v10176_v14 = vld [vmem:[#allocation12 + $0x4f8] sm:$0xf0] }
 0x354   :  { %6116 = vmatpush.bf16.msra.mxu0 %v9444_v60  ;;  %6129 = vmatpush.bf16.msra.mxu1 %v9668_v63  ;;  %v9332_v60 = vor.u32 %v10375_v62, %v9329_v53  ;;  %v9556_v63 = vor.u32 %v10431_v41, %v9553_v0  ;;  %v9027_v62 = vld [vmem:[#allocation12 + $0x8d0] sm:$0xf]  ;;  %v8551_v41 = vld [vmem:[#allocation12 + $0x518] sm:$0xf]  ;;  %v10183_v0 = vld [vmem:[#allocation12 + $0x530] sm:$0xf0] }
 0x355   :  { %6072 = vmatmul.bf16.vlgmr.msrb.gmra.mxu0 %v10900_v31  ;;  %6085 = vmatmul.bf16.vlgmr.msrb.gmra.mxu1 %v10902_v33 }
 0x357   :  { %6195 = vmatpush.bf16.msrb.mxu2 %v8972_v23  ;;  %6208 = vmatpush.bf16.msrb.mxu3 %v9196_v54  ;;  %v5815_v8 = vpop.f32.mrf.mxu0  ;;  %v5828_v10 = vpop.f32.mrf.mxu1  ;;  %v9304_v54 = vor.u32 %v10368_v47, %v9301_v12  ;;  %v9472_v12 = vor.u32 %v10410_v48, %v9469_v40  ;;  %v8049_v48 = vld [vmem:[#allocation12 + $0x144] sm:$0xf0]  ;;  %v10110_v40 = vld [vmem:[#allocation12 + $0x2ec] sm:$0xf] }
 0x358   :  { %6117 = vmatpush.bf16.msra.mxu0 %v9416_v19  ;;  %6130 = vmatpush.bf16.msra.mxu1 %v9640_v26  ;;  %v9083_v19 = vld [vmem:[#allocation12 + $0x940] sm:$0xf]  ;;  %v10316_v26 = vld [vmem:[#allocation12 + $0x958] sm:$0xf0]  ;;  %v5943_v58 = vpop.f32.mrf.mxu2  ;;  %v5956_v22 = vpop.f32.mrf.mxu3  ;;  %v8552_v10 = vor.u32 %v10183_v0, %v8551_v41  ;;  %v10162_v41 = vld [vmem:[#allocation12 + $0x488] sm:$0xf0] }
 0x359   :  { %v10979_v23 = vadd.f32 %v5956_v22, %v5943_v58  ;;  %v9084_v42 = vor.u32 %v10316_v26, %v9083_v19  ;;  %v8747_v58 = vld [vmem:[#allocation12 + $0x6a0] sm:$0xf]  ;;  %v10232_v22 = vld [vmem:[#allocation12 + $0x6b8] sm:$0xf0]  ;;  %v8691_v0 = vld [vmem:[#allocation12 + $0x630] sm:$0xf] }
 0x35b   :  { %6196 = vmatpush.bf16.msrb.mxu2 %v8944_v38  ;;  %6209 = vmatpush.bf16.msrb.mxu3 %v9168_v39  ;;  %v10354_v38 = vld [vmem:[#allocation12 + $0xa8c] sm:$0xf]  ;;  %v9276_v39 = vor.u32 %v10361_v45, %v9273_v20  ;;  %v10117_v45 = vld [vmem:[#allocation12 + $0x324] sm:$0xf]  ;;  %v8301_v20 = vld [vmem:[#allocation12 + $0x33c] sm:$0xf0] }
 0x35c   :  { %6118 = vmatpush.bf16.msra.mxu0 %v9388_v29  ;;  %6131 = vmatpush.bf16.msra.mxu1 %v9612_v30  ;;  %v9497_v29 = vld [vmem:[#allocation12 + $0xc9c] sm:$0xf0]  ;;  %v8831_v30 = vld [vmem:[#allocation12 + $0x748] sm:$0xf]  ;;  %v9248_v47 = vor.u32 %v10354_v38, %v9245_v55  ;;  %v10225_v38 = vld [vmem:[#allocation12 + $0x680] sm:$0xf0] }
 0x35d   :  { %v9500_v43 = vor.u32 %v10417_v28, %v9497_v29  ;;  %v8832_v51 = vor.u32 %v10253_v37, %v8831_v30  ;;  %v8524_v30 = vor.u32 %v10176_v14, %v8523_v11  ;;  %v8748_v37 = vor.u32 %v10232_v22, %v8747_v58  ;;  %v10054_v55 = vld [vmem:[#allocation12 + $0x12c] sm:$0xf]  ;;  %v8663_v11 = vld [vmem:[#allocation12 + $0x5f8] sm:$0xf]  ;;  %v10211_v14 = vld [vmem:[#allocation12 + $0x610] sm:$0xf0] }
 0x35f   :  { %6197 = vmatpush.bf16.msrb.mxu2 %v8916_v4  ;;  %6210 = vmatpush.bf16.msrb.mxu3 %v9140_v5  ;;  %v5865_v53 = vpop.f32.mrf.mxu0  ;;  %v5878_v4 = vpop.f32.mrf.mxu1  ;;  %v10302_v5 = vld [vmem:[#allocation12 + $0x8e8] sm:$0xf0] }
 0x360   :  { %6119 = vmatpush.bf16.msra.mxu0 %v9360_v56  ;;  %6132 = vmatpush.bf16.msra.mxu1 %v9584_v52  ;;  %v8803_v56 = vld [vmem:[#allocation12 + $0x710] sm:$0xf]  ;;  %v10246_v52 = vld [vmem:[#allocation12 + $0x728] sm:$0xf0]  ;;  %v5945_v46 = vpop.f32.mrf.mxu2  ;;  %v5958_v57 = vpop.f32.mrf.mxu3  ;;  %v5866_v6 = vadd.f32 %v5865_v53, %v5853_v1  ;;  %v9028_v8 = vor.u32 %v10302_v5, %v9027_v62  ;;  %v8720_v53 = vor.u32 %v10225_v38, %v8719_v59 }
 0x361   :  { %v8804_v7 = vor.u32 %v10246_v52, %v8803_v56  ;;  %v6462_v56 = vld [vmem:[#allocation1 + $0x9] sm:$0xff] }
 0x362   :  { %v8467_v5 = vld [vmem:[#allocation12 + $0x470] sm:$0xf]  ;;  %v6471_v57 = vpack.i.b16 %v6462_v56, %v6462_v56 }
 0x363   :  { %6198 = vmatpush.bf16.msrb.mxu2 %v8888_v13  ;;  %6211 = vmatpush.bf16.msrb.mxu3 %v9112_v2  ;;  %v8105_v13 = vld [vmem:[#allocation12 + $0x1b4] sm:$0xf0]  ;;  %v10124_v2 = vld [vmem:[#allocation12 + $0x35c] sm:$0xf] }
 0x364   :  { %6120 = vmatpush.bf16.msra.mxu0 %v9332_v60  ;;  %6133 = vmatpush.bf16.msra.mxu1 %v9556_v63  ;;  %v10239_v60 = vld [vmem:[#allocation12 + $0x6f0] sm:$0xf0]  ;;  %v10068_v63 = vld [vmem:[#allocation12 + $0x19c] sm:$0xf]  ;;  %v8332_v26 = vor.u32 %v10124_v2, %v8329_v3  ;;  %v8439_v2 = vld [vmem:[#allocation12 + $0x438] sm:$0xf] }
 0x365   :  { %v8776_v15 = vor.u32 %v10239_v60, %v8775_v44  ;;  %v8108_v19 = vor.u32 %v10068_v63, %v8105_v13  ;;  %v10218_v44 = vld [vmem:[#allocation12 + $0x648] sm:$0xf0]  ;;  %v10047_v60 = vld [vmem:[#allocation12 + $0xf4] sm:$0xf]  ;;  %v6473_v58 = vperm.slane %v6471_v57, 0 }
 0x366   :  { %v10103_v63 = vld [vmem:[#allocation12 + $0x2b4] sm:$0xf] }
 0x367   :  { %6199 = vmatpush.bf16.msrb.mxu2 %v8860_v27  ;;  %6212 = vmatpush.bf16.msrb.mxu3 %v9084_v42  ;;  %v5879_v27 = vadd.f32 %v5878_v4, %v5866_v6  ;;  %v8495_v42 = vld [vmem:[#allocation12 + $0x4a8] sm:$0xf]  ;;  %v5867_v28 = vpop.f32.mrf.mxu0  ;;  %v5880_v29 = vpop.f32.mrf.mxu1  ;;  %v8052_v4 = vor.u32 %v10054_v55, %v8049_v48  ;;  %v6497_v59 = vunpack.c.l.bf16 %v6473_v58  ;;  %v10033_v55 = vld [vmem:[#allocation12 + $0x84] sm:$0xf]  ;;  %v7965_v48 = vld [vmem:[#allocation12 + $0x9c] sm:$0xf0] }
 0x368   :  { %6121 = vmatpush.bf16.msra.mxu0 %v9304_v54  ;;  %6134 = vmatpush.bf16.msra.mxu1 %v9528_v25  ;;  %v10061_v54 = vld [vmem:[#allocation12 + $0x164] sm:$0xf]  ;;  %v8077_v25 = vld [vmem:[#allocation12 + $0x17c] sm:$0xf0]  ;;  %v8496_v62 = vor.u32 %v10169_v34, %v8495_v42  ;;  %v10148_v29 = vld [vmem:[#allocation12 + $0x418] sm:$0xf0] }
 0x369   :  { %v5892_v52 = vadd.f32 %v10967_v9, %v5879_v27  ;;  %v8021_v9 = vld [vmem:[#allocation12 + $0x10c] sm:$0xf0]  ;;  %v8664_v27 = vor.u32 %v10211_v14, %v8663_v11  ;;  %v8411_v28 = vld [vmem:[#allocation12 + $0x400] sm:$0xf] }
 0x36b   :  { %6200 = vmatpush.bf16.msrb.mxu2 %v8832_v51  ;;  %6213 = vmatpush.bf16.msrb.mxu3 %v9056_v61  ;;  %v8273_v51 = vld [vmem:[#allocation12 + $0x304] sm:$0xf0]  ;;  %v5905_v13 = vadd.f32 %v10969_v36, %v5892_v52  ;;  %v10096_v36 = vld [vmem:[#allocation12 + $0x27c] sm:$0xf] }
 0x36c   :  { %6122 = vmatpush.bf16.msra.mxu0 %v9276_v39  ;;  %6135 = vmatpush.bf16.msra.mxu1 %v9500_v43  ;;  %v8080_v39 = vor.u32 %v10061_v54, %v8077_v25  ;;  %v8304_v43 = vor.u32 %v10117_v45, %v8301_v20  ;;  %v6461_v61 = vld [vmem:[#allocation1] sm:$0xff]  ;;  %v8276_v1 = vor.u32 %v10110_v40, %v8273_v51  ;;  %v8217_v54 = vld [vmem:[#allocation12 + $0x294] sm:$0xf0]  ;;  %v10089_v40 = vld [vmem:[#allocation12 + $0x244] sm:$0xf] }
 0x36d   :  { %v6468_v46 = vpack.i.b16 %v6461_v61, %v6461_v61  ;;  %v8220_v38 = vor.u32 %v10096_v36, %v8217_v54  ;;  %v8189_v51 = vld [vmem:[#allocation12 + $0x25c] sm:$0xf0]  ;;  %v8133_v36 = vld [vmem:[#allocation12 + $0x1ec] sm:$0xf0]  ;;  %v9447_v54 = vld [vmem:[#allocation12 + $0xc18] sm:$0xf] }
 0x36e   :  { %v8192_v57 = vor.u32 %v10089_v40, %v8189_v51 }
 0x36f   :  { %6201 = vmatpush.bf16.msrb.mxu2 %v8804_v7  ;;  %6214 = vmatpush.bf16.msrb.mxu3 %v9028_v8  ;;  %v8468_v7 = vor.u32 %v10162_v41, %v8467_v5  ;;  %v8692_v8 = vor.u32 %v10218_v44, %v8691_v0  ;;  %v7968_v5 = vor.u32 %v10033_v55, %v7965_v48  ;;  %v8383_v41 = vld [vmem:[#allocation12 + $0x3c8] sm:$0xf]  ;;  %v10141_v0 = vld [vmem:[#allocation12 + $0x3e0] sm:$0xf0]  ;;  %v9419_v55 = vld [vmem:[#allocation12 + $0xbe0] sm:$0xf] }
 0x370   :  { %6123 = vmatpush.bf16.msra.mxu0 %v9248_v47  ;;  %6136 = vmatpush.bf16.msra.mxu1 %v9472_v12  ;;  %v8245_v47 = vld [vmem:[#allocation12 + $0x2cc] sm:$0xf0]  ;;  %v5814_v12 = vadd.f32 %v10975_v49, %v10957_v24  ;;  %v10040_v24 = vld [vmem:[#allocation12 + $0xbc] sm:$0xf]  ;;  %v7993_v49 = vld [vmem:[#allocation12 + $0xd4] sm:$0xf0] }
 0x371   :  { %v8248_v22 = vor.u32 %v10103_v63, %v8245_v47  ;;  %v7996_v42 = vor.u32 %v10040_v24, %v7993_v49  ;;  %v8607_v44 = vld [vmem:[#allocation12 + $0x588] sm:$0xf]  ;;  %v10082_v47 = vld [vmem:[#allocation12 + $0x20c] sm:$0xf]  ;;  %v7909_v24 = vld [vmem:[#allocation12 + $0x2c] sm:$0xf0] }
 0x372   :  { %6202 = vmatmul.bf16.vlgmr.msrb.gmra.mxu2 %v10914_v16  ;;  %6215 = vmatmul.bf16.vlgmr.msrb.gmra.mxu3 %v10916_v17  ;;  %v5917_v3 = vpop.f32.mrf.mxu0  ;;  %v5930_v6 = vpop.f32.mrf.mxu1  ;;  %v5827_v25 = vadd.f32 %v10977_v18, %v5814_v12  ;;  %v10204_v18 = vld [vmem:[#allocation12 + $0x5d8] sm:$0xf0]  ;;  %v7937_v63 = vld [vmem:[#allocation12 + $0x64] sm:$0xf0]  ;;  %v10075_v49 = vld [vmem:[#allocation12 + $0x1d4] sm:$0xf] }
 0x373   :  { %6246 = vmatpush.bf16.msra.mxu2 %v8108_v19  ;;  %6259 = vmatpush.bf16.msra.mxu3 %v8332_v26  ;;  %v5918_v19 = vadd.f32 %v5917_v3, %v5905_v13  ;;  %v6470_v26 = vperm.slane %v6468_v46, 0  ;;  %v8161_v12 = vld [vmem:[#allocation12 + $0x224] sm:$0xf0]  ;;  %v8384_v3 = vor.u32 %v10141_v0, %v8383_v41  ;;  %v10400_v48 = vld [vmem:[#allocation12 + $0xbf8] sm:$0xf0] }
 0x374   :  { %6168 = vmatpush.bf16.msrb.mxu0 %v8552_v10  ;;  %6181 = vmatpush.bf16.msrb.mxu1 %v8776_v15  ;;  %v8024_v10 = vor.u32 %v10047_v60, %v8021_v9  ;;  %v10155_v15 = vld [vmem:[#allocation12 + $0x450] sm:$0xf0]  ;;  %v10197_v60 = vld [vmem:[#allocation12 + $0x5a0] sm:$0xf0]  ;;  %v10026_v9 = vld [vmem:[#allocation12 + $0x4c] sm:$0xf]  ;;  %v9420_v0 = vor.u32 %v10400_v48, %v9419_v55 }
 0x375   :  { %6124 = vmatmul.bf16.vlgmr.msra.gmra.mxu0 %v10936_v21  ;;  %6137 = vmatmul.bf16.vlgmr.msra.gmra.mxu1 %v10938_v50  ;;  %v5931_v45 = vadd.f32 %v5930_v6, %v5918_v19  ;;  %v8440_v20 = vor.u32 %v10155_v15, %v8439_v2  ;;  %v6496_v34 = vunpack.c.l.bf16 %v6470_v26  ;;  %v8355_v2 = vld [vmem:[#allocation12 + $0x390] sm:$0xf]  ;;  %v8608_v6 = vor.u32 %v10197_v60, %v8607_v44 }
 0x376   :  { %v7940_v14 = vor.u32 %v10026_v9, %v7937_v63  ;;  %v8164_v19 = vor.u32 %v10082_v47, %v8161_v12  ;;  %v9615_v63 = vld [vmem:[#allocation12 + $0xd68] sm:$0xf]  ;;  %v10449_v47 = vld [vmem:[#allocation12 + $0xd80] sm:$0xf0]  ;;  %v10278_v12 = vld [vmem:[#allocation12 + $0x82c] sm:$0xf] }
 0x377   :  { %6247 = vmatpush.bf16.msra.mxu2 %v8080_v39  ;;  %6260 = vmatpush.bf16.msra.mxu3 %v8304_v43  ;;  %v10992_v39 = vpop.f32.mrf.mxu2  ;;  %v10994_v43 = vpop.f32.mrf.mxu3 }
 0x378   :  { %6169 = vmatpush.bf16.msrb.mxu0 %v8524_v30  ;;  %6182 = vmatpush.bf16.msrb.mxu1 %v8748_v37  ;;  %v8635_v30 = vld [vmem:[#allocation12 + $0x5c0] sm:$0xf]  ;;  %v6454_v37 = vpack.c.bf16 %v5931_v45, %v5827_v25  ;;  %v10407_v25 = vld [vmem:[#allocation12 + $0xc30] sm:$0xf0]  ;;  %v9671_v45 = vld [vmem:[#allocation12 + $0xdd8] sm:$0xf] }
 0x37a   :  { %v6489_v61 = vunpack.c.l.bf16 %v6454_v37  ;;  %v6490_v56 = vunpack.c.h.bf16 %v6454_v37  ;;  %v5919_v52 = vpop.f32.mrf.mxu0  ;;  %v9225_v37 = vld [vmem:[#allocation12 + $0xa74] sm:$0xf0] }
 0x37b   :  { %6248 = vmatpush.bf16.msra.mxu2 %v8052_v4  ;;  %6261 = vmatpush.bf16.msra.mxu3 %v8276_v1  ;;  %v8636_v4 = vor.u32 %v10204_v18, %v8635_v30  ;;  %v10348_v30 = vld [vmem:[#allocation12 + $0xa5c] sm:$0xf]  ;;  %v10285_v52 = vld [vmem:[#allocation12 + $0x864] sm:$0xf] }
 0x37c   :  { %6170 = vmatpush.bf16.msrb.mxu0 %v8496_v62  ;;  %6183 = vmatpush.bf16.msrb.mxu1 %v8720_v53  ;;  %v5932_v62 = vpop.f32.mrf.mxu1  ;;  %v8412_v53 = vor.u32 %v10148_v29, %v8411_v28  ;;  %v6503_v1 = vadd.f32 %v6496_v34, %v6489_v61  ;;  %v6504_v46 = vadd.f32 %v6497_v59, %v6490_v56  ;;  %v9001_v29 = vld [vmem:[#allocation12 + $0x8b4] sm:$0xf0]  ;;  %v9643_v61 = vld [vmem:[#allocation12 + $0xda0] sm:$0xf]  ;;  %v10456_v56 = vld [vmem:[#allocation12 + $0xdb8] sm:$0xf0] }
 0x37d   :  { %v8136_v59 = vor.u32 %v10075_v49, %v8133_v36  ;;  %v9228_v51 = vor.u32 %v10348_v30, %v9225_v37  ;;  %v8973_v62 = vld [vmem:[#allocation12 + $0x87c] sm:$0xf0]  ;;  %v10435_v30 = vld [vmem:[#allocation12 + $0xd10] sm:$0xf0]  ;;  %v10264_v37 = vld [vmem:[#allocation12 + $0x7bc] sm:$0xf] }
 0x37e   :  { %v6510_v13 = vpack.c.bf16 %v6504_v46, %v6503_v1  ;;  %v9644_v1 = vor.u32 %v10456_v56, %v9643_v61  ;;  %v9391_v46 = vld [vmem:[#allocation12 + $0xba8] sm:$0xf]  ;;  %v8976_v60 = vor.u32 %v10285_v52, %v8973_v62  ;;  %v9531_v52 = vld [vmem:[#allocation12 + $0xcc0] sm:$0xf]  ;;  %v10428_v62 = vld [vmem:[#allocation12 + $0xcd8] sm:$0xf0] }
 0x37f   :  { %6249 = vmatpush.bf16.msra.mxu2 %v8024_v10  ;;  %6262 = vmatpush.bf16.msra.mxu3 %v8248_v22  ;;  %v10190_v10 = vld [vmem:[#allocation12 + $0x568] sm:$0xf0]  ;;  %v5997_v26 = vpop.f32.mrf.mxu2  ;;  %v6010_v58 = vpop.f32.mrf.mxu3  ;;  %v10019_v22 = vld [vmem:[#allocation12 + $0x14] sm:$0xf] }
 0x380   :  { %6171 = vmatpush.bf16.msrb.mxu0 %v8468_v7  ;;  %6184 = vmatpush.bf16.msrb.mxu1 %v8692_v8  ;;  %v10134_v7 = vld [vmem:[#allocation12 + $0x3a8] sm:$0xf0]  ;;  %v8579_v8 = vld [vmem:[#allocation12 + $0x550] sm:$0xf]  ;;  %v6514_v15 = vunpack.c.l.bf16 %v6510_v13  ;;  %v6515_v11 = vunpack.c.h.bf16 %v6510_v13  ;;  %v7912_v34 = vor.u32 %v10019_v22, %v7909_v24  ;;  %v8945_v13 = vld [vmem:[#allocation12 + $0x844] sm:$0xf0] }
 0x381   :  { %v8580_v28 = vor.u32 %v10190_v10, %v8579_v8  ;;  %v9363_v8 = vld [vmem:[#allocation12 + $0xb70] sm:$0xf]  ;;  %v10386_v10 = vld [vmem:[#allocation12 + $0xb88] sm:$0xf0]  ;;  %v10271_v26 = vld [vmem:[#allocation12 + $0x7f4] sm:$0xf] }
 0x382   :  { %10481 = vtanh.f32 %v6514_v15  ;;  %v8948_v15 = vor.u32 %v10278_v12, %v8945_v13  ;;  %v8917_v58 = vld [vmem:[#allocation12 + $0x80c] sm:$0xf0]  ;;  %v10327_v22 = vld [vmem:[#allocation12 + $0x9b4] sm:$0xf] }
 0x383   :  { %6250 = vmatpush.bf16.msra.mxu2 %v7996_v42  ;;  %6263 = vmatpush.bf16.msra.mxu3 %v8220_v38  ;;  %10483 = vtanh.f32 %v6515_v11  ;;  %v8356_v42 = vor.u32 %v10134_v7, %v8355_v2  ;;  %v9448_v38 = vor.u32 %v10407_v25, %v9447_v54  ;;  %v10334_v2 = vld [vmem:[#allocation12 + $0x9ec] sm:$0xf]  ;;  %v9616_v7 = vor.u32 %v10449_v47, %v9615_v63  ;;  %v9141_v24 = vld [vmem:[#allocation12 + $0x9cc] sm:$0xf0]  ;;  %v9279_v63 = vld [vmem:[#allocation12 + $0xac8] sm:$0xf] }
 0x384   :  { %6172 = vmatpush.bf16.msrb.mxu0 %v8440_v20  ;;  %6185 = vmatpush.bf16.msrb.mxu1 %v8664_v27  ;;  %v10463_v20 = vld [vmem:[#allocation12 + $0xdf0] sm:$0xf0]  ;;  %v10292_v27 = vld [vmem:[#allocation12 + $0x89c] sm:$0xf]  ;;  %v9364_v25 = vor.u32 %v10386_v10, %v9363_v8  ;;  %v10365_v47 = vld [vmem:[#allocation12 + $0xae0] sm:$0xf0] }
 0x385   :  { %v9672_v18 = vor.u32 %v10463_v20, %v9671_v45  ;;  %v9004_v40 = vor.u32 %v10292_v27, %v9001_v29  ;;  %v9335_v20 = vld [vmem:[#allocation12 + $0xb38] sm:$0xf]  ;;  %v10379_v27 = vld [vmem:[#allocation12 + $0xb50] sm:$0xf0]  ;;  %v9057_v8 = vld [vmem:[#allocation12 + $0x924] sm:$0xf0] }
 0x386   :  { %v9559_v29 = vld [vmem:[#allocation12 + $0xcf8] sm:$0xf]  ;;  %v9251_v10 = vld [vmem:[#allocation12 + $0xa90] sm:$0xf] }
 0x387   :  { %6251 = vmatpush.bf16.msra.mxu2 %v7968_v5  ;;  %6264 = vmatpush.bf16.msra.mxu3 %v8192_v57  ;;  %v10393_v57 = vld [vmem:[#allocation12 + $0xbc0] sm:$0xf0]  ;;  %v9560_v48 = vor.u32 %v10435_v30, %v9559_v29  ;;  %v8111_v29 = vld [vmem:[#allocation12 + $0x1a0] sm:$0xf] }
 0x388   :  { %6173 = vmatpush.bf16.msrb.mxu0 %v8412_v53  ;;  %6186 = vmatpush.bf16.msrb.mxu1 %v8636_v4  ;;  %v10341_v53 = vld [vmem:[#allocation12 + $0xa24] sm:$0xf]  ;;  %v9197_v4 = vld [vmem:[#allocation12 + $0xa3c] sm:$0xf0]  ;;  %v10482_v5 = vpop.eup %10481 }
 0x389   :  { %v10484_v41 = vpop.eup %10483  ;;  %v9200_v9 = vor.u32 %v10341_v53, %v9197_v4  ;;  %v10257_v53 = vld [vmem:[#allocation12 + $0x784] sm:$0xf] }
 0x38a   :  { %v6528_v44 = vpack.c.bf16 %v10484_v41, %v10482_v5  ;;  %v8861_v41 = vld [vmem:[#allocation12 + $0x79c] sm:$0xf0] }
 0x38b   :  { %6252 = vmatpush.bf16.msra.mxu2 %v7940_v14  ;;  %6265 = vmatpush.bf16.msra.mxu3 %v8164_v19  ;;  %v9587_v14 = vld [vmem:[#allocation12 + $0xd30] sm:$0xf]  ;;  %v10442_v19 = vld [vmem:[#allocation12 + $0xd48] sm:$0xf0]  ;;  %v8864_v12 = vor.u32 %v10257_v53, %v8861_v41  ;;  %v8083_v53 = vld [vmem:[#allocation12 + $0x168] sm:$0xf] }
 0x38c   :  { %6174 = vmatpush.bf16.msrb.mxu0 %v8384_v3  ;;  %6187 = vmatpush.bf16.msrb.mxu1 %v8608_v6  ;;  %v9169_v3 = vld [vmem:[#allocation12 + $0xa04] sm:$0xf0]  ;;  %6532 = vst [vmem:[%s11073_s9] sm:$0xff] %v6528_v44  ;;  %v9392_v6 = vor.u32 %v10393_v57, %v9391_v46  ;;  %v9588_v45 = vor.u32 %v10442_v19, %v9587_v14  ;;  %v10358_v14 = vld [vmem:[#allocation12 + $0xaa8] sm:$0xf0]  ;;  %v9475_v19 = vld [vmem:[#allocation12 + $0xc50] sm:$0xf] }
 0x38d   :  { %v9172_v11 = vor.u32 %v10334_v2, %v9169_v3  ;;  %v9503_v2 = vld [vmem:[#allocation12 + $0xc88] sm:$0xf]  ;;  %v10421_v3 = vld [vmem:[#allocation12 + $0xca0] sm:$0xf0]  ;;  %v9252_v30 = vor.u32 %v10358_v14, %v9251_v10  ;;  %v8693_v14 = vld [vmem:[#allocation12 + $0x64c] sm:$0xf0] }
 0x38e   :  { %v10121_v41 = vld [vmem:[#allocation12 + $0x340] sm:$0xf0] }
 0x38f   :  { %6253 = vmatpush.bf16.msra.mxu2 %v7912_v34  ;;  %6266 = vmatpush.bf16.msra.mxu3 %v8136_v59  ;;  %v8889_v59 = vld [vmem:[#allocation12 + $0x7d4] sm:$0xf0] }
 0x390   :  { %6175 = vmatpush.bf16.msrb.mxu0 %v8356_v42  ;;  %6188 = vmatpush.bf16.msrb.mxu1 %v8580_v28  ;;  %v8920_v42 = vor.u32 %v10271_v26, %v8917_v58  ;;  %v9144_v28 = vor.u32 %v10327_v22, %v9141_v24  ;;  %v8892_v61 = vor.u32 %v10264_v37, %v8889_v59  ;;  %v10414_v26 = vld [vmem:[#allocation12 + $0xc68] sm:$0xf0]  ;;  %v10243_v24 = vld [vmem:[#allocation12 + $0x714] sm:$0xf]  ;;  %v8335_v59 = vld [vmem:[#allocation12 + $0x360] sm:$0xf] }
 0x391   :  { %v9476_v37 = vor.u32 %v10414_v26, %v9475_v19  ;;  %v8027_v19 = vld [vmem:[#allocation12 + $0xf8] sm:$0xf]  ;;  %v10051_v26 = vld [vmem:[#allocation12 + $0x110] sm:$0xf0] }
 0x392   :  { %6254 = vmatmul.bf16.vlgmr.msra.gmra.mxu2 %v10890_v32  ;;  %6267 = vmatmul.bf16.vlgmr.msra.gmra.mxu3 %v10892_v35  ;;  %v5969_v49 = vpop.f32.mrf.mxu0  ;;  %v5982_v36 = vpop.f32.mrf.mxu1 }
 0x393   :  { %6298 = vmatpush.bf16.msrb.mxu2 %v9004_v40  ;;  %6311 = vmatpush.bf16.msrb.mxu3 %v9228_v51  ;;  %v5970_v54 = vadd.f32 %v5969_v49, %v10979_v23  ;;  %v9336_v23 = vor.u32 %v10379_v27, %v9335_v20  ;;  %v9307_v40 = vld [vmem:[#allocation12 + $0xb00] sm:$0xf]  ;;  %v10372_v51 = vld [vmem:[#allocation12 + $0xb18] sm:$0xf0]  ;;  %v8805_v49 = vld [vmem:[#allocation12 + $0x72c] sm:$0xf0] }
 0x394   :  { %6220 = vmatpush.bf16.msra.mxu0 %v9448_v38  ;;  %6233 = vmatpush.bf16.msra.mxu1 %v9672_v18  ;;  %v10320_v38 = vld [vmem:[#allocation12 + $0x97c] sm:$0xf]  ;;  %v9113_v18 = vld [vmem:[#allocation12 + $0x994] sm:$0xf0] }
 0x395   :  { %6176 = vmatmul.bf16.vlgmr.msrb.gmra.mxu0 %v10900_v31  ;;  %6189 = vmatmul.bf16.vlgmr.msrb.gmra.mxu1 %v10902_v33  ;;  %v5983_v34 = vadd.f32 %v5982_v36, %v5970_v54  ;;  %v9116_v56 = vor.u32 %v10320_v38, %v9113_v18  ;;  %v6047_v4 = vpop.f32.mrf.mxu2  ;;  %v6060_v5 = vpop.f32.mrf.mxu3  ;;  %v10299_v36 = vld [vmem:[#allocation12 + $0x8d4] sm:$0xf]  ;;  %v10180_v20 = vld [vmem:[#allocation12 + $0x51c] sm:$0xf]  ;;  %v8553_v27 = vld [vmem:[#allocation12 + $0x534] sm:$0xf0]  ;;  %v8808_v18 = vor.u32 %v10243_v24, %v8805_v49 }
 0x396   :  { %v11008_v46 = vadd.f32 %v6060_v5, %v6047_v4  ;;  %v10128_v38 = vld [vmem:[#allocation12 + $0x378] sm:$0xf0]  ;;  %v10065_v4 = vld [vmem:[#allocation12 + $0x180] sm:$0xf0]  ;;  %v8307_v5 = vld [vmem:[#allocation12 + $0x328] sm:$0xf] }
 0x397   :  { %6299 = vmatpush.bf16.msrb.mxu2 %v8976_v60  ;;  %6312 = vmatpush.bf16.msrb.mxu3 %v9200_v9  ;;  %v5996_v55 = vadd.f32 %v10992_v39, %v5983_v34  ;;  %v9308_v60 = vor.u32 %v10372_v51, %v9307_v40  ;;  %v9532_v9 = vor.u32 %v10428_v62, %v9531_v52  ;;  %v10072_v34 = vld [vmem:[#allocation12 + $0x1b8] sm:$0xf0]  ;;  %v10173_v40 = vld [vmem:[#allocation12 + $0x4e4] sm:$0xf]  ;;  %v8525_v51 = vld [vmem:[#allocation12 + $0x4fc] sm:$0xf0] }
 0x398   :  { %6221 = vmatpush.bf16.msra.mxu0 %v9420_v0  ;;  %6234 = vmatpush.bf16.msra.mxu1 %v9644_v1  ;;  %v10313_v0 = vld [vmem:[#allocation12 + $0x944] sm:$0xf]  ;;  %v9085_v1 = vld [vmem:[#allocation12 + $0x95c] sm:$0xf0] }
 0x399   :  { %v11006_v39 = vadd.f32 %v10994_v43, %v5996_v55  ;;  %v9088_v13 = vor.u32 %v10313_v0, %v9085_v1  ;;  %v10306_v43 = vld [vmem:[#allocation12 + $0x90c] sm:$0xf]  ;;  %v10229_v52 = vld [vmem:[#allocation12 + $0x6a4] sm:$0xf]  ;;  %v8749_v62 = vld [vmem:[#allocation12 + $0x6bc] sm:$0xf0]  ;;  %v8528_v0 = vor.u32 %v10173_v40, %v8525_v51 }
 0x39a   :  { %v5971_v57 = vpop.f32.mrf.mxu0  ;;  %v5984_v44 = vpop.f32.mrf.mxu1  ;;  %v9060_v22 = vor.u32 %v10306_v43, %v9057_v8  ;;  %v8752_v1 = vor.u32 %v10229_v52, %v8749_v62  ;;  %v10159_v43 = vld [vmem:[#allocation12 + $0x474] sm:$0xf]  ;;  %v8469_v8 = vld [vmem:[#allocation12 + $0x48c] sm:$0xf0]  ;;  %v10201_v40 = vld [vmem:[#allocation12 + $0x5c4] sm:$0xf] }
 0x39b   :  { %6300 = vmatpush.bf16.msrb.mxu2 %v8948_v15  ;;  %6313 = vmatpush.bf16.msrb.mxu3 %v9172_v11  ;;  %v9280_v15 = vor.u32 %v10365_v47, %v9279_v63  ;;  %v9504_v11 = vor.u32 %v10421_v3, %v9503_v2  ;;  %v10166_v57 = vld [vmem:[#allocation12 + $0x4ac] sm:$0xf]  ;;  %v8497_v44 = vld [vmem:[#allocation12 + $0x4c4] sm:$0xf0]  ;;  %v8279_v2 = vld [vmem:[#allocation12 + $0x2f0] sm:$0xf] }
 0x39c   :  { %6222 = vmatpush.bf16.msra.mxu0 %v9392_v6  ;;  %6235 = vmatpush.bf16.msra.mxu1 %v9616_v7  ;;  %v10250_v6 = vld [vmem:[#allocation12 + $0x74c] sm:$0xf]  ;;  %v8833_v7 = vld [vmem:[#allocation12 + $0x764] sm:$0xf0]  ;;  %v8637_v51 = vld [vmem:[#allocation12 + $0x5dc] sm:$0xf0] }
 0x39d   :  { %v8836_v58 = vor.u32 %v10250_v6, %v8833_v7  ;;  %v6049_v54 = vpop.f32.mrf.mxu2  ;;  %v10222_v63 = vld [vmem:[#allocation12 + $0x66c] sm:$0xf]  ;;  %v8721_v47 = vld [vmem:[#allocation12 + $0x684] sm:$0xf0]  ;;  %v8500_v6 = vor.u32 %v10166_v57, %v8497_v44  ;;  %v10037_v62 = vld [vmem:[#allocation12 + $0xa0] sm:$0xf0] }
 0x39e   :  { %v10114_v3 = vld [vmem:[#allocation12 + $0x308] sm:$0xf0]  ;;  %v8724_v7 = vor.u32 %v10222_v63, %v8721_v47  ;;  %v8385_v44 = vld [vmem:[#allocation12 + $0x3e4] sm:$0xf0] }
 0x39f   :  { %6301 = vmatpush.bf16.msrb.mxu2 %v8920_v42  ;;  %6314 = vmatpush.bf16.msrb.mxu3 %v9144_v28  ;;  %v10236_v42 = vld [vmem:[#allocation12 + $0x6dc] sm:$0xf]  ;;  %v8777_v28 = vld [vmem:[#allocation12 + $0x6f4] sm:$0xf0]  ;;  %v10138_v57 = vld [vmem:[#allocation12 + $0x3cc] sm:$0xf] }
 0x3a0   :  { %6223 = vmatpush.bf16.msra.mxu0 %v9364_v25  ;;  %6236 = vmatpush.bf16.msra.mxu1 %v9588_v45  ;;  %v6062_v25 = vpop.f32.mrf.mxu3  ;;  %v9029_v45 = vld [vmem:[#allocation12 + $0x8ec] sm:$0xf0]  ;;  %v10194_v63 = vld [vmem:[#allocation12 + $0x58c] sm:$0xf]  ;;  %v8609_v47 = vld [vmem:[#allocation12 + $0x5a4] sm:$0xf0] }
 0x3a1   :  { %v9032_v55 = vor.u32 %v10299_v36, %v9029_v45  ;;  %v8472_v36 = vor.u32 %v10159_v43, %v8469_v8  ;;  %v10152_v25 = vld [vmem:[#allocation12 + $0x43c] sm:$0xf]  ;;  %v8441_v45 = vld [vmem:[#allocation12 + $0x454] sm:$0xf0]  ;;  %v8612_v43 = vor.u32 %v10194_v63, %v8609_v47  ;;  %v8357_v8 = vld [vmem:[#allocation12 + $0x3ac] sm:$0xf0] }
 0x3a2   :  { %v10446_v63 = vld [vmem:[#allocation12 + $0xd6c] sm:$0xf]  ;;  %v9617_v47 = vld [vmem:[#allocation12 + $0xd84] sm:$0xf0] }
 0x3a3   :  { %6302 = vmatpush.bf16.msrb.mxu2 %v8892_v61  ;;  %6315 = vmatpush.bf16.msrb.mxu3 %v9116_v56  ;;  %v8112_v61 = vor.u32 %v10072_v34, %v8111_v29  ;;  %v8336_v56 = vor.u32 %v10128_v38, %v8335_v59  ;;  %v7999_v29 = vld [vmem:[#allocation12 + $0xc0] sm:$0xf]  ;;  %v10100_v34 = vld [vmem:[#allocation12 + $0x298] sm:$0xf0]  ;;  %v8444_v59 = vor.u32 %v10152_v25, %v8441_v45  ;;  %v9449_v45 = vld [vmem:[#allocation12 + $0xc34] sm:$0xf0] }
 0x3a4   :  { %6224 = vmatpush.bf16.msra.mxu0 %v9336_v23  ;;  %6237 = vmatpush.bf16.msra.mxu1 %v9560_v48  ;;  %v8556_v23 = vor.u32 %v10180_v20, %v8553_v27  ;;  %v8780_v48 = vor.u32 %v10236_v42, %v8777_v28  ;;  %v8028_v20 = vor.u32 %v10051_v26, %v8027_v19  ;;  %v10208_v42 = vld [vmem:[#allocation12 + $0x5fc] sm:$0xf]  ;;  %v8665_v28 = vld [vmem:[#allocation12 + $0x614] sm:$0xf0]  ;;  %v10023_v26 = vld [vmem:[#allocation12 + $0x30] sm:$0xf0] }
 0x3a5   :  { %v8668_v38 = vor.u32 %v10208_v42, %v8665_v28  ;;  %v7915_v19 = vld [vmem:[#allocation12 + $0x18] sm:$0xf]  ;;  %v10404_v25 = vld [vmem:[#allocation12 + $0xc1c] sm:$0xf]  ;;  %v9007_v42 = vld [vmem:[#allocation12 + $0x8a0] sm:$0xf] }
 0x3a7   :  { %6303 = vmatpush.bf16.msrb.mxu2 %v8864_v12  ;;  %6316 = vmatpush.bf16.msrb.mxu3 %v9088_v13  ;;  %v8055_v12 = vld [vmem:[#allocation12 + $0x130] sm:$0xf]  ;;  %v10058_v13 = vld [vmem:[#allocation12 + $0x148] sm:$0xf0] }
 0x3a8   :  { %6225 = vmatpush.bf16.msra.mxu0 %v9308_v60  ;;  %6238 = vmatpush.bf16.msra.mxu1 %v9532_v9  ;;  %v8084_v60 = vor.u32 %v10065_v4, %v8083_v53  ;;  %v8308_v9 = vor.u32 %v10121_v41, %v8307_v5  ;;  %v8056_v10 = vor.u32 %v10058_v13, %v8055_v12  ;;  %v8195_v53 = vld [vmem:[#allocation12 + $0x248] sm:$0xf]  ;;  %v10093_v4 = vld [vmem:[#allocation12 + $0x260] sm:$0xf0]  ;;  %v7943_v12 = vld [vmem:[#allocation12 + $0x50] sm:$0xf] }
 0x3a9   :  { %v10030_v13 = vld [vmem:[#allocation12 + $0x68] sm:$0xf0] }
 0x3ab   :  { %6304 = vmatpush.bf16.msrb.mxu2 %v8836_v58  ;;  %6317 = vmatpush.bf16.msrb.mxu3 %v9060_v22  ;;  %v8251_v58 = vld [vmem:[#allocation12 + $0x2b8] sm:$0xf]  ;;  %v10107_v22 = vld [vmem:[#allocation12 + $0x2d0] sm:$0xf0] }
 0x3ac   :  { %6226 = vmatpush.bf16.msra.mxu0 %v9280_v15  ;;  %6239 = vmatpush.bf16.msra.mxu1 %v9504_v11  ;;  %v8280_v15 = vor.u32 %v10114_v3, %v8279_v2  ;;  %v10215_v11 = vld [vmem:[#allocation12 + $0x634] sm:$0xf]  ;;  %v8252_v27 = vor.u32 %v10107_v22, %v8251_v58  ;;  %v8167_v2 = vld [vmem:[#allocation12 + $0x210] sm:$0xf]  ;;  %v10086_v3 = vld [vmem:[#allocation12 + $0x228] sm:$0xf0] }
 0x3ad   :  { %v8696_v54 = vor.u32 %v10215_v11, %v8693_v14  ;;  %v7944_v11 = vor.u32 %v10030_v13, %v7943_v12  ;;  %v8168_v14 = vor.u32 %v10086_v3, %v8167_v2  ;;  %v8139_v58 = vld [vmem:[#allocation12 + $0x1d8] sm:$0xf]  ;;  %v8951_v12 = vld [vmem:[#allocation12 + $0x830] sm:$0xf]  ;;  %v10282_v13 = vld [vmem:[#allocation12 + $0x848] sm:$0xf0] }
 0x3ae   :  { %v9175_v2 = vld [vmem:[#allocation12 + $0x9f0] sm:$0xf]  ;;  %v10338_v3 = vld [vmem:[#allocation12 + $0xa08] sm:$0xf0] }
 0x3af   :  { %6305 = vmatpush.bf16.msrb.mxu2 %v8808_v18  ;;  %6318 = vmatpush.bf16.msrb.mxu3 %v9032_v55  ;;  %v10145_v18 = vld [vmem:[#allocation12 + $0x404] sm:$0xf]  ;;  %v8413_v55 = vld [vmem:[#allocation12 + $0x41c] sm:$0xf0] }
 0x3b0   :  { %6227 = vmatpush.bf16.msra.mxu0 %v9252_v30  ;;  %6240 = vmatpush.bf16.msra.mxu1 %v9476_v37  ;;  %v10044_v30 = vld [vmem:[#allocation12 + $0xd8] sm:$0xf0]  ;;  %v8223_v37 = vld [vmem:[#allocation12 + $0x280] sm:$0xf] }
 0x3b2   :  { %6306 = vmatmul.bf16.vlgmr.msrb.gmra.mxu2 %v10914_v16  ;;  %6319 = vmatmul.bf16.vlgmr.msrb.gmra.mxu3 %v10916_v17  ;;  %v11014_v24 = vpop.f32.mrf.mxu0  ;;  %v11016_v49 = vpop.f32.mrf.mxu1 }
 0x3b3   :  { %6350 = vmatpush.bf16.msra.mxu2 %v8112_v61  ;;  %6363 = vmatpush.bf16.msra.mxu3 %v8336_v56  ;;  %v7971_v61 = vld [vmem:[#allocation12 + $0x88] sm:$0xf] }
 0x3b4   :  { %6272 = vmatpush.bf16.msrb.mxu0 %v8556_v23  ;;  %6285 = vmatpush.bf16.msrb.mxu1 %v8780_v48  ;;  %v8000_v23 = vor.u32 %v10044_v30, %v7999_v29  ;;  %v8224_v48 = vor.u32 %v10100_v34, %v8223_v37  ;;  %v10296_v30 = vld [vmem:[#allocation12 + $0x8b8] sm:$0xf0]  ;;  %v9231_v37 = vld [vmem:[#allocation12 + $0xa60] sm:$0xf] }
 0x3b5   :  { %6228 = vmatmul.bf16.vlgmr.msra.gmra.mxu0 %v10936_v21  ;;  %6241 = vmatmul.bf16.vlgmr.msra.gmra.mxu1 %v10938_v50  ;;  %v11018_v56 = vpop.f32.mrf.mxu2  ;;  %v11020_v52 = vpop.f32.mrf.mxu3  ;;  %v10352_v34 = vld [vmem:[#allocation12 + $0xa78] sm:$0xf0] }
 0x3b7   :  { %6351 = vmatpush.bf16.msra.mxu2 %v8084_v60  ;;  %6364 = vmatpush.bf16.msra.mxu3 %v8308_v9  ;;  %v7972_v60 = vor.u32 %v10037_v62, %v7971_v61  ;;  %v8196_v9 = vor.u32 %v10093_v4, %v8195_v53  ;;  %v10453_v61 = vld [vmem:[#allocation12 + $0xda4] sm:$0xf]  ;;  %v9645_v62 = vld [vmem:[#allocation12 + $0xdbc] sm:$0xf0]  ;;  %v8979_v53 = vld [vmem:[#allocation12 + $0x868] sm:$0xf] }
 0x3b8   :  { %6273 = vmatpush.bf16.msrb.mxu0 %v8528_v0  ;;  %6286 = vmatpush.bf16.msrb.mxu1 %v8752_v1  ;;  %v8416_v0 = vor.u32 %v10145_v18, %v8413_v55  ;;  %v8640_v1 = vor.u32 %v10201_v40, %v8637_v51  ;;  %v9452_v18 = vor.u32 %v10404_v25, %v9449_v45  ;;  %v10289_v4 = vld [vmem:[#allocation12 + $0x880] sm:$0xf0]  ;;  %v10376_v25 = vld [vmem:[#allocation12 + $0xb3c] sm:$0xf]  ;;  %v9337_v45 = vld [vmem:[#allocation12 + $0xb54] sm:$0xf0] }
 0x3b9   :  { %v9008_v40 = vor.u32 %v10296_v30, %v9007_v42  ;;  %v9232_v51 = vor.u32 %v10352_v34, %v9231_v37  ;;  %v10432_v42 = vld [vmem:[#allocation12 + $0xcfc] sm:$0xf]  ;;  %v9119_v37 = vld [vmem:[#allocation12 + $0x980] sm:$0xf] }
 0x3ba   :  { %v6023_v5 = vpop.f32.mrf.mxu0  ;;  %v6036_v41 = vpop.f32.mrf.mxu1  ;;  %v10268_v30 = vld [vmem:[#allocation12 + $0x7d8] sm:$0xf0] }
 0x3bb   :  { %6352 = vmatpush.bf16.msra.mxu2 %v8056_v10  ;;  %6365 = vmatpush.bf16.msra.mxu3 %v8280_v15  ;;  %v10187_v10 = vld [vmem:[#allocation12 + $0x554] sm:$0xf]  ;;  %v8581_v15 = vld [vmem:[#allocation12 + $0x56c] sm:$0xf0]  ;;  %v9203_v5 = vld [vmem:[#allocation12 + $0xa28] sm:$0xf] }
 0x3bc   :  { %6274 = vmatpush.bf16.msrb.mxu0 %v8500_v6  ;;  %6287 = vmatpush.bf16.msrb.mxu1 %v8724_v7  ;;  %v10131_v6 = vld [vmem:[#allocation12 + $0x394] sm:$0xf]  ;;  %v8388_v7 = vor.u32 %v10138_v57, %v8385_v44  ;;  %v8584_v29 = vor.u32 %v10187_v10, %v8581_v15  ;;  %v10345_v41 = vld [vmem:[#allocation12 + $0xa40] sm:$0xf0]  ;;  %v10390_v57 = vld [vmem:[#allocation12 + $0xbac] sm:$0xf]  ;;  %v8952_v10 = vor.u32 %v10282_v13, %v8951_v12 }
 0x3bd   :  { %v6101_v22 = vpop.f32.mrf.mxu2  ;;  %v8360_v28 = vor.u32 %v10131_v6, %v8357_v8  ;;  %v9393_v44 = vld [vmem:[#allocation12 + $0xbc4] sm:$0xf0]  ;;  %v9365_v8 = vld [vmem:[#allocation12 + $0xb8c] sm:$0xf0]  ;;  %v9176_v15 = vor.u32 %v10338_v3, %v9175_v2  ;;  %v10324_v34 = vld [vmem:[#allocation12 + $0x998] sm:$0xf0] }
 0x3be   :  { %v9396_v6 = vor.u32 %v10390_v57, %v9393_v44  ;;  %v10331_v22 = vld [vmem:[#allocation12 + $0x9d0] sm:$0xf0]  ;;  %v10418_v13 = vld [vmem:[#allocation12 + $0xc8c] sm:$0xf]  ;;  %v9505_v2 = vld [vmem:[#allocation12 + $0xca4] sm:$0xf0] }
 0x3bf   :  { %6353 = vmatpush.bf16.msra.mxu2 %v8028_v20  ;;  %6366 = vmatpush.bf16.msra.mxu3 %v8252_v27  ;;  %v10460_v20 = vld [vmem:[#allocation12 + $0xddc] sm:$0xf]  ;;  %v9673_v27 = vld [vmem:[#allocation12 + $0xdf4] sm:$0xf0]  ;;  %v8839_v3 = vld [vmem:[#allocation12 + $0x750] sm:$0xf] }
 0x3c0   :  { %6275 = vmatpush.bf16.msrb.mxu0 %v8472_v36  ;;  %6288 = vmatpush.bf16.msrb.mxu1 %v8696_v54  ;;  %v6114_v36 = vpop.f32.mrf.mxu3  ;;  %v10079_v54 = vld [vmem:[#allocation12 + $0x1f0] sm:$0xf0]  ;;  %v9676_v55 = vor.u32 %v10460_v20, %v9673_v27 }
 0x3c3   :  { %6354 = vmatpush.bf16.msra.mxu2 %v8000_v23  ;;  %6367 = vmatpush.bf16.msra.mxu3 %v8224_v48  ;;  %v10397_v23 = vld [vmem:[#allocation12 + $0xbe4] sm:$0xf]  ;;  %v9421_v48 = vld [vmem:[#allocation12 + $0xbfc] sm:$0xf0] }
 0x3c4   :  { %6276 = vmatpush.bf16.msrb.mxu0 %v8444_v59  ;;  %6289 = vmatpush.bf16.msrb.mxu1 %v8668_v38  ;;  %v7916_v59 = vor.u32 %v10023_v26, %v7915_v19  ;;  %v8140_v38 = vor.u32 %v10079_v54, %v8139_v58  ;;  %v8923_v19 = vld [vmem:[#allocation12 + $0x7f8] sm:$0xf]  ;;  %v10275_v26 = vld [vmem:[#allocation12 + $0x810] sm:$0xf0] }
 0x3c5   :  { %v9147_v58 = vld [vmem:[#allocation12 + $0x9b8] sm:$0xf]  ;;  %v8924_v20 = vor.u32 %v10275_v26, %v8923_v19 }
 0x3c6   :  { %v9148_v27 = vor.u32 %v10331_v22, %v9147_v58  ;;  %v9477_v58 = vld [vmem:[#allocation12 + $0xc6c] sm:$0xf0]  ;;  %v8811_v22 = vld [vmem:[#allocation12 + $0x718] sm:$0xf] }
 0x3c7   :  { %6355 = vmatpush.bf16.msra.mxu2 %v7972_v60  ;;  %6368 = vmatpush.bf16.msra.mxu3 %v8196_v9  ;;  %v8980_v60 = vor.u32 %v10289_v4, %v8979_v53  ;;  %v9204_v9 = vor.u32 %v10345_v41, %v9203_v5  ;;  %v10261_v4 = vld [vmem:[#allocation12 + $0x7a0] sm:$0xf0]  ;;  %v9091_v5 = vld [vmem:[#allocation12 + $0x948] sm:$0xf] }
 0x3c8   :  { %6277 = vmatpush.bf16.msrb.mxu0 %v8416_v0  ;;  %6290 = vmatpush.bf16.msrb.mxu1 %v8640_v1  ;;  %v9424_v0 = vor.u32 %v10397_v23, %v9421_v48  ;;  %v9648_v1 = vor.u32 %v10453_v61, %v9645_v62  ;;  %v9120_v48 = vor.u32 %v10324_v34, %v9119_v37  ;;  %v8867_v61 = vld [vmem:[#allocation12 + $0x788] sm:$0xf]  ;;  %v10317_v41 = vld [vmem:[#allocation12 + $0x960] sm:$0xf0] }
 0x3c9   :  { %v9092_v12 = vor.u32 %v10317_v41, %v9091_v5  ;;  %v10226_v5 = vld [vmem:[#allocation12 + $0x688] sm:$0xf0]  ;;  %v6463_v41 = vld [vmem:[#allocation1 + $0x12] sm:$0xff] }
 0x3cb   :  { %6356 = vmatpush.bf16.msra.mxu2 %v7944_v11  ;;  %6369 = vmatpush.bf16.msra.mxu3 %v8168_v14  ;;  %v10439_v11 = vld [vmem:[#allocation12 + $0xd34] sm:$0xf]  ;;  %v9589_v14 = vld [vmem:[#allocation12 + $0xd4c] sm:$0xf0] }
 0x3cc   :  { %6278 = vmatpush.bf16.msrb.mxu0 %v8388_v7  ;;  %6291 = vmatpush.bf16.msrb.mxu1 %v8612_v43  ;;  %v9620_v7 = vor.u32 %v10446_v63, %v9617_v47  ;;  %v10383_v43 = vld [vmem:[#allocation12 + $0xb74] sm:$0xf]  ;;  %v9592_v54 = vor.u32 %v10439_v11, %v9589_v14  ;;  %v9281_v63 = vld [vmem:[#allocation12 + $0xae4] sm:$0xf0]  ;;  %v8868_v47 = vor.u32 %v10261_v4, %v8867_v61  ;;  %v9253_v11 = vld [vmem:[#allocation12 + $0xaac] sm:$0xf0] }
 0x3cd   :  { %v10411_v14 = vld [vmem:[#allocation12 + $0xc54] sm:$0xf]  ;;  %v8727_v4 = vld [vmem:[#allocation12 + $0x670] sm:$0xf] }
 0x3ce   :  { %v9480_v34 = vor.u32 %v10411_v14, %v9477_v58  ;;  %v10212_v14 = vld [vmem:[#allocation12 + $0x618] sm:$0xf0] }
 0x3cf   :  { %6357 = vmatpush.bf16.msra.mxu2 %v7916_v59  ;;  %6370 = vmatpush.bf16.msra.mxu3 %v8140_v38  ;;  %v9340_v59 = vor.u32 %v10376_v25, %v9337_v45  ;;  %v9035_v45 = vld [vmem:[#allocation12 + $0x8d8] sm:$0xf] }
 0x3d0   :  { %6279 = vmatpush.bf16.msrb.mxu0 %v8360_v28  ;;  %6292 = vmatpush.bf16.msrb.mxu1 %v8584_v29  ;;  %v9561_v28 = vld [vmem:[#allocation12 + $0xd14] sm:$0xf0]  ;;  %v8895_v29 = vld [vmem:[#allocation12 + $0x7c0] sm:$0xf] }
 0x3d1   :  { %v9564_v38 = vor.u32 %v10432_v42, %v9561_v28  ;;  %v8896_v23 = vor.u32 %v10268_v30, %v8895_v29  ;;  %v10184_v42 = vld [vmem:[#allocation12 + $0x538] sm:$0xf0]  ;;  %v8783_v28 = vld [vmem:[#allocation12 + $0x6e0] sm:$0xf] }
 0x3d2   :  { %6358 = vmatmul.bf16.vlgmr.msra.gmra.mxu2 %v10890_v32  ;;  %6371 = vmatmul.bf16.vlgmr.msra.gmra.mxu3 %v10892_v35  ;;  %v11026_v36 = vpop.f32.mrf.mxu0  ;;  %v11028_v32 = vpop.f32.mrf.mxu1  ;;  %v9368_v35 = vor.u32 %v10383_v43, %v9365_v8  ;;  %v10310_v43 = vld [vmem:[#allocation12 + $0x928] sm:$0xf0]  ;;  %v10240_v29 = vld [vmem:[#allocation12 + $0x6f8] sm:$0xf0] }
 0x3d3   :  { %6402 = vmatpush.bf16.msrb.mxu2 %v9008_v40  ;;  %6415 = vmatpush.bf16.msrb.mxu3 %v9232_v51  ;;  %v10425_v40 = vld [vmem:[#allocation12 + $0xcc4] sm:$0xf]  ;;  %v9533_v51 = vld [vmem:[#allocation12 + $0xcdc] sm:$0xf0]  ;;  %v6074_v30 = vadd.f32 %v11026_v36, %v11008_v46 }
 0x3d4   :  { %6324 = vmatpush.bf16.msra.mxu0 %v9452_v18  ;;  %6337 = vmatpush.bf16.msra.mxu1 %v9676_v55  ;;  %v10369_v18 = vld [vmem:[#allocation12 + $0xb04] sm:$0xf]  ;;  %v9309_v55 = vld [vmem:[#allocation12 + $0xb1c] sm:$0xf0] }
 0x3d5   :  { %6280 = vmatmul.bf16.vlgmr.msrb.gmra.mxu0 %v10900_v31  ;;  %6293 = vmatmul.bf16.vlgmr.msrb.gmra.mxu1 %v10902_v33  ;;  %v6151_v62 = vpop.f32.mrf.mxu2  ;;  %v6164_v53 = vpop.f32.mrf.mxu3  ;;  %v9312_v44 = vor.u32 %v10369_v18, %v9309_v55  ;;  %v8784_v55 = vor.u32 %v10240_v29, %v8783_v28  ;;  %v6087_v61 = vadd.f32 %v11028_v32, %v6074_v30 }
 0x3d7   :  { %6403 = vmatpush.bf16.msrb.mxu2 %v8980_v60  ;;  %6416 = vmatpush.bf16.msrb.mxu3 %v9204_v9  ;;  %v9536_v60 = vor.u32 %v10425_v40, %v9533_v51  ;;  %v10362_v9 = vld [vmem:[#allocation12 + $0xacc] sm:$0xf]  ;;  %v8755_v40 = vld [vmem:[#allocation12 + $0x6a8] sm:$0xf]  ;;  %v10233_v51 = vld [vmem:[#allocation12 + $0x6c0] sm:$0xf0]  ;;  %v6100_v32 = vadd.f32 %v11018_v56, %v6087_v61 }
 0x3d8   :  { %6325 = vmatpush.bf16.msra.mxu0 %v9424_v0  ;;  %6338 = vmatpush.bf16.msra.mxu1 %v9648_v1  ;;  %v11030_v0 = vadd.f32 %v6164_v53, %v6151_v62  ;;  %v9284_v8 = vor.u32 %v10362_v9, %v9281_v63  ;;  %v8756_v36 = vor.u32 %v10233_v51, %v8755_v40  ;;  %v8503_v62 = vld [vmem:[#allocation12 + $0x4b0] sm:$0xf]  ;;  %v10170_v53 = vld [vmem:[#allocation12 + $0x4c8] sm:$0xf0]  ;;  %v8475_v63 = vld [vmem:[#allocation12 + $0x478] sm:$0xf] }
 0x3da   :  { %v6075_v1 = vpop.f32.mrf.mxu0  ;;  %v6088_v57 = vpop.f32.mrf.mxu1 }
 0x3db   :  { %6404 = vmatpush.bf16.msrb.mxu2 %v8952_v10  ;;  %6417 = vmatpush.bf16.msrb.mxu3 %v9176_v15  ;;  %v9508_v10 = vor.u32 %v10418_v13, %v9505_v2  ;;  %v10355_v15 = vld [vmem:[#allocation12 + $0xa94] sm:$0xf]  ;;  %v6464_v1 = vld [vmem:[#allocation1 + $0x1b] sm:$0xff]  ;;  %v8504_v57 = vor.u32 %v10170_v53, %v8503_v62  ;;  %v6022_v2 = vadd.f32 %v11014_v24, %v11006_v39  ;;  %v8587_v53 = vld [vmem:[#allocation12 + $0x558] sm:$0xf] }
 0x3dc   :  { %6326 = vmatpush.bf16.msra.mxu0 %v9396_v6  ;;  %6339 = vmatpush.bf16.msra.mxu1 %v9620_v7  ;;  %v10254_v6 = vld [vmem:[#allocation12 + $0x768] sm:$0xf0]  ;;  %v9063_v7 = vld [vmem:[#allocation12 + $0x910] sm:$0xf]  ;;  %v9256_v37 = vor.u32 %v10355_v15, %v9253_v11  ;;  %v6477_v9 = vpack.i.b16 %v6464_v1, %v6464_v1  ;;  %v10219_v13 = vld [vmem:[#allocation12 + $0x650] sm:$0xf0] }
 0x3dd   :  { %v8840_v19 = vor.u32 %v10254_v6, %v8839_v3  ;;  %v9064_v26 = vor.u32 %v10310_v43, %v9063_v7  ;;  %v6166_v25 = vpop.f32.mrf.mxu3  ;;  %v6113_v3 = vadd.f32 %v11020_v52, %v6100_v32  ;;  %v10156_v15 = vld [vmem:[#allocation12 + $0x458] sm:$0xf0]  ;;  %v8671_v11 = vld [vmem:[#allocation12 + $0x600] sm:$0xf]  ;;  %v10135_v62 = vld [vmem:[#allocation12 + $0x3b0] sm:$0xf0] }
 0x3de   :  { %v6479_v43 = vperm.slane %v6477_v9, 0  ;;  %v8643_v25 = vld [vmem:[#allocation12 + $0x5c8] sm:$0xf]  ;;  %v10408_v32 = vld [vmem:[#allocation12 + $0xc38] sm:$0xf0] }
 0x3df   :  { %6405 = vmatpush.bf16.msrb.mxu2 %v8924_v20  ;;  %6418 = vmatpush.bf16.msrb.mxu3 %v9148_v27  ;;  %v10303_v20 = vld [vmem:[#allocation12 + $0x8f0] sm:$0xf0]  ;;  %v8559_v27 = vld [vmem:[#allocation12 + $0x520] sm:$0xf] }
 0x3e0   :  { %6327 = vmatpush.bf16.msra.mxu0 %v9368_v35  ;;  %6340 = vmatpush.bf16.msra.mxu1 %v9592_v54  ;;  %v10247_v35 = vld [vmem:[#allocation12 + $0x730] sm:$0xf0]  ;;  %v6153_v54 = vpop.f32.mrf.mxu2  ;;  %v8560_v18 = vor.u32 %v10184_v42, %v8559_v27  ;;  %v6499_v52 = vunpack.c.l.bf16 %v6479_v43 }
 0x3e1   :  { %v10149_v54 = vld [vmem:[#allocation12 + $0x420] sm:$0xf0] }
 0x3e3   :  { %6406 = vmatpush.bf16.msrb.mxu2 %v8896_v23  ;;  %6419 = vmatpush.bf16.msrb.mxu3 %v9120_v48  ;;  %v8531_v23 = vld [vmem:[#allocation12 + $0x4e8] sm:$0xf]  ;;  %v10177_v48 = vld [vmem:[#allocation12 + $0x500] sm:$0xf0] }
 0x3e4   :  { %6328 = vmatpush.bf16.msra.mxu0 %v9340_v59  ;;  %6341 = vmatpush.bf16.msra.mxu1 %v9564_v38  ;;  %v8812_v59 = vor.u32 %v10247_v35, %v8811_v22  ;;  %v9036_v38 = vor.u32 %v10303_v20, %v9035_v45  ;;  %v8532_v46 = vor.u32 %v10177_v48, %v8531_v23  ;;  %v8419_v35 = vld [vmem:[#allocation12 + $0x408] sm:$0xf]  ;;  %v10205_v45 = vld [vmem:[#allocation12 + $0x5e0] sm:$0xf0]  ;;  %v10198_v23 = vld [vmem:[#allocation12 + $0x5a8] sm:$0xf0] }
 0x3e5   :  { %v8672_v22 = vor.u32 %v10212_v14, %v8671_v11  ;;  %v8420_v30 = vor.u32 %v10149_v54, %v8419_v35  ;;  %v9343_v35 = vld [vmem:[#allocation12 + $0xb40] sm:$0xf]  ;;  %v10380_v54 = vld [vmem:[#allocation12 + $0xb58] sm:$0xf0] }
 0x3e7   :  { %6407 = vmatpush.bf16.msrb.mxu2 %v8868_v47  ;;  %6420 = vmatpush.bf16.msrb.mxu3 %v9092_v12  ;;  %v10163_v47 = vld [vmem:[#allocation12 + $0x490] sm:$0xf0]  ;;  %v8699_v12 = vld [vmem:[#allocation12 + $0x638] sm:$0xf] }
 0x3e8   :  { %6329 = vmatpush.bf16.msra.mxu0 %v9312_v44  ;;  %6342 = vmatpush.bf16.msra.mxu1 %v9536_v60  ;;  %v8728_v44 = vor.u32 %v10226_v5, %v8727_v4  ;;  %v6474_v60 = vpack.i.b16 %v6463_v41, %v6463_v41  ;;  %v10191_v4 = vld [vmem:[#allocation12 + $0x570] sm:$0xf0]  ;;  %v9455_v5 = vld [vmem:[#allocation12 + $0xc20] sm:$0xf] }
 0x3e9   :  { %v8588_v9 = vor.u32 %v10191_v4, %v8587_v53  ;;  %v9259_v4 = vld [vmem:[#allocation12 + $0xa98] sm:$0xf] }
 0x3ea   :  { %v6476_v7 = vperm.slane %v6474_v60, 0 }
 0x3eb   :  { %6408 = vmatpush.bf16.msrb.mxu2 %v8840_v19  ;;  %6421 = vmatpush.bf16.msrb.mxu3 %v9064_v26  ;;  %v6035_v19 = vadd.f32 %v11016_v49, %v6022_v2  ;;  %v9651_v2 = vld [vmem:[#allocation12 + $0xda8] sm:$0xf] }
 0x3ec   :  { %6330 = vmatpush.bf16.msra.mxu0 %v9284_v8  ;;  %6343 = vmatpush.bf16.msra.mxu1 %v9508_v10  ;;  %v8700_v8 = vor.u32 %v10219_v13, %v8699_v12  ;;  %v8447_v10 = vld [vmem:[#allocation12 + $0x440] sm:$0xf]  ;;  %v6498_v24 = vunpack.c.l.bf16 %v6476_v7  ;;  %v9427_v12 = vld [vmem:[#allocation12 + $0xbe8] sm:$0xf]  ;;  %v10401_v13 = vld [vmem:[#allocation12 + $0xc00] sm:$0xf0] }
 0x3ed   :  { %v8448_v58 = vor.u32 %v10156_v15, %v8447_v10  ;;  %v9399_v7 = vld [vmem:[#allocation12 + $0xbb0] sm:$0xf]  ;;  %v10450_v15 = vld [vmem:[#allocation12 + $0xd88] sm:$0xf0] }
 0x3ee   :  { %v9623_v10 = vld [vmem:[#allocation12 + $0xd70] sm:$0xf] }
 0x3ef   :  { %6409 = vmatpush.bf16.msrb.mxu2 %v8812_v59  ;;  %6422 = vmatpush.bf16.msrb.mxu3 %v9036_v38  ;;  %v8644_v59 = vor.u32 %v10205_v45, %v8643_v25  ;;  %v8391_v38 = vld [vmem:[#allocation12 + $0x3d0] sm:$0xf]  ;;  %v9624_v14 = vor.u32 %v10450_v15, %v9623_v10  ;;  %v9567_v25 = vld [vmem:[#allocation12 + $0xd00] sm:$0xf]  ;;  %v10436_v45 = vld [vmem:[#allocation12 + $0xd18] sm:$0xf0] }
 0x3f0   :  { %6331 = vmatpush.bf16.msra.mxu0 %v9256_v37  ;;  %6344 = vmatpush.bf16.msra.mxu1 %v9480_v34 }
 0x3f2   :  { %6410 = vmatmul.bf16.vlgmr.msrb.gmra.mxu2 %v10914_v16  ;;  %6423 = vmatmul.bf16.vlgmr.msrb.gmra.mxu3 %v10916_v17  ;;  %v6125_v56 = vpop.f32.mrf.mxu0  ;;  %v6138_v6 = vpop.f32.mrf.mxu1  ;;  %v8476_v16 = vor.u32 %v10163_v47, %v8475_v63  ;;  %v9456_v63 = vor.u32 %v10408_v32, %v9455_v5  ;;  %v10359_v5 = vld [vmem:[#allocation12 + $0xab0] sm:$0xf0] }
 0x3f3   :  { %6332 = vmatmul.bf16.vlgmr.msra.gmra.mxu0 %v10936_v21  ;;  %6345 = vmatmul.bf16.vlgmr.msra.gmra.mxu1 %v10938_v50  ;;  %v6126_v17 = vadd.f32 %v6125_v56, %v6113_v3  ;;  %v10457_v3 = vld [vmem:[#allocation12 + $0xdc0] sm:$0xf0] }
 0x3f4   :  { %6376 = vmatpush.bf16.msrb.mxu0 %v8560_v18  ;;  %6389 = vmatpush.bf16.msrb.mxu1 %v8784_v55  ;;  %v10142_v18 = vld [vmem:[#allocation12 + $0x3e8] sm:$0xf0]  ;;  %v8615_v55 = vld [vmem:[#allocation12 + $0x590] sm:$0xf] }
 0x3f5   :  { %v6139_v26 = vadd.f32 %v6138_v6, %v6126_v17  ;;  %v11044_v42 = vpop.f32.mrf.mxu2  ;;  %v11046_v28 = vpop.f32.mrf.mxu3  ;;  %v8392_v61 = vor.u32 %v10142_v18, %v8391_v38  ;;  %v9652_v17 = vor.u32 %v10457_v3, %v9651_v2 }
 0x3f7   :  { %v6455_v39 = vpack.c.bf16 %v6139_v26, %v6035_v19  ;;  %v9371_v19 = vld [vmem:[#allocation12 + $0xb78] sm:$0xf]  ;;  %v10387_v26 = vld [vmem:[#allocation12 + $0xb90] sm:$0xf0] }
 0x3f8   :  { %6377 = vmatpush.bf16.msrb.mxu0 %v8532_v46  ;;  %6390 = vmatpush.bf16.msrb.mxu1 %v8756_v36  ;;  %v8616_v46 = vor.u32 %v10198_v23, %v8615_v55  ;;  %v8363_v36 = vld [vmem:[#allocation12 + $0x398] sm:$0xf] }
 0x3f9   :  { %v6491_v20 = vunpack.c.l.bf16 %v6455_v39  ;;  %v6492_v27 = vunpack.c.h.bf16 %v6455_v39  ;;  %v8364_v60 = vor.u32 %v10135_v62, %v8363_v36  ;;  %v10443_v39 = vld [vmem:[#allocation12 + $0xd50] sm:$0xf0]  ;;  %v9511_v36 = vld [vmem:[#allocation12 + $0xc90] sm:$0xf]  ;;  %v10422_v62 = vld [vmem:[#allocation12 + $0xca8] sm:$0xf0] }
 0x3fa   :  { %v6127_v29 = vpop.f32.mrf.mxu0  ;;  %v6140_v49 = vpop.f32.mrf.mxu1  ;;  %v9512_v53 = vor.u32 %v10422_v62, %v9511_v36 }
 0x3fb   :  { %v6505_v37 = vadd.f32 %v6498_v24, %v6491_v20  ;;  %v6506_v34 = vadd.f32 %v6499_v52, %v6492_v27  ;;  %v9344_v27 = vor.u32 %v10380_v54, %v9343_v35  ;;  %v9568_v29 = vor.u32 %v10436_v45, %v9567_v25  ;;  %v9315_v49 = vld [vmem:[#allocation12 + $0xb08] sm:$0xf] }
 0x3fc   :  { %6378 = vmatpush.bf16.msrb.mxu0 %v8504_v57  ;;  %6391 = vmatpush.bf16.msrb.mxu1 %v8728_v44  ;;  %v9679_v57 = vld [vmem:[#allocation12 + $0xde0] sm:$0xf]  ;;  %v10464_v44 = vld [vmem:[#allocation12 + $0xdf8] sm:$0xf0] }
 0x3fd   :  { %v6511_v48 = vpack.c.bf16 %v6506_v34, %v6505_v37  ;;  %v6205_v41 = vpop.f32.mrf.mxu2  ;;  %v6218_v1 = vpop.f32.mrf.mxu3  ;;  %v9680_v47 = vor.u32 %v10464_v44, %v9679_v57  ;;  %v10373_v37 = vld [vmem:[#allocation12 + $0xb20] sm:$0xf0]  ;;  %v9539_v34 = vld [vmem:[#allocation12 + $0xcc8] sm:$0xf]  ;;  %v9260_v57 = vor.u32 %v10359_v5, %v9259_v4 }
 0x3fe   :  { %v9483_v41 = vld [vmem:[#allocation12 + $0xc58] sm:$0xf]  ;;  %v10415_v1 = vld [vmem:[#allocation12 + $0xc70] sm:$0xf0] }
 0x3ff   :  { %v6516_v40 = vunpack.c.l.bf16 %v6511_v48  ;;  %v6517_v51 = vunpack.c.h.bf16 %v6511_v48  ;;  %v9484_v44 = vor.u32 %v10415_v1, %v9483_v41  ;;  %v6467_v41 = vld [vmem:[#allocation1 + $0x36] sm:$0xff] }
 0x400   :  { %6379 = vmatpush.bf16.msrb.mxu0 %v8476_v16  ;;  %6392 = vmatpush.bf16.msrb.mxu1 %v8700_v8  ;;  %v9428_v16 = vor.u32 %v10401_v13, %v9427_v12  ;;  %v10394_v8 = vld [vmem:[#allocation12 + $0xbc8] sm:$0xf0] }
 0x401   :  { %10485 = vtanh.f32 %v6516_v40  ;;  %v9400_v11 = vor.u32 %v10394_v8, %v9399_v7  ;;  %v9316_v40 = vor.u32 %v10373_v37, %v9315_v49 }
 0x402   :  { %10487 = vtanh.f32 %v6517_v51 }
 0x404   :  { %6380 = vmatpush.bf16.msrb.mxu0 %v8448_v58  ;;  %6393 = vmatpush.bf16.msrb.mxu1 %v8672_v22  ;;  %v9595_v58 = vld [vmem:[#allocation12 + $0xd38] sm:$0xf]  ;;  %v9372_v22 = vor.u32 %v10387_v26, %v9371_v19 }
 0x407   :  { %v10486_v56 = vpop.eup %10485 }
 0x408   :  { %6381 = vmatpush.bf16.msrb.mxu0 %v8420_v30  ;;  %6394 = vmatpush.bf16.msrb.mxu1 %v8644_v59  ;;  %v10488_v6 = vpop.eup %10487  ;;  %v10429_v59 = vld [vmem:[#allocation12 + $0xce0] sm:$0xf0] }
 0x409   :  { %v6529_v43 = vpack.c.bf16 %v10488_v6, %v10486_v56  ;;  %v9540_v51 = vor.u32 %v10429_v59, %v9539_v34 }
 0x40b   :  { %6533 = vst [vmem:[%s11073_s9 + $0x8] sm:$0xff] %v6529_v43 }
 0x40c   :  { %6382 = vmatpush.bf16.msrb.mxu0 %v8392_v61  ;;  %6395 = vmatpush.bf16.msrb.mxu1 %v8616_v46  ;;  %v9287_v61 = vld [vmem:[#allocation12 + $0xad0] sm:$0xf]  ;;  %v10366_v46 = vld [vmem:[#allocation12 + $0xae8] sm:$0xf0] }
 0x410   :  { %6383 = vmatpush.bf16.msrb.mxu0 %v8364_v60  ;;  %6396 = vmatpush.bf16.msrb.mxu1 %v8588_v9 }
 0x412   :  { %v6177_v24 = vpop.f32.mrf.mxu0  ;;  %v6190_v52 = vpop.f32.mrf.mxu1 }
 0x413   :  { %6384 = vmatmul.bf16.vlgmr.msrb.gmra.mxu0 %v10900_v31  ;;  %6397 = vmatmul.bf16.vlgmr.msrb.gmra.mxu1 %v10902_v33  ;;  %v9596_v31 = vor.u32 %v10443_v39, %v9595_v58  ;;  %v6178_v33 = vadd.f32 %v6177_v24, %v11030_v0 }
 0x414   :  { %6428 = vmatpush.bf16.msra.mxu0 %v9456_v63  ;;  %6441 = vmatpush.bf16.msra.mxu1 %v9680_v47 }
 0x415   :  { %v6191_v20 = vadd.f32 %v6190_v52, %v6178_v33  ;;  %v6255_v38 = vpop.f32.mrf.mxu2  ;;  %v6268_v18 = vpop.f32.mrf.mxu3 }
 0x416   :  { %v6269_v0 = vadd.f32 %v6268_v18, %v6255_v38 }
 0x417   :  { %v6204_v30 = vadd.f32 %v11044_v42, %v6191_v20  ;;  %v9288_v42 = vor.u32 %v10366_v46, %v9287_v61 }
 0x418   :  { %6429 = vmatpush.bf16.msra.mxu0 %v9428_v16  ;;  %6442 = vmatpush.bf16.msra.mxu1 %v9652_v17 }
 0x419   :  { %v6217_v55 = vadd.f32 %v11046_v28, %v6204_v30 }
 0x41a   :  { %v6179_v23 = vpop.f32.mrf.mxu0  ;;  %v6192_v48 = vpop.f32.mrf.mxu1 }
 0x41c   :  { %6430 = vmatpush.bf16.msra.mxu0 %v9400_v11  ;;  %6443 = vmatpush.bf16.msra.mxu1 %v9624_v14  ;;  %v6466_v14 = vld [vmem:[#allocation1 + $0x2d] sm:$0xff] }
 0x41d   :  { %v6257_v28 = vpop.f32.mrf.mxu2  ;;  %v6270_v32 = vpop.f32.mrf.mxu3  ;;  %v6483_v58 = vpack.i.b16 %v6466_v14, %v6466_v14 }
 0x41e   :  { %v6486_v28 = vpack.i.b16 %v6467_v41, %v6467_v41 }
 0x41f   :  { %v6485_v33 = vperm.slane %v6483_v58, 0 }
 0x420   :  { %6431 = vmatpush.bf16.msra.mxu0 %v9372_v22  ;;  %6444 = vmatpush.bf16.msra.mxu1 %v9596_v31 }
 0x424   :  { %6432 = vmatpush.bf16.msra.mxu0 %v9344_v27  ;;  %6445 = vmatpush.bf16.msra.mxu1 %v9568_v29  ;;  %v6501_v27 = vunpack.c.l.bf16 %v6485_v33 }
 0x428   :  { %6433 = vmatpush.bf16.msra.mxu0 %v9316_v40  ;;  %6446 = vmatpush.bf16.msra.mxu1 %v9540_v51 }
 0x42c   :  { %6434 = vmatpush.bf16.msra.mxu0 %v9288_v42  ;;  %6447 = vmatpush.bf16.msra.mxu1 %v9512_v53 }
 0x430   :  { %6435 = vmatpush.bf16.msra.mxu0 %v9260_v57  ;;  %6448 = vmatpush.bf16.msra.mxu1 %v9484_v44 }
 0x432   :  { %v6229_v60 = vpop.f32.mrf.mxu0  ;;  %v6242_v9 = vpop.f32.mrf.mxu1 }
 0x433   :  { %6436 = vmatmul.bf16.vlgmr.msra.gmra.mxu0 %v10936_v21  ;;  %6449 = vmatmul.bf16.vlgmr.msra.gmra.mxu1 %v10938_v50  ;;  %v6465_v50 = vld [vmem:[#allocation1 + $0x24] sm:$0xff]  ;;  %v6230_v39 = vadd.f32 %v6229_v60, %v6217_v55 }
 0x434   :  { %v6480_v26 = vpack.i.b16 %v6465_v50, %v6465_v50 }
 0x435   :  { %v6307_v63 = vpop.f32.mrf.mxu2  ;;  %v6320_v47 = vpop.f32.mrf.mxu3  ;;  %v6243_v54 = vadd.f32 %v6242_v9, %v6230_v39  ;;  %v6488_v9 = vperm.slane %v6486_v28, 0 }
 0x436   :  { %v6482_v35 = vperm.slane %v6480_v26, 0 }
 0x438   :  { %v6500_v20 = vunpack.c.l.bf16 %v6482_v35 }
 0x43a   :  { %v6231_v12 = vpop.f32.mrf.mxu0  ;;  %v6244_v13 = vpop.f32.mrf.mxu1 }
 0x43b   :  { %v6502_v12 = vunpack.c.l.bf16 %v6488_v9 }
 0x43d   :  { %v6309_v2 = vpop.f32.mrf.mxu2  ;;  %v6322_v3 = vpop.f32.mrf.mxu3 }
 0x452   :  { %v6281_v56 = vpop.f32.mrf.mxu0  ;;  %v6294_v6 = vpop.f32.mrf.mxu1 }
 0x453   :  { %v6282_v21 = vadd.f32 %v6281_v56, %v6269_v0 }
 0x455   :  { %v6359_v16 = vpop.f32.mrf.mxu2  ;;  %v6372_v17 = vpop.f32.mrf.mxu3  ;;  %v6295_v11 = vadd.f32 %v6294_v6, %v6282_v21 }
 0x456   :  { %v6373_v7 = vadd.f32 %v6372_v17, %v6359_v16 }
 0x457   :  { %v6308_v19 = vadd.f32 %v6307_v63, %v6295_v11 }
 0x459   :  { %v6321_v24 = vadd.f32 %v6320_v47, %v6308_v19 }
 0x45a   :  { %v6283_v43 = vpop.f32.mrf.mxu0  ;;  %v6296_v8 = vpop.f32.mrf.mxu1 }
 0x45d   :  { %v6361_v10 = vpop.f32.mrf.mxu2  ;;  %v6374_v15 = vpop.f32.mrf.mxu3 }
 0x470   :  { %v6333_v52 = vpop.f32.mrf.mxu0  ;;  %v6346_v22 = vpop.f32.mrf.mxu1 }
 0x471   :  { %v6334_v31 = vadd.f32 %v6333_v52, %v6321_v24 }
 0x473   :  { %v6347_v25 = vadd.f32 %v6346_v22, %v6334_v31 }
 0x475   :  { %v6456_v45 = vpack.c.bf16 %v6347_v25, %v6243_v54  ;;  %v6411_v30 = vpop.f32.mrf.mxu2  ;;  %v6424_v37 = vpop.f32.mrf.mxu3 }
 0x477   :  { %v6493_v29 = vunpack.c.l.bf16 %v6456_v45  ;;  %v6494_v49 = vunpack.c.h.bf16 %v6456_v45 }
 0x478   :  { %v6335_v34 = vpop.f32.mrf.mxu0  ;;  %v6348_v59 = vpop.f32.mrf.mxu1 }
 0x479   :  { %v6507_v38 = vadd.f32 %v6500_v20, %v6493_v29  ;;  %v6508_v18 = vadd.f32 %v6501_v27, %v6494_v49 }
 0x47b   :  { %v6512_v55 = vpack.c.bf16 %v6508_v18, %v6507_v38 }
 0x47d   :  { %v6518_v0 = vunpack.c.l.bf16 %v6512_v55  ;;  %v6519_v23 = vunpack.c.h.bf16 %v6512_v55  ;;  %v6413_v48 = vpop.f32.mrf.mxu2  ;;  %v6426_v40 = vpop.f32.mrf.mxu3 }
 0x47f   :  { %10489 = vtanh.f32 %v6518_v0 }
 0x480   :  { %10491 = vtanh.f32 %v6519_v23 }
 0x485   :  { %v10490_v51 = vpop.eup %10489 }
 0x486   :  { %v10492_v61 = vpop.eup %10491 }
 0x487   :  { %v6530_v46 = vpack.c.bf16 %v10492_v61, %v10490_v51 }
 0x489   :  { %6534 = vst [vmem:[%s11073_s9 + $0x10] sm:$0xff] %v6530_v46 }
 0x490   :  { %v6385_v36 = vpop.f32.mrf.mxu0  ;;  %v6398_v62 = vpop.f32.mrf.mxu1 }
 0x491   :  { %v6386_v4 = vadd.f32 %v6385_v36, %v6373_v7 }
 0x493   :  { %v6399_v5 = vadd.f32 %v6398_v62, %v6386_v4 }
 0x495   :  { %v6412_v1 = vadd.f32 %v6411_v30, %v6399_v5 }
 0x497   :  { %v6425_v32 = vadd.f32 %v6424_v37, %v6412_v1 }
 0x498   :  { %v6387_v42 = vpop.f32.mrf.mxu0  ;;  %v6400_v53 = vpop.f32.mrf.mxu1 }
 0x4b0   :  { %v6437_v57 = vpop.f32.mrf.mxu0  ;;  %v6450_v44 = vpop.f32.mrf.mxu1 }
 0x4b1   :  { %v6438_v60 = vadd.f32 %v6437_v57, %v6425_v32 }
 0x4b3   :  { %v6451_v63 = vadd.f32 %v6450_v44, %v6438_v60 }
 0x4b5   :  { %v6457_v47 = vpack.c.bf16 %v6451_v63, %v6451_v63 }
 0x4b7   :  { %v6495_v13 = vunpack.c.l.bf16 %v6457_v47 }
 0x4b8   :  { %v6439_v2 = vpop.f32.mrf.mxu0  ;;  %v6452_v3 = vpop.f32.mrf.mxu1 }
 0x4b9   :  { %v6509_v56 = vadd.f32 %v6502_v12, %v6495_v13 }
 0x4bb   :  { %v6513_v6 = vpack.c.bf16 %v6509_v56, %v6509_v56 }
 0x4bd   :  { %v6520_v16 = vunpack.c.l.bf16 %v6513_v6 }
 0x4bf   :  { %10493 = vtanh.f32 %v6520_v16 }
 0x4c5   :  { %v10494_v17 = vpop.eup %10493 }
 0x4c6   :  { %v6531_v7 = vpack.c.bf16 %v10494_v17, %v10494_v17 }
 0x4c8   :  { %6535 = vst [vmem:[%s11073_s9 + $0x18] sm:$0xf] %v6531_v7 }
 0x4c9   :  { %6540 = vsyncpa [#allocation3], 1 }
 0x4ca   :  { %6541 = vsyncpa [#allocation5], 1 }
 0x4cb   :  { %6542 = vsyncpa [#allocation8], 1 }
 0x4cc   :  { %6543 = vsyncpa [#allocation11], 1 }
 0x4cd   :  { %6544 = vsyncpa [#allocation14], 1 }

</bundles_post_ra>
